<compile_context>
chip_gen: v7x
topology: tpu7x:2x2x1
jax: 0.10.0
libtpu: 0.0.40
codegen_flags: <defaults>
</compile_context>

<pallas_src>
import functools

import numpy as np
import jax
import jax.numpy as jnp
from jax.experimental import pallas as pl
from jax.experimental.pallas import tpu as pltpu

nc = 3
ndf = 2
BN_EPS = 1e-5

assert nc == 3 and ndf == 2, "kernel constants are laid out for nc=3, ndf=2"


def _round_up(v, m):
    return ((v + m - 1) // m) * m


# --------------------------- in-kernel helpers ----------------------------- #
def _lrelu(v):
    return jnp.maximum(v, 0.2 * v)


def _batchnorm(acc, gb_ref, OC, count):
    """Training-mode BN on acc (rows=(oh,n), lanes=(ow,oc)); one-pass stats,
    folded into a single per-lane scale/bias."""
    L = acc.shape[1]
    colsum = jnp.sum(acc, axis=0, keepdims=True)                      # (1, L)
    sqsum = jnp.sum(acc * acc, axis=0, keepdims=True)                 # (1, L)
    li = jax.lax.broadcasted_iota(jnp.int32, (L, OC), 0)
    ci = jax.lax.broadcasted_iota(jnp.int32, (L, OC), 1)
    fold = jnp.where((li % OC) == ci, 1.0, 0.0)                       # (L, OC)
    chs = jnp.dot(colsum, fold, preferred_element_type=jnp.float32)   # (1, OC)
    chq = jnp.dot(sqsum, fold, preferred_element_type=jnp.float32)
    mean = chs / count
    var = chq / count - mean * mean                                   # biased
    gamma = gb_ref[0:1, :]
    beta = gb_ref[1:2, :]
    scale = gamma * jax.lax.rsqrt(var + BN_EPS)                       # (1, OC)
    bias = beta - mean * scale
    li2 = jax.lax.broadcasted_iota(jnp.int32, (OC, L), 0)
    ci2 = jax.lax.broadcasted_iota(jnp.int32, (OC, L), 1)
    expand = jnp.where(li2 == (ci2 % OC), 1.0, 0.0)                   # (OC, L)
    scale_l = jnp.dot(scale, expand, preferred_element_type=jnp.float32)
    bias_l = jnp.dot(bias, expand, preferred_element_type=jnp.float32)
    return acc * scale_l + bias_l


# ------------------------------ the kernel --------------------------------- #
def _disc_kernel(N, Np, x_ref, b1_ref, b2_ref, b3_ref, b4_ref,
                 gb2_ref, gb3_ref, gb4_ref, w5_ref, o_ref,
                 buf2, buf3, buf4):
    f32, bf16 = jnp.float32, jnp.bfloat16

    def bmask(v):
        # zero rows of padded (non-existent) samples; exact BN stats preserved
        if N == Np:
            return v
        rows, lanes = v.shape
        ri = jax.lax.broadcasted_iota(jnp.int32, (rows, lanes), 0)
        return jnp.where((ri % Np) < N, v, 0.0)

    def scatter_h_im2col(y, buf, oh_out):
        """y: (2*oh_out*Np, 64) f32 layer output, rows=(oh, n), lanes=(ow, oc).
        Write it into `buf` (oh_out*Np, 256) bf16 in H-im2col layout:
        row-group oh', lane block kh (64 wide) holds output padded row 2*oh'+kh."""
        y4 = y.reshape(oh_out, 2, Np, 64)     # [j, parity, n, :] = out row 2j+p

        def put(rlo, rhi, kh, src):
            cnt = rhi - rlo
            buf[rlo * Np:rhi * Np, kh * 64:(kh + 1) * 64] = (
                src.reshape(cnt * Np, 64).astype(bf16))

        # halo blocks (top pad row for kh=0, bottom pad row for kh=3)
        buf[0:Np, 0:64] = jnp.zeros((Np, 64), bf16)
        buf[(oh_out - 1) * Np:oh_out * Np, 192:256] = jnp.zeros((Np, 64), bf16)
        put(1, oh_out, 0, y4[0:oh_out - 1, 1])     # kh=0: out row 2oh'-1
        put(0, oh_out, 1, y4[0:oh_out, 0])         # kh=1: out row 2oh'
        put(0, oh_out, 2, y4[0:oh_out, 1])         # kh=2: out row 2oh'+1
        put(0, oh_out - 1, 3, y4[1:oh_out, 0])     # kh=3: out row 2oh'+2

    # ---- layer 1: Conv(3->2, k4 s2 p1) + LeakyReLU --------------------------
    # x_ref: (2, 33*Np, 192) bf16, [parity, j*Np+n, ic*64+w] = x_pad[n,ic,2j+p,w]
    acc1 = None
    for kh in range(4):
        xs = x_ref[kh % 2, (kh // 2) * Np:(kh // 2 + 32) * Np, :]   # (32Np,192)
        part = jnp.dot(xs, b1_ref[kh], preferred_element_type=f32)
        acc1 = part if acc1 is None else acc1 + part
    y1 = _lrelu(acc1)                                                # (32Np, 64)
    scatter_h_im2col(y1, buf2, 16)

    # ---- layer 2: Conv(2->4) + BN + LeakyReLU (single merged matmul) --------
    acc2 = jnp.dot(buf2[...], b2_ref[...], preferred_element_type=f32)  # (16Np,64)
    y2 = bmask(_lrelu(_batchnorm(acc2, gb2_ref, ndf * 2, float(N * 16 * 16))))
    scatter_h_im2col(y2, buf3, 8)

    # ---- layer 3: Conv(4->8) + BN + LeakyReLU --------------------------------
    acc3 = jnp.dot(buf3[...], b3_ref[...], preferred_element_type=f32)  # (8Np,64)
    y3 = bmask(_lrelu(_batchnorm(acc3, gb3_ref, ndf * 4, float(N * 8 * 8))))
    scatter_h_im2col(y3, buf4, 4)

    # ---- layer 4: Conv(8->16) + BN + LeakyReLU (kept in registers) ----------
    acc4 = jnp.dot(buf4[...], b4_ref[...], preferred_element_type=f32)  # (4Np,64)
    y4 = _lrelu(_batchnorm(acc4, gb4_ref, ndf * 8, float(N * 4 * 4)))

    # ---- layer 5: Conv(16->1, 4x4 valid) + Sigmoid ---------------------------
    y4r = y4.reshape(4, Np, 64)                     # [kh, n, kw*16+oc]
    prod = y4r * w5_ref[...]                        # w5: (4, 1, 64) f32
    s = jnp.sum(prod, axis=0)                       # (Np, 64)  leading-dim adds
    logit = jnp.sum(s, axis=1, keepdims=True)       # (Np, 1)   lane reduce
    o_ref[...] = (1.0 / (1.0 + jnp.exp(-logit))).astype(o_ref.dtype)


# ------------------------- pallas_call construction ------------------------ #
def _zero_map(rank):
    return lambda i, _r=rank: (0,) * _r


def make_pallas_forward(N):
    Np = max(8, _round_up(N, 8))
    in_shapes = [
        (2, 33 * Np, 192),     # x: H-padded, parity-split, (ic,w) lanes, bf16
        (4, 192, 64),          # layer-1 banded taps, bf16
        (256, 64),             # layer-2 merged band (kh stacked along K), bf16
        (256, 64),             # layer-3
        (256, 64),             # layer-4
        (2, ndf * 2),          # BN gamma/beta layer 2 (f32)
        (2, ndf * 4),
        (2, ndf * 8),
        (4, 1, 64),            # layer-5 weights (kh, 1, kw*16+oc), f32
    ]
    in_specs = [pl.BlockSpec(s, _zero_map(len(s))) for s in in_shapes]
    scratch = [
        pltpu.VMEM((16 * Np, 256), jnp.bfloat16),   # layer-2 input (H-im2col)
        pltpu.VMEM((8 * Np, 256), jnp.bfloat16),    # layer-3 input
        pltpu.VMEM((4 * Np, 256), jnp.bfloat16),    # layer-4 input
    ]
    flops = int(4 * 2 * (32 * Np) * 192 * 64      # layer-1 tap matmuls
                + 2 * (16 * Np) * 256 * 64        # layer 2
                + 2 * (8 * Np) * 256 * 64         # layer 3
                + 2 * (4 * Np) * 256 * 64         # layer 4
                + 2 * (4 * Np) * 64)              # layer 5
    bytes_accessed = int(2 * 33 * Np * 192 * 2    # x
                         + 4 * 192 * 64 * 2       # b1
                         + 3 * 256 * 64 * 2       # b2-b4
                         + (2 * (ndf * 2 + ndf * 4 + ndf * 8) + 4 * 64) * 4
                         + Np * 4)                # output
    transcendentals = int(Np + (ndf * 2 + ndf * 4 + ndf * 8))
    grid_spec = pltpu.PrefetchScalarGridSpec(
        num_scalar_prefetch=0,
        grid=(1,),
        in_specs=in_specs,
        out_specs=pl.BlockSpec((Np, 1), lambda i: (0, 0)),
        scratch_shapes=scratch,
    )
    call = pl.pallas_call(
        functools.partial(_disc_kernel, N, Np),
        out_shape=jax.ShapeDtypeStruct((Np, 1), jnp.float32),
        grid_spec=grid_spec,
        compiler_params=pltpu.CompilerParams(dimension_semantics=("arbitrary",)),
        cost_estimate=pl.CostEstimate(flops=flops,
                                      transcendentals=transcendentals,
                                      bytes_accessed=bytes_accessed),
    )
    return call, Np


# ------------------------- parameter / input prep -------------------------- #
def _band_layer1(w):
    """(OC=2, IC=3, 4, 4) conv weights -> (4, 192, 64) tap matrices.
    Row index (within tap kh) = ic*64 + w ; column = ow*2 + oc ; entry exists
    iff kw = w + 1 - 2*ow is in [0, 4)."""
    w = np.asarray(w, np.float32)
    OC, IC, W_in, OW = 2, 3, 64, 32
    B = np.zeros((4, IC * W_in, OW * OC), np.float32)
    for kh in range(4):
        for kw in range(4):
            for ow in range(OW):
                wcol = 2 * ow + kw - 1
                if 0 <= wcol < W_in:
                    for ic in range(IC):
                        for oc in range(OC):
                            B[kh, ic * W_in + wcol, ow * OC + oc] = w[oc, ic, kh, kw]
    return jnp.asarray(B, jnp.bfloat16)


def _band_merged(w, w_in):
    """(OC, IC, 4, 4) conv weights -> (4*w_in*IC, (w_in//2)*OC) merged band.
    Row index = kh*(w_in*IC) + w*IC + ic (matches previous layer's (ow,oc)
    output lanes); column = ow*OC + oc."""
    w = np.asarray(w, np.float32)
    OC, IC = int(w.shape[0]), int(w.shape[1])
    OW = w_in // 2
    B = np.zeros((4, w_in * IC, OW * OC), np.float32)
    for kh in range(4):
        for kw in range(4):
            for ow in range(OW):
                wcol = 2 * ow + kw - 1
                if 0 <= wcol < w_in:
                    for ic in range(IC):
                        for oc in range(OC):
                            B[kh, wcol * IC + ic, ow * OC + oc] = w[oc, ic, kh, kw]
    return jnp.asarray(B.reshape(4 * w_in * IC, OW * OC), jnp.bfloat16)


def init_params(key):
    def cw(k, oc_, ic_):
        return 0.02 * jax.random.normal(k, (oc_, ic_, 4, 4), jnp.float32)
    ks = jax.random.split(key, 5)
    return {
        "w1": cw(ks[0], ndf, nc),
        "w2": cw(ks[1], ndf * 2, ndf),
        "w3": cw(ks[2], ndf * 4, ndf * 2),
        "w4": cw(ks[3], ndf * 8, ndf * 4),
        "w5": cw(ks[4], 1, ndf * 8),
        "gamma2": jnp.ones((ndf * 2,), jnp.float32),
        "beta2": jnp.zeros((ndf * 2,), jnp.float32),
        "gamma3": jnp.ones((ndf * 4,), jnp.float32),
        "beta3": jnp.zeros((ndf * 4,), jnp.float32),
        "gamma4": jnp.ones((ndf * 8,), jnp.float32),
        "beta4": jnp.zeros((ndf * 8,), jnp.float32),
    }


def prepare_params(p):
    """One-time re-layout of the PyTorch-style parameters for the fused kernel."""
    prep = {
        "b1": _band_layer1(p["w1"]),
        "b2": _band_merged(p["w2"], 32),
        "b3": _band_merged(p["w3"], 16),
        "b4": _band_merged(p["w4"], 8),
    }
    for i in (2, 3, 4):
        prep[f"gb{i}"] = jnp.stack([p[f"gamma{i}"], p[f"beta{i}"]], axis=0)
    # layer-5 weights (1, 16, 4, 4) -> (kh, 1, kw*16+oc), f32, built once
    prep["w5r"] = (jnp.transpose(p["w5"][0], (1, 2, 0))
                   .reshape(4, 1, 64).astype(jnp.float32))
    return prep


def _prep_input(x, Np):
    """NCHW -> (2, 33*Np, 192) bf16: [parity, j*Np+n, ic*64+w] = x_pad[n,ic,2j+p,w].
    Single cast + pad + transpose (reshapes are free), so XLA emits one fused copy."""
    n = x.shape[0]
    xb = x.astype(jnp.bfloat16)
    xp = jnp.pad(xb, ((0, Np - n), (0, 0), (1, 1), (0, 0)))       # (Np,3,66,64)
    xr = xp.reshape(Np, nc, 33, 2, 64)
    xt = jnp.transpose(xr, (3, 2, 0, 1, 4))                       # (2,33,Np,3,64)
    return xt.reshape(2, 33 * Np, nc * 64)


def discriminator_forward(x, prep, fwd_call, Np):
    n = x.shape[0]
    x_r = _prep_input(x, Np)
    out = fwd_call(x_r, prep["b1"], prep["b2"], prep["b3"], prep["b4"],
                   prep["gb2"], prep["gb3"], prep["gb4"], prep["w5r"])
    return out[:n, 0]     # matches output.view(-1, 1).squeeze(1)


if __name__ == "__main__":
    key = jax.random.PRNGKey(0)
    k_param, k_input = jax.random.split(key)
    params = init_params(k_param)
    prep = prepare_params(params)

    N = 2
    # DCGAN discriminator topology requires 64x64 spatial input (final 4x4 valid conv)
    x = jax.random.normal(k_input, (N, nc, 64, 64), jnp.float32)

    fwd_call, Np = make_pallas_forward(N)
    fwd = jax.jit(lambda xx: discriminator_forward(xx, prep, fwd_call, Np))

    out = jax.block_until_ready(fwd(x))
    assert out.shape == (N,)
    assert bool(jnp.all(jnp.isfinite(out)))
    assert bool(jnp.all((out >= 0.0) & (out <= 1.0)))
    print("KERNEL_OK")
</pallas_src>

<mosaic_0001>
module attributes {stable_mosaic.version = 11 : i64} {
  func.func @_disc_kernel(%arg0: i32, %arg1: memref<2x264x192xbf16, #tpu.memory_space<vmem>>, %arg2: memref<4x192x64xbf16, #tpu.memory_space<vmem>>, %arg3: memref<256x64xbf16, #tpu.memory_space<vmem>>, %arg4: memref<256x64xbf16, #tpu.memory_space<vmem>>, %arg5: memref<256x64xbf16, #tpu.memory_space<vmem>>, %arg6: memref<2x4xf32, #tpu.memory_space<vmem>>, %arg7: memref<2x8xf32, #tpu.memory_space<vmem>>, %arg8: memref<2x16xf32, #tpu.memory_space<vmem>>, %arg9: memref<4x1x64xf32, #tpu.memory_space<vmem>>, %arg10: memref<8x1xf32, #tpu.memory_space<vmem>>, %arg11: memref<128x256xbf16, #tpu.memory_space<vmem>>, %arg12: memref<64x256xbf16, #tpu.memory_space<vmem>>, %arg13: memref<32x256xbf16, #tpu.memory_space<vmem>>) attributes {dimension_semantics = [#tpu.dimension_semantics<arbitrary>], iteration_bounds = array<i64: 1>, scalar_prefetch = 0 : i64, scratch_operands = 3 : i64, tpu.core_type = #tpu.core_type<tc>, window_params = [{pipeline_mode = #tpu.pipeline_mode<synchronous>, transform_indices = @transform_0, window_bounds = array<i64: 2, 264, 192>}, {pipeline_mode = #tpu.pipeline_mode<synchronous>, transform_indices = @transform_1, window_bounds = array<i64: 4, 192, 64>}, {pipeline_mode = #tpu.pipeline_mode<synchronous>, transform_indices = @transform_2, window_bounds = array<i64: 256, 64>}, {pipeline_mode = #tpu.pipeline_mode<synchronous>, transform_indices = @transform_3, window_bounds = array<i64: 256, 64>}, {pipeline_mode = #tpu.pipeline_mode<synchronous>, transform_indices = @transform_4, window_bounds = array<i64: 256, 64>}, {pipeline_mode = #tpu.pipeline_mode<synchronous>, transform_indices = @transform_5, window_bounds = array<i64: 2, 4>}, {pipeline_mode = #tpu.pipeline_mode<synchronous>, transform_indices = @transform_6, window_bounds = array<i64: 2, 8>}, {pipeline_mode = #tpu.pipeline_mode<synchronous>, transform_indices = @transform_7, window_bounds = array<i64: 2, 16>}, {pipeline_mode = #tpu.pipeline_mode<synchronous>, transform_indices = @transform_8, window_bounds = array<i64: 4, 1, 64>}, {pipeline_mode = #tpu.pipeline_mode<synchronous>, transform_indices = @transform_9, window_bounds = array<i64: 8, 1>}]} {
    %c0 = arith.constant 0 : index
    %c0_0 = arith.constant 0 : index
    %c0_1 = arith.constant 0 : index
    %0 = vector.load %arg1[%c0, %c0_0, %c0_1] : memref<2x264x192xbf16, #tpu.memory_space<vmem>>, vector<1x256x192xbf16>
    %1 = vector.shape_cast %0 : vector<1x256x192xbf16> to vector<256x192xbf16>
    %c0_2 = arith.constant 0 : index
    %c0_3 = arith.constant 0 : index
    %c0_4 = arith.constant 0 : index
    %2 = vector.load %arg2[%c0_2, %c0_3, %c0_4] : memref<4x192x64xbf16, #tpu.memory_space<vmem>>, vector<1x192x64xbf16>
    %3 = vector.shape_cast %2 : vector<1x192x64xbf16> to vector<192x64xbf16>
    %cst = arith.constant dense<0.000000e+00> : vector<256x64xf32>
    %4 = tpu.matmul %1, %3, %cst {dimension_numbers = #tpu.dot_dimension_numbers<[1], [0], [0], [1], [0, 0, 1, 1], [], []>} : vector<256x192xbf16>, vector<192x64xbf16>, vector<256x64xf32> -> vector<256x64xf32>
    %c1 = arith.constant 1 : index
    %c0_5 = arith.constant 0 : index
    %c0_6 = arith.constant 0 : index
    %5 = vector.load %arg1[%c1, %c0_5, %c0_6] : memref<2x264x192xbf16, #tpu.memory_space<vmem>>, vector<1x256x192xbf16>
    %6 = vector.shape_cast %5 : vector<1x256x192xbf16> to vector<256x192xbf16>
    %c1_7 = arith.constant 1 : index
    %c0_8 = arith.constant 0 : index
    %c0_9 = arith.constant 0 : index
    %7 = vector.load %arg2[%c1_7, %c0_8, %c0_9] : memref<4x192x64xbf16, #tpu.memory_space<vmem>>, vector<1x192x64xbf16>
    %8 = vector.shape_cast %7 : vector<1x192x64xbf16> to vector<192x64xbf16>
    %cst_10 = arith.constant dense<0.000000e+00> : vector<256x64xf32>
    %9 = tpu.matmul %6, %8, %cst_10 {dimension_numbers = #tpu.dot_dimension_numbers<[1], [0], [0], [1], [0, 0, 1, 1], [], []>} : vector<256x192xbf16>, vector<192x64xbf16>, vector<256x64xf32> -> vector<256x64xf32>
    %10 = arith.addf %4, %9 : vector<256x64xf32>
    %c0_11 = arith.constant 0 : index
    %c8 = arith.constant 8 : index
    %c0_12 = arith.constant 0 : index
    %11 = vector.load %arg1[%c0_11, %c8, %c0_12] : memref<2x264x192xbf16, #tpu.memory_space<vmem>>, vector<1x256x192xbf16>
    %12 = vector.shape_cast %11 : vector<1x256x192xbf16> to vector<256x192xbf16>
    %c2 = arith.constant 2 : index
    %c0_13 = arith.constant 0 : index
    %c0_14 = arith.constant 0 : index
    %13 = vector.load %arg2[%c2, %c0_13, %c0_14] : memref<4x192x64xbf16, #tpu.memory_space<vmem>>, vector<1x192x64xbf16>
    %14 = vector.shape_cast %13 : vector<1x192x64xbf16> to vector<192x64xbf16>
    %cst_15 = arith.constant dense<0.000000e+00> : vector<256x64xf32>
    %15 = tpu.matmul %12, %14, %cst_15 {dimension_numbers = #tpu.dot_dimension_numbers<[1], [0], [0], [1], [0, 0, 1, 1], [], []>} : vector<256x192xbf16>, vector<192x64xbf16>, vector<256x64xf32> -> vector<256x64xf32>
    %16 = arith.addf %10, %15 : vector<256x64xf32>
    %c1_16 = arith.constant 1 : index
    %c8_17 = arith.constant 8 : index
    %c0_18 = arith.constant 0 : index
    %17 = vector.load %arg1[%c1_16, %c8_17, %c0_18] : memref<2x264x192xbf16, #tpu.memory_space<vmem>>, vector<1x256x192xbf16>
    %18 = vector.shape_cast %17 : vector<1x256x192xbf16> to vector<256x192xbf16>
    %c3 = arith.constant 3 : index
    %c0_19 = arith.constant 0 : index
    %c0_20 = arith.constant 0 : index
    %19 = vector.load %arg2[%c3, %c0_19, %c0_20] : memref<4x192x64xbf16, #tpu.memory_space<vmem>>, vector<1x192x64xbf16>
    %20 = vector.shape_cast %19 : vector<1x192x64xbf16> to vector<192x64xbf16>
    %cst_21 = arith.constant dense<0.000000e+00> : vector<256x64xf32>
    %21 = tpu.matmul %18, %20, %cst_21 {dimension_numbers = #tpu.dot_dimension_numbers<[1], [0], [0], [1], [0, 0, 1, 1], [], []>} : vector<256x192xbf16>, vector<192x64xbf16>, vector<256x64xf32> -> vector<256x64xf32>
    %22 = arith.addf %16, %21 : vector<256x64xf32>
    %cst_22 = arith.constant 2.000000e-01 : f32
    %23 = vector.broadcast %cst_22 : f32 to vector<256x64xf32>
    %24 = arith.mulf %23, %22 : vector<256x64xf32>
    %25 = arith.maximumf %22, %24 : vector<256x64xf32>
    %26 = vector.shape_cast %25 : vector<256x64xf32> to vector<16x2x8x64xf32>
    %cst_23 = arith.constant 0.000000e+00 : bf16
    %27 = vector.broadcast %cst_23 : bf16 to vector<8x64xbf16>
    %c0_24 = arith.constant 0 : index
    %c0_25 = arith.constant 0 : index
    %28 = vector.load %arg11[%c0_24, %c0_25] : memref<128x256xbf16, #tpu.memory_space<vmem>>, vector<8x64xbf16>
    tpu.vector_store %arg11[%c0_24, %c0_25], %27 {strides = array<i32>} : memref<128x256xbf16, #tpu.memory_space<vmem>>, vector<8x64xbf16>,
    %cst_26 = arith.constant 0.000000e+00 : bf16
    %29 = vector.broadcast %cst_26 : bf16 to vector<8x64xbf16>
    %c120 = arith.constant 120 : index
    %c192 = arith.constant 192 : index
    %30 = vector.load %arg11[%c120, %c192] : memref<128x256xbf16, #tpu.memory_space<vmem>>, vector<8x64xbf16>
    tpu.vector_store %arg11[%c120, %c192], %29 {strides = array<i32>} : memref<128x256xbf16, #tpu.memory_space<vmem>>, vector<8x64xbf16>,
    %31 = vector.extract_strided_slice %26 {offsets = [0, 1, 0, 0], sizes = [15, 1, 8, 64], strides = [1, 1, 1, 1]} : vector<16x2x8x64xf32> to vector<15x1x8x64xf32>
    %32 = vector.shape_cast %31 : vector<15x1x8x64xf32> to vector<15x8x64xf32>
    %33 = vector.shape_cast %32 : vector<15x8x64xf32> to vector<120x64xf32>
    %34 = arith.truncf %33 : vector<120x64xf32> to vector<120x64xbf16>
    %c8_27 = arith.constant 8 : index
    %c0_28 = arith.constant 0 : index
    %35 = vector.load %arg11[%c8_27, %c0_28] : memref<128x256xbf16, #tpu.memory_space<vmem>>, vector<120x64xbf16>
    tpu.vector_store %arg11[%c8_27, %c0_28], %34 {strides = array<i32>} : memref<128x256xbf16, #tpu.memory_space<vmem>>, vector<120x64xbf16>,
    %36 = vector.extract_strided_slice %26 {offsets = [0, 0, 0, 0], sizes = [16, 1, 8, 64], strides = [1, 1, 1, 1]} : vector<16x2x8x64xf32> to vector<16x1x8x64xf32>
    %37 = vector.shape_cast %36 : vector<16x1x8x64xf32> to vector<16x8x64xf32>
    %38 = vector.shape_cast %37 : vector<16x8x64xf32> to vector<128x64xf32>
    %39 = arith.truncf %38 : vector<128x64xf32> to vector<128x64xbf16>
    %c0_29 = arith.constant 0 : index
    %c64 = arith.constant 64 : index
    %40 = vector.load %arg11[%c0_29, %c64] : memref<128x256xbf16, #tpu.memory_space<vmem>>, vector<128x64xbf16>
    tpu.vector_store %arg11[%c0_29, %c64], %39 {strides = array<i32>} : memref<128x256xbf16, #tpu.memory_space<vmem>>, vector<128x64xbf16>,
    %41 = vector.extract_strided_slice %26 {offsets = [0, 1, 0, 0], sizes = [16, 1, 8, 64], strides = [1, 1, 1, 1]} : vector<16x2x8x64xf32> to vector<16x1x8x64xf32>
    %42 = vector.shape_cast %41 : vector<16x1x8x64xf32> to vector<16x8x64xf32>
    %43 = vector.shape_cast %42 : vector<16x8x64xf32> to vector<128x64xf32>
    %44 = arith.truncf %43 : vector<128x64xf32> to vector<128x64xbf16>
    %c0_30 = arith.constant 0 : index
    %c128 = arith.constant 128 : index
    %45 = vector.load %arg11[%c0_30, %c128] : memref<128x256xbf16, #tpu.memory_space<vmem>>, vector<128x64xbf16>
    tpu.vector_store %arg11[%c0_30, %c128], %44 {strides = array<i32>} : memref<128x256xbf16, #tpu.memory_space<vmem>>, vector<128x64xbf16>,
    %46 = vector.extract_strided_slice %26 {offsets = [1, 0, 0, 0], sizes = [15, 1, 8, 64], strides = [1, 1, 1, 1]} : vector<16x2x8x64xf32> to vector<15x1x8x64xf32>
    %47 = vector.shape_cast %46 : vector<15x1x8x64xf32> to vector<15x8x64xf32>
    %48 = vector.shape_cast %47 : vector<15x8x64xf32> to vector<120x64xf32>
    %49 = arith.truncf %48 : vector<120x64xf32> to vector<120x64xbf16>
    %c0_31 = arith.constant 0 : index
    %c192_32 = arith.constant 192 : index
    %50 = vector.load %arg11[%c0_31, %c192_32] : memref<128x256xbf16, #tpu.memory_space<vmem>>, vector<120x64xbf16>
    tpu.vector_store %arg11[%c0_31, %c192_32], %49 {strides = array<i32>} : memref<128x256xbf16, #tpu.memory_space<vmem>>, vector<120x64xbf16>,
    %c0_33 = arith.constant 0 : index
    %c0_34 = arith.constant 0 : index
    %51 = vector.load %arg11[%c0_33, %c0_34] : memref<128x256xbf16, #tpu.memory_space<vmem>>, vector<128x256xbf16>
    %c0_35 = arith.constant 0 : index
    %c0_36 = arith.constant 0 : index
    %52 = vector.load %arg3[%c0_35, %c0_36] : memref<256x64xbf16, #tpu.memory_space<vmem>>, vector<256x64xbf16>
    %cst_37 = arith.constant dense<0.000000e+00> : vector<128x64xf32>
    %53 = tpu.matmul %51, %52, %cst_37 {dimension_numbers = #tpu.dot_dimension_numbers<[1], [0], [0], [1], [0, 0, 1, 1], [], []>} : vector<128x256xbf16>, vector<256x64xbf16>, vector<128x64xf32> -> vector<128x64xf32>
    %cst_38 = arith.constant dense<0.000000e+00> : vector<64xf32>
    %54 = vector.multi_reduction <add>, %53, %cst_38 [0] : vector<128x64xf32> to vector<64xf32>
    %55 = vector.shape_cast %54 : vector<64xf32> to vector<1x64xf32>
    %56 = arith.mulf %53, %53 : vector<128x64xf32>
    %cst_39 = arith.constant dense<0.000000e+00> : vector<64xf32>
    %57 = vector.multi_reduction <add>, %56, %cst_39 [0] : vector<128x64xf32> to vector<64xf32>
    %58 = vector.shape_cast %57 : vector<64xf32> to vector<1x64xf32>
    %59 = tpu.iota {dimensions = array<i32: 0>} : vector<64x4xi32>
    %60 = tpu.iota {dimensions = array<i32: 1>} : vector<64x4xi32>
    %c4_i32 = arith.constant 4 : i32
    %c0_i32 = arith.constant 0 : i32
    %61 = arith.cmpi eq, %c4_i32, %c0_i32 : i32
    %c1_i32 = arith.constant 1 : i32
    %62 = arith.select %61, %c1_i32, %c4_i32 : i32
    %63 = vector.broadcast %62 : i32 to vector<64x4xi32>
    %64 = arith.remsi %59, %63 : vector<64x4xi32>
    %c0_i32_40 = arith.constant 0 : i32
    %65 = vector.broadcast %c0_i32_40 : i32 to vector<64x4xi32>
    %66 = arith.cmpi ne, %64, %65 : vector<64x4xi32>
    %c0_i32_41 = arith.constant 0 : i32
    %67 = vector.broadcast %c0_i32_41 : i32 to vector<64x4xi32>
    %68 = arith.cmpi slt, %64, %67 : vector<64x4xi32>
    %c0_i32_42 = arith.constant 0 : i32
    %69 = arith.cmpi slt, %62, %c0_i32_42 : i32
    %70 = vector.broadcast %69 : i1 to vector<64x4xi1>
    %71 = vector.broadcast %70 : vector<64x4xi1> to vector<64x4xi1>
    %72 = arith.xori %68, %71 : vector<64x4xi1>
    %73 = arith.andi %72, %66 : vector<64x4xi1>
    %74 = vector.broadcast %62 : i32 to vector<64x4xi32>
    %75 = arith.addi %64, %74 : vector<64x4xi32>
    %76 = arith.select %73, %75, %64 : vector<64x4xi1>, vector<64x4xi32>
    %77 = arith.cmpi eq, %76, %60 : vector<64x4xi32>
    %cst_43 = arith.constant 1.000000e+00 : f32
    %cst_44 = arith.constant 0.000000e+00 : f32
    %78 = vector.broadcast %cst_43 : f32 to vector<64x4xf32>
    %79 = vector.broadcast %cst_44 : f32 to vector<64x4xf32>
    %80 = arith.select %77, %78, %79 : vector<64x4xi1>, vector<64x4xf32>
    %cst_45 = arith.constant dense<0.000000e+00> : vector<1x4xf32>
    %81 = tpu.matmul %55, %80, %cst_45 {dimension_numbers = #tpu.dot_dimension_numbers<[1], [0], [0], [1], [0, 0, 1, 1], [], []>} : vector<1x64xf32>, vector<64x4xf32>, vector<1x4xf32> -> vector<1x4xf32>
    %cst_46 = arith.constant dense<0.000000e+00> : vector<1x4xf32>
    %82 = tpu.matmul %58, %80, %cst_46 {dimension_numbers = #tpu.dot_dimension_numbers<[1], [0], [0], [1], [0, 0, 1, 1], [], []>} : vector<1x64xf32>, vector<64x4xf32>, vector<1x4xf32> -> vector<1x4xf32>
    %cst_47 = arith.constant 5.120000e+02 : f32
    %83 = vector.broadcast %cst_47 : f32 to vector<1x4xf32>
    %84 = arith.divf %81, %83 : vector<1x4xf32>
    %cst_48 = arith.constant 5.120000e+02 : f32
    %85 = vector.broadcast %cst_48 : f32 to vector<1x4xf32>
    %86 = arith.divf %82, %85 : vector<1x4xf32>
    %87 = arith.mulf %84, %84 : vector<1x4xf32>
    %88 = arith.subf %86, %87 : vector<1x4xf32>
    %c0_49 = arith.constant 0 : index
    %c0_50 = arith.constant 0 : index
    %89 = vector.load %arg6[%c0_49, %c0_50] : memref<2x4xf32, #tpu.memory_space<vmem>>, vector<1x4xf32>
    %c1_51 = arith.constant 1 : index
    %c0_52 = arith.constant 0 : index
    %90 = vector.load %arg6[%c1_51, %c0_52] : memref<2x4xf32, #tpu.memory_space<vmem>>, vector<1x4xf32>
    %cst_53 = arith.constant 9.99999974E-6 : f32
    %91 = vector.broadcast %cst_53 : f32 to vector<1x4xf32>
    %92 = arith.addf %88, %91 : vector<1x4xf32>
    %93 = math.rsqrt %92 : vector<1x4xf32>
    %94 = arith.mulf %89, %93 : vector<1x4xf32>
    %95 = arith.mulf %84, %94 : vector<1x4xf32>
    %96 = arith.subf %90, %95 : vector<1x4xf32>
    %97 = tpu.iota {dimensions = array<i32: 0>} : vector<4x64xi32>
    %98 = tpu.iota {dimensions = array<i32: 1>} : vector<4x64xi32>
    %c4_i32_54 = arith.constant 4 : i32
    %c0_i32_55 = arith.constant 0 : i32
    %99 = arith.cmpi eq, %c4_i32_54, %c0_i32_55 : i32
    %c1_i32_56 = arith.constant 1 : i32
    %100 = arith.select %99, %c1_i32_56, %c4_i32_54 : i32
    %101 = vector.broadcast %100 : i32 to vector<4x64xi32>
    %102 = arith.remsi %98, %101 : vector<4x64xi32>
    %c0_i32_57 = arith.constant 0 : i32
    %103 = vector.broadcast %c0_i32_57 : i32 to vector<4x64xi32>
    %104 = arith.cmpi ne, %102, %103 : vector<4x64xi32>
    %c0_i32_58 = arith.constant 0 : i32
    %105 = vector.broadcast %c0_i32_58 : i32 to vector<4x64xi32>
    %106 = arith.cmpi slt, %102, %105 : vector<4x64xi32>
    %c0_i32_59 = arith.constant 0 : i32
    %107 = arith.cmpi slt, %100, %c0_i32_59 : i32
    %108 = vector.broadcast %107 : i1 to vector<4x64xi1>
    %109 = vector.broadcast %108 : vector<4x64xi1> to vector<4x64xi1>
    %110 = arith.xori %106, %109 : vector<4x64xi1>
    %111 = arith.andi %110, %104 : vector<4x64xi1>
    %112 = vector.broadcast %100 : i32 to vector<4x64xi32>
    %113 = arith.addi %102, %112 : vector<4x64xi32>
    %114 = arith.select %111, %113, %102 : vector<4x64xi1>, vector<4x64xi32>
    %115 = arith.cmpi eq, %97, %114 : vector<4x64xi32>
    %cst_60 = arith.constant 1.000000e+00 : f32
    %cst_61 = arith.constant 0.000000e+00 : f32
    %116 = vector.broadcast %cst_60 : f32 to vector<4x64xf32>
    %117 = vector.broadcast %cst_61 : f32 to vector<4x64xf32>
    %118 = arith.select %115, %116, %117 : vector<4x64xi1>, vector<4x64xf32>
    %cst_62 = arith.constant dense<0.000000e+00> : vector<1x64xf32>
    %119 = tpu.matmul %94, %118, %cst_62 {dimension_numbers = #tpu.dot_dimension_numbers<[1], [0], [0], [1], [0, 0, 1, 1], [], []>} : vector<1x4xf32>, vector<4x64xf32>, vector<1x64xf32> -> vector<1x64xf32>
    %cst_63 = arith.constant dense<0.000000e+00> : vector<1x64xf32>
    %120 = tpu.matmul %96, %118, %cst_63 {dimension_numbers = #tpu.dot_dimension_numbers<[1], [0], [0], [1], [0, 0, 1, 1], [], []>} : vector<1x4xf32>, vector<4x64xf32>, vector<1x64xf32> -> vector<1x64xf32>
    %121 = vector.broadcast %119 : vector<1x64xf32> to vector<128x64xf32>
    %122 = arith.mulf %53, %121 : vector<128x64xf32>
    %123 = vector.broadcast %120 : vector<1x64xf32> to vector<128x64xf32>
    %124 = arith.addf %122, %123 : vector<128x64xf32>
    %cst_64 = arith.constant 2.000000e-01 : f32
    %125 = vector.broadcast %cst_64 : f32 to vector<128x64xf32>
    %126 = arith.mulf %125, %124 : vector<128x64xf32>
    %127 = arith.maximumf %124, %126 : vector<128x64xf32>
    %128 = tpu.iota {dimensions = array<i32: 0>} : vector<128x64xi32>
    %c8_i32 = arith.constant 8 : i32
    %c0_i32_65 = arith.constant 0 : i32
    %129 = arith.cmpi eq, %c8_i32, %c0_i32_65 : i32
    %c1_i32_66 = arith.constant 1 : i32
    %130 = arith.select %129, %c1_i32_66, %c8_i32 : i32
    %131 = vector.broadcast %130 : i32 to vector<128x64xi32>
    %132 = arith.remsi %128, %131 : vector<128x64xi32>
    %c0_i32_67 = arith.constant 0 : i32
    %133 = vector.broadcast %c0_i32_67 : i32 to vector<128x64xi32>
    %134 = arith.cmpi ne, %132, %133 : vector<128x64xi32>
    %c0_i32_68 = arith.constant 0 : i32
    %135 = vector.broadcast %c0_i32_68 : i32 to vector<128x64xi32>
    %136 = arith.cmpi slt, %132, %135 : vector<128x64xi32>
    %c0_i32_69 = arith.constant 0 : i32
    %137 = arith.cmpi slt, %130, %c0_i32_69 : i32
    %138 = vector.broadcast %137 : i1 to vector<128x64xi1>
    %139 = vector.broadcast %138 : vector<128x64xi1> to vector<128x64xi1>
    %140 = arith.xori %136, %139 : vector<128x64xi1>
    %141 = arith.andi %140, %134 : vector<128x64xi1>
    %142 = vector.broadcast %130 : i32 to vector<128x64xi32>
    %143 = arith.addi %132, %142 : vector<128x64xi32>
    %144 = arith.select %141, %143, %132 : vector<128x64xi1>, vector<128x64xi32>
    %c2_i32 = arith.constant 2 : i32
    %145 = vector.broadcast %c2_i32 : i32 to vector<128x64xi32>
    %146 = arith.cmpi slt, %144, %145 : vector<128x64xi32>
    %cst_70 = arith.constant 0.000000e+00 : f32
    %147 = vector.broadcast %cst_70 : f32 to vector<128x64xf32>
    %148 = arith.select %146, %127, %147 : vector<128x64xi1>, vector<128x64xf32>
    %149 = vector.shape_cast %148 : vector<128x64xf32> to vector<8x2x8x64xf32>
    %cst_71 = arith.constant 0.000000e+00 : bf16
    %150 = vector.broadcast %cst_71 : bf16 to vector<8x64xbf16>
    %c0_72 = arith.constant 0 : index
    %c0_73 = arith.constant 0 : index
    %151 = vector.load %arg12[%c0_72, %c0_73] : memref<64x256xbf16, #tpu.memory_space<vmem>>, vector<8x64xbf16>
    tpu.vector_store %arg12[%c0_72, %c0_73], %150 {strides = array<i32>} : memref<64x256xbf16, #tpu.memory_space<vmem>>, vector<8x64xbf16>,
    %cst_74 = arith.constant 0.000000e+00 : bf16
    %152 = vector.broadcast %cst_74 : bf16 to vector<8x64xbf16>
    %c56 = arith.constant 56 : index
    %c192_75 = arith.constant 192 : index
    %153 = vector.load %arg12[%c56, %c192_75] : memref<64x256xbf16, #tpu.memory_space<vmem>>, vector<8x64xbf16>
    tpu.vector_store %arg12[%c56, %c192_75], %152 {strides = array<i32>} : memref<64x256xbf16, #tpu.memory_space<vmem>>, vector<8x64xbf16>,
    %154 = vector.extract_strided_slice %149 {offsets = [0, 1, 0, 0], sizes = [7, 1, 8, 64], strides = [1, 1, 1, 1]} : vector<8x2x8x64xf32> to vector<7x1x8x64xf32>
    %155 = vector.shape_cast %154 : vector<7x1x8x64xf32> to vector<7x8x64xf32>
    %156 = vector.shape_cast %155 : vector<7x8x64xf32> to vector<56x64xf32>
    %157 = arith.truncf %156 : vector<56x64xf32> to vector<56x64xbf16>
    %c8_76 = arith.constant 8 : index
    %c0_77 = arith.constant 0 : index
    %158 = vector.load %arg12[%c8_76, %c0_77] : memref<64x256xbf16, #tpu.memory_space<vmem>>, vector<56x64xbf16>
    tpu.vector_store %arg12[%c8_76, %c0_77], %157 {strides = array<i32>} : memref<64x256xbf16, #tpu.memory_space<vmem>>, vector<56x64xbf16>,
    %159 = vector.extract_strided_slice %149 {offsets = [0, 0, 0, 0], sizes = [8, 1, 8, 64], strides = [1, 1, 1, 1]} : vector<8x2x8x64xf32> to vector<8x1x8x64xf32>
    %160 = vector.shape_cast %159 : vector<8x1x8x64xf32> to vector<8x8x64xf32>
    %161 = vector.shape_cast %160 : vector<8x8x64xf32> to vector<64x64xf32>
    %162 = arith.truncf %161 : vector<64x64xf32> to vector<64x64xbf16>
    %c0_78 = arith.constant 0 : index
    %c64_79 = arith.constant 64 : index
    %163 = vector.load %arg12[%c0_78, %c64_79] : memref<64x256xbf16, #tpu.memory_space<vmem>>, vector<64x64xbf16>
    tpu.vector_store %arg12[%c0_78, %c64_79], %162 {strides = array<i32>} : memref<64x256xbf16, #tpu.memory_space<vmem>>, vector<64x64xbf16>,
    %164 = vector.extract_strided_slice %149 {offsets = [0, 1, 0, 0], sizes = [8, 1, 8, 64], strides = [1, 1, 1, 1]} : vector<8x2x8x64xf32> to vector<8x1x8x64xf32>
    %165 = vector.shape_cast %164 : vector<8x1x8x64xf32> to vector<8x8x64xf32>
    %166 = vector.shape_cast %165 : vector<8x8x64xf32> to vector<64x64xf32>
    %167 = arith.truncf %166 : vector<64x64xf32> to vector<64x64xbf16>
    %c0_80 = arith.constant 0 : index
    %c128_81 = arith.constant 128 : index
    %168 = vector.load %arg12[%c0_80, %c128_81] : memref<64x256xbf16, #tpu.memory_space<vmem>>, vector<64x64xbf16>
    tpu.vector_store %arg12[%c0_80, %c128_81], %167 {strides = array<i32>} : memref<64x256xbf16, #tpu.memory_space<vmem>>, vector<64x64xbf16>,
    %169 = vector.extract_strided_slice %149 {offsets = [1, 0, 0, 0], sizes = [7, 1, 8, 64], strides = [1, 1, 1, 1]} : vector<8x2x8x64xf32> to vector<7x1x8x64xf32>
    %170 = vector.shape_cast %169 : vector<7x1x8x64xf32> to vector<7x8x64xf32>
    %171 = vector.shape_cast %170 : vector<7x8x64xf32> to vector<56x64xf32>
    %172 = arith.truncf %171 : vector<56x64xf32> to vector<56x64xbf16>
    %c0_82 = arith.constant 0 : index
    %c192_83 = arith.constant 192 : index
    %173 = vector.load %arg12[%c0_82, %c192_83] : memref<64x256xbf16, #tpu.memory_space<vmem>>, vector<56x64xbf16>
    tpu.vector_store %arg12[%c0_82, %c192_83], %172 {strides = array<i32>} : memref<64x256xbf16, #tpu.memory_space<vmem>>, vector<56x64xbf16>,
    %c0_84 = arith.constant 0 : index
    %c0_85 = arith.constant 0 : index
    %174 = vector.load %arg12[%c0_84, %c0_85] : memref<64x256xbf16, #tpu.memory_space<vmem>>, vector<64x256xbf16>
    %c0_86 = arith.constant 0 : index
    %c0_87 = arith.constant 0 : index
    %175 = vector.load %arg4[%c0_86, %c0_87] : memref<256x64xbf16, #tpu.memory_space<vmem>>, vector<256x64xbf16>
    %cst_88 = arith.constant dense<0.000000e+00> : vector<64x64xf32>
    %176 = tpu.matmul %174, %175, %cst_88 {dimension_numbers = #tpu.dot_dimension_numbers<[1], [0], [0], [1], [0, 0, 1, 1], [], []>} : vector<64x256xbf16>, vector<256x64xbf16>, vector<64x64xf32> -> vector<64x64xf32>
    %cst_89 = arith.constant dense<0.000000e+00> : vector<64xf32>
    %177 = vector.multi_reduction <add>, %176, %cst_89 [0] : vector<64x64xf32> to vector<64xf32>
    %178 = vector.shape_cast %177 : vector<64xf32> to vector<1x64xf32>
    %179 = arith.mulf %176, %176 : vector<64x64xf32>
    %cst_90 = arith.constant dense<0.000000e+00> : vector<64xf32>
    %180 = vector.multi_reduction <add>, %179, %cst_90 [0] : vector<64x64xf32> to vector<64xf32>
    %181 = vector.shape_cast %180 : vector<64xf32> to vector<1x64xf32>
    %182 = tpu.iota {dimensions = array<i32: 0>} : vector<64x8xi32>
    %183 = tpu.iota {dimensions = array<i32: 1>} : vector<64x8xi32>
    %c8_i32_91 = arith.constant 8 : i32
    %c0_i32_92 = arith.constant 0 : i32
    %184 = arith.cmpi eq, %c8_i32_91, %c0_i32_92 : i32
    %c1_i32_93 = arith.constant 1 : i32
    %185 = arith.select %184, %c1_i32_93, %c8_i32_91 : i32
    %186 = vector.broadcast %185 : i32 to vector<64x8xi32>
    %187 = arith.remsi %182, %186 : vector<64x8xi32>
    %c0_i32_94 = arith.constant 0 : i32
    %188 = vector.broadcast %c0_i32_94 : i32 to vector<64x8xi32>
    %189 = arith.cmpi ne, %187, %188 : vector<64x8xi32>
    %c0_i32_95 = arith.constant 0 : i32
    %190 = vector.broadcast %c0_i32_95 : i32 to vector<64x8xi32>
    %191 = arith.cmpi slt, %187, %190 : vector<64x8xi32>
    %c0_i32_96 = arith.constant 0 : i32
    %192 = arith.cmpi slt, %185, %c0_i32_96 : i32
    %193 = vector.broadcast %192 : i1 to vector<64x8xi1>
    %194 = vector.broadcast %193 : vector<64x8xi1> to vector<64x8xi1>
    %195 = arith.xori %191, %194 : vector<64x8xi1>
    %196 = arith.andi %195, %189 : vector<64x8xi1>
    %197 = vector.broadcast %185 : i32 to vector<64x8xi32>
    %198 = arith.addi %187, %197 : vector<64x8xi32>
    %199 = arith.select %196, %198, %187 : vector<64x8xi1>, vector<64x8xi32>
    %200 = arith.cmpi eq, %199, %183 : vector<64x8xi32>
    %cst_97 = arith.constant 1.000000e+00 : f32
    %cst_98 = arith.constant 0.000000e+00 : f32
    %201 = vector.broadcast %cst_97 : f32 to vector<64x8xf32>
    %202 = vector.broadcast %cst_98 : f32 to vector<64x8xf32>
    %203 = arith.select %200, %201, %202 : vector<64x8xi1>, vector<64x8xf32>
    %cst_99 = arith.constant dense<0.000000e+00> : vector<1x8xf32>
    %204 = tpu.matmul %178, %203, %cst_99 {dimension_numbers = #tpu.dot_dimension_numbers<[1], [0], [0], [1], [0, 0, 1, 1], [], []>} : vector<1x64xf32>, vector<64x8xf32>, vector<1x8xf32> -> vector<1x8xf32>
    %cst_100 = arith.constant dense<0.000000e+00> : vector<1x8xf32>
    %205 = tpu.matmul %181, %203, %cst_100 {dimension_numbers = #tpu.dot_dimension_numbers<[1], [0], [0], [1], [0, 0, 1, 1], [], []>} : vector<1x64xf32>, vector<64x8xf32>, vector<1x8xf32> -> vector<1x8xf32>
    %cst_101 = arith.constant 1.280000e+02 : f32
    %206 = vector.broadcast %cst_101 : f32 to vector<1x8xf32>
    %207 = arith.divf %204, %206 : vector<1x8xf32>
    %cst_102 = arith.constant 1.280000e+02 : f32
    %208 = vector.broadcast %cst_102 : f32 to vector<1x8xf32>
    %209 = arith.divf %205, %208 : vector<1x8xf32>
    %210 = arith.mulf %207, %207 : vector<1x8xf32>
    %211 = arith.subf %209, %210 : vector<1x8xf32>
    %c0_103 = arith.constant 0 : index
    %c0_104 = arith.constant 0 : index
    %212 = vector.load %arg7[%c0_103, %c0_104] : memref<2x8xf32, #tpu.memory_space<vmem>>, vector<1x8xf32>
    %c1_105 = arith.constant 1 : index
    %c0_106 = arith.constant 0 : index
    %213 = vector.load %arg7[%c1_105, %c0_106] : memref<2x8xf32, #tpu.memory_space<vmem>>, vector<1x8xf32>
    %cst_107 = arith.constant 9.99999974E-6 : f32
    %214 = vector.broadcast %cst_107 : f32 to vector<1x8xf32>
    %215 = arith.addf %211, %214 : vector<1x8xf32>
    %216 = math.rsqrt %215 : vector<1x8xf32>
    %217 = arith.mulf %212, %216 : vector<1x8xf32>
    %218 = arith.mulf %207, %217 : vector<1x8xf32>
    %219 = arith.subf %213, %218 : vector<1x8xf32>
    %220 = tpu.iota {dimensions = array<i32: 0>} : vector<8x64xi32>
    %221 = tpu.iota {dimensions = array<i32: 1>} : vector<8x64xi32>
    %c8_i32_108 = arith.constant 8 : i32
    %c0_i32_109 = arith.constant 0 : i32
    %222 = arith.cmpi eq, %c8_i32_108, %c0_i32_109 : i32
    %c1_i32_110 = arith.constant 1 : i32
    %223 = arith.select %222, %c1_i32_110, %c8_i32_108 : i32
    %224 = vector.broadcast %223 : i32 to vector<8x64xi32>
    %225 = arith.remsi %221, %224 : vector<8x64xi32>
    %c0_i32_111 = arith.constant 0 : i32
    %226 = vector.broadcast %c0_i32_111 : i32 to vector<8x64xi32>
    %227 = arith.cmpi ne, %225, %226 : vector<8x64xi32>
    %c0_i32_112 = arith.constant 0 : i32
    %228 = vector.broadcast %c0_i32_112 : i32 to vector<8x64xi32>
    %229 = arith.cmpi slt, %225, %228 : vector<8x64xi32>
    %c0_i32_113 = arith.constant 0 : i32
    %230 = arith.cmpi slt, %223, %c0_i32_113 : i32
    %231 = vector.broadcast %230 : i1 to vector<8x64xi1>
    %232 = vector.broadcast %231 : vector<8x64xi1> to vector<8x64xi1>
    %233 = arith.xori %229, %232 : vector<8x64xi1>
    %234 = arith.andi %233, %227 : vector<8x64xi1>
    %235 = vector.broadcast %223 : i32 to vector<8x64xi32>
    %236 = arith.addi %225, %235 : vector<8x64xi32>
    %237 = arith.select %234, %236, %225 : vector<8x64xi1>, vector<8x64xi32>
    %238 = arith.cmpi eq, %220, %237 : vector<8x64xi32>
    %cst_114 = arith.constant 1.000000e+00 : f32
    %cst_115 = arith.constant 0.000000e+00 : f32
    %239 = vector.broadcast %cst_114 : f32 to vector<8x64xf32>
    %240 = vector.broadcast %cst_115 : f32 to vector<8x64xf32>
    %241 = arith.select %238, %239, %240 : vector<8x64xi1>, vector<8x64xf32>
    %cst_116 = arith.constant dense<0.000000e+00> : vector<1x64xf32>
    %242 = tpu.matmul %217, %241, %cst_116 {dimension_numbers = #tpu.dot_dimension_numbers<[1], [0], [0], [1], [0, 0, 1, 1], [], []>} : vector<1x8xf32>, vector<8x64xf32>, vector<1x64xf32> -> vector<1x64xf32>
    %cst_117 = arith.constant dense<0.000000e+00> : vector<1x64xf32>
    %243 = tpu.matmul %219, %241, %cst_117 {dimension_numbers = #tpu.dot_dimension_numbers<[1], [0], [0], [1], [0, 0, 1, 1], [], []>} : vector<1x8xf32>, vector<8x64xf32>, vector<1x64xf32> -> vector<1x64xf32>
    %244 = vector.broadcast %242 : vector<1x64xf32> to vector<64x64xf32>
    %245 = arith.mulf %176, %244 : vector<64x64xf32>
    %246 = vector.broadcast %243 : vector<1x64xf32> to vector<64x64xf32>
    %247 = arith.addf %245, %246 : vector<64x64xf32>
    %cst_118 = arith.constant 2.000000e-01 : f32
    %248 = vector.broadcast %cst_118 : f32 to vector<64x64xf32>
    %249 = arith.mulf %248, %247 : vector<64x64xf32>
    %250 = arith.maximumf %247, %249 : vector<64x64xf32>
    %251 = tpu.iota {dimensions = array<i32: 0>} : vector<64x64xi32>
    %c8_i32_119 = arith.constant 8 : i32
    %c0_i32_120 = arith.constant 0 : i32
    %252 = arith.cmpi eq, %c8_i32_119, %c0_i32_120 : i32
    %c1_i32_121 = arith.constant 1 : i32
    %253 = arith.select %252, %c1_i32_121, %c8_i32_119 : i32
    %254 = vector.broadcast %253 : i32 to vector<64x64xi32>
    %255 = arith.remsi %251, %254 : vector<64x64xi32>
    %c0_i32_122 = arith.constant 0 : i32
    %256 = vector.broadcast %c0_i32_122 : i32 to vector<64x64xi32>
    %257 = arith.cmpi ne, %255, %256 : vector<64x64xi32>
    %c0_i32_123 = arith.constant 0 : i32
    %258 = vector.broadcast %c0_i32_123 : i32 to vector<64x64xi32>
    %259 = arith.cmpi slt, %255, %258 : vector<64x64xi32>
    %c0_i32_124 = arith.constant 0 : i32
    %260 = arith.cmpi slt, %253, %c0_i32_124 : i32
    %261 = vector.broadcast %260 : i1 to vector<64x64xi1>
    %262 = vector.broadcast %261 : vector<64x64xi1> to vector<64x64xi1>
    %263 = arith.xori %259, %262 : vector<64x64xi1>
    %264 = arith.andi %263, %257 : vector<64x64xi1>
    %265 = vector.broadcast %253 : i32 to vector<64x64xi32>
    %266 = arith.addi %255, %265 : vector<64x64xi32>
    %267 = arith.select %264, %266, %255 : vector<64x64xi1>, vector<64x64xi32>
    %c2_i32_125 = arith.constant 2 : i32
    %268 = vector.broadcast %c2_i32_125 : i32 to vector<64x64xi32>
    %269 = arith.cmpi slt, %267, %268 : vector<64x64xi32>
    %cst_126 = arith.constant 0.000000e+00 : f32
    %270 = vector.broadcast %cst_126 : f32 to vector<64x64xf32>
    %271 = arith.select %269, %250, %270 : vector<64x64xi1>, vector<64x64xf32>
    %272 = vector.shape_cast %271 : vector<64x64xf32> to vector<4x2x8x64xf32>
    %cst_127 = arith.constant 0.000000e+00 : bf16
    %273 = vector.broadcast %cst_127 : bf16 to vector<8x64xbf16>
    %c0_128 = arith.constant 0 : index
    %c0_129 = arith.constant 0 : index
    %274 = vector.load %arg13[%c0_128, %c0_129] : memref<32x256xbf16, #tpu.memory_space<vmem>>, vector<8x64xbf16>
    tpu.vector_store %arg13[%c0_128, %c0_129], %273 {strides = array<i32>} : memref<32x256xbf16, #tpu.memory_space<vmem>>, vector<8x64xbf16>,
    %cst_130 = arith.constant 0.000000e+00 : bf16
    %275 = vector.broadcast %cst_130 : bf16 to vector<8x64xbf16>
    %c24 = arith.constant 24 : index
    %c192_131 = arith.constant 192 : index
    %276 = vector.load %arg13[%c24, %c192_131] : memref<32x256xbf16, #tpu.memory_space<vmem>>, vector<8x64xbf16>
    tpu.vector_store %arg13[%c24, %c192_131], %275 {strides = array<i32>} : memref<32x256xbf16, #tpu.memory_space<vmem>>, vector<8x64xbf16>,
    %277 = vector.extract_strided_slice %272 {offsets = [0, 1, 0, 0], sizes = [3, 1, 8, 64], strides = [1, 1, 1, 1]} : vector<4x2x8x64xf32> to vector<3x1x8x64xf32>
    %278 = vector.shape_cast %277 : vector<3x1x8x64xf32> to vector<3x8x64xf32>
    %279 = vector.shape_cast %278 : vector<3x8x64xf32> to vector<24x64xf32>
    %280 = arith.truncf %279 : vector<24x64xf32> to vector<24x64xbf16>
    %c8_132 = arith.constant 8 : index
    %c0_133 = arith.constant 0 : index
    %281 = vector.load %arg13[%c8_132, %c0_133] : memref<32x256xbf16, #tpu.memory_space<vmem>>, vector<24x64xbf16>
    tpu.vector_store %arg13[%c8_132, %c0_133], %280 {strides = array<i32>} : memref<32x256xbf16, #tpu.memory_space<vmem>>, vector<24x64xbf16>,
    %282 = vector.extract_strided_slice %272 {offsets = [0, 0, 0, 0], sizes = [4, 1, 8, 64], strides = [1, 1, 1, 1]} : vector<4x2x8x64xf32> to vector<4x1x8x64xf32>
    %283 = vector.shape_cast %282 : vector<4x1x8x64xf32> to vector<4x8x64xf32>
    %284 = vector.shape_cast %283 : vector<4x8x64xf32> to vector<32x64xf32>
    %285 = arith.truncf %284 : vector<32x64xf32> to vector<32x64xbf16>
    %c0_134 = arith.constant 0 : index
    %c64_135 = arith.constant 64 : index
    %286 = vector.load %arg13[%c0_134, %c64_135] : memref<32x256xbf16, #tpu.memory_space<vmem>>, vector<32x64xbf16>
    tpu.vector_store %arg13[%c0_134, %c64_135], %285 {strides = array<i32>} : memref<32x256xbf16, #tpu.memory_space<vmem>>, vector<32x64xbf16>,
    %287 = vector.extract_strided_slice %272 {offsets = [0, 1, 0, 0], sizes = [4, 1, 8, 64], strides = [1, 1, 1, 1]} : vector<4x2x8x64xf32> to vector<4x1x8x64xf32>
    %288 = vector.shape_cast %287 : vector<4x1x8x64xf32> to vector<4x8x64xf32>
    %289 = vector.shape_cast %288 : vector<4x8x64xf32> to vector<32x64xf32>
    %290 = arith.truncf %289 : vector<32x64xf32> to vector<32x64xbf16>
    %c0_136 = arith.constant 0 : index
    %c128_137 = arith.constant 128 : index
    %291 = vector.load %arg13[%c0_136, %c128_137] : memref<32x256xbf16, #tpu.memory_space<vmem>>, vector<32x64xbf16>
    tpu.vector_store %arg13[%c0_136, %c128_137], %290 {strides = array<i32>} : memref<32x256xbf16, #tpu.memory_space<vmem>>, vector<32x64xbf16>,
    %292 = vector.extract_strided_slice %272 {offsets = [1, 0, 0, 0], sizes = [3, 1, 8, 64], strides = [1, 1, 1, 1]} : vector<4x2x8x64xf32> to vector<3x1x8x64xf32>
    %293 = vector.shape_cast %292 : vector<3x1x8x64xf32> to vector<3x8x64xf32>
    %294 = vector.shape_cast %293 : vector<3x8x64xf32> to vector<24x64xf32>
    %295 = arith.truncf %294 : vector<24x64xf32> to vector<24x64xbf16>
    %c0_138 = arith.constant 0 : index
    %c192_139 = arith.constant 192 : index
    %296 = vector.load %arg13[%c0_138, %c192_139] : memref<32x256xbf16, #tpu.memory_space<vmem>>, vector<24x64xbf16>
    tpu.vector_store %arg13[%c0_138, %c192_139], %295 {strides = array<i32>} : memref<32x256xbf16, #tpu.memory_space<vmem>>, vector<24x64xbf16>,
    %c0_140 = arith.constant 0 : index
    %c0_141 = arith.constant 0 : index
    %297 = vector.load %arg13[%c0_140, %c0_141] : memref<32x256xbf16, #tpu.memory_space<vmem>>, vector<32x256xbf16>
    %c0_142 = arith.constant 0 : index
    %c0_143 = arith.constant 0 : index
    %298 = vector.load %arg5[%c0_142, %c0_143] : memref<256x64xbf16, #tpu.memory_space<vmem>>, vector<256x64xbf16>
    %cst_144 = arith.constant dense<0.000000e+00> : vector<32x64xf32>
    %299 = tpu.matmul %297, %298, %cst_144 {dimension_numbers = #tpu.dot_dimension_numbers<[1], [0], [0], [1], [0, 0, 1, 1], [], []>} : vector<32x256xbf16>, vector<256x64xbf16>, vector<32x64xf32> -> vector<32x64xf32>
    %cst_145 = arith.constant dense<0.000000e+00> : vector<64xf32>
    %300 = vector.multi_reduction <add>, %299, %cst_145 [0] : vector<32x64xf32> to vector<64xf32>
    %301 = vector.shape_cast %300 : vector<64xf32> to vector<1x64xf32>
    %302 = arith.mulf %299, %299 : vector<32x64xf32>
    %cst_146 = arith.constant dense<0.000000e+00> : vector<64xf32>
    %303 = vector.multi_reduction <add>, %302, %cst_146 [0] : vector<32x64xf32> to vector<64xf32>
    %304 = vector.shape_cast %303 : vector<64xf32> to vector<1x64xf32>
    %305 = tpu.iota {dimensions = array<i32: 0>} : vector<64x16xi32>
    %306 = tpu.iota {dimensions = array<i32: 1>} : vector<64x16xi32>
    %c16_i32 = arith.constant 16 : i32
    %c0_i32_147 = arith.constant 0 : i32
    %307 = arith.cmpi eq, %c16_i32, %c0_i32_147 : i32
    %c1_i32_148 = arith.constant 1 : i32
    %308 = arith.select %307, %c1_i32_148, %c16_i32 : i32
    %309 = vector.broadcast %308 : i32 to vector<64x16xi32>
    %310 = arith.remsi %305, %309 : vector<64x16xi32>
    %c0_i32_149 = arith.constant 0 : i32
    %311 = vector.broadcast %c0_i32_149 : i32 to vector<64x16xi32>
    %312 = arith.cmpi ne, %310, %311 : vector<64x16xi32>
    %c0_i32_150 = arith.constant 0 : i32
    %313 = vector.broadcast %c0_i32_150 : i32 to vector<64x16xi32>
    %314 = arith.cmpi slt, %310, %313 : vector<64x16xi32>
    %c0_i32_151 = arith.constant 0 : i32
    %315 = arith.cmpi slt, %308, %c0_i32_151 : i32
    %316 = vector.broadcast %315 : i1 to vector<64x16xi1>
    %317 = vector.broadcast %316 : vector<64x16xi1> to vector<64x16xi1>
    %318 = arith.xori %314, %317 : vector<64x16xi1>
    %319 = arith.andi %318, %312 : vector<64x16xi1>
    %320 = vector.broadcast %308 : i32 to vector<64x16xi32>
    %321 = arith.addi %310, %320 : vector<64x16xi32>
    %322 = arith.select %319, %321, %310 : vector<64x16xi1>, vector<64x16xi32>
    %323 = arith.cmpi eq, %322, %306 : vector<64x16xi32>
    %cst_152 = arith.constant 1.000000e+00 : f32
    %cst_153 = arith.constant 0.000000e+00 : f32
    %324 = vector.broadcast %cst_152 : f32 to vector<64x16xf32>
    %325 = vector.broadcast %cst_153 : f32 to vector<64x16xf32>
    %326 = arith.select %323, %324, %325 : vector<64x16xi1>, vector<64x16xf32>
    %cst_154 = arith.constant dense<0.000000e+00> : vector<1x16xf32>
    %327 = tpu.matmul %301, %326, %cst_154 {dimension_numbers = #tpu.dot_dimension_numbers<[1], [0], [0], [1], [0, 0, 1, 1], [], []>} : vector<1x64xf32>, vector<64x16xf32>, vector<1x16xf32> -> vector<1x16xf32>
    %cst_155 = arith.constant dense<0.000000e+00> : vector<1x16xf32>
    %328 = tpu.matmul %304, %326, %cst_155 {dimension_numbers = #tpu.dot_dimension_numbers<[1], [0], [0], [1], [0, 0, 1, 1], [], []>} : vector<1x64xf32>, vector<64x16xf32>, vector<1x16xf32> -> vector<1x16xf32>
    %cst_156 = arith.constant 3.200000e+01 : f32
    %329 = vector.broadcast %cst_156 : f32 to vector<1x16xf32>
    %330 = arith.divf %327, %329 : vector<1x16xf32>
    %cst_157 = arith.constant 3.200000e+01 : f32
    %331 = vector.broadcast %cst_157 : f32 to vector<1x16xf32>
    %332 = arith.divf %328, %331 : vector<1x16xf32>
    %333 = arith.mulf %330, %330 : vector<1x16xf32>
    %334 = arith.subf %332, %333 : vector<1x16xf32>
    %c0_158 = arith.constant 0 : index
    %c0_159 = arith.constant 0 : index
    %335 = vector.load %arg8[%c0_158, %c0_159] : memref<2x16xf32, #tpu.memory_space<vmem>>, vector<1x16xf32>
    %c1_160 = arith.constant 1 : index
    %c0_161 = arith.constant 0 : index
    %336 = vector.load %arg8[%c1_160, %c0_161] : memref<2x16xf32, #tpu.memory_space<vmem>>, vector<1x16xf32>
    %cst_162 = arith.constant 9.99999974E-6 : f32
    %337 = vector.broadcast %cst_162 : f32 to vector<1x16xf32>
    %338 = arith.addf %334, %337 : vector<1x16xf32>
    %339 = math.rsqrt %338 : vector<1x16xf32>
    %340 = arith.mulf %335, %339 : vector<1x16xf32>
    %341 = arith.mulf %330, %340 : vector<1x16xf32>
    %342 = arith.subf %336, %341 : vector<1x16xf32>
    %343 = tpu.iota {dimensions = array<i32: 0>} : vector<16x64xi32>
    %344 = tpu.iota {dimensions = array<i32: 1>} : vector<16x64xi32>
    %c16_i32_163 = arith.constant 16 : i32
    %c0_i32_164 = arith.constant 0 : i32
    %345 = arith.cmpi eq, %c16_i32_163, %c0_i32_164 : i32
    %c1_i32_165 = arith.constant 1 : i32
    %346 = arith.select %345, %c1_i32_165, %c16_i32_163 : i32
    %347 = vector.broadcast %346 : i32 to vector<16x64xi32>
    %348 = arith.remsi %344, %347 : vector<16x64xi32>
    %c0_i32_166 = arith.constant 0 : i32
    %349 = vector.broadcast %c0_i32_166 : i32 to vector<16x64xi32>
    %350 = arith.cmpi ne, %348, %349 : vector<16x64xi32>
    %c0_i32_167 = arith.constant 0 : i32
    %351 = vector.broadcast %c0_i32_167 : i32 to vector<16x64xi32>
    %352 = arith.cmpi slt, %348, %351 : vector<16x64xi32>
    %c0_i32_168 = arith.constant 0 : i32
    %353 = arith.cmpi slt, %346, %c0_i32_168 : i32
    %354 = vector.broadcast %353 : i1 to vector<16x64xi1>
    %355 = vector.broadcast %354 : vector<16x64xi1> to vector<16x64xi1>
    %356 = arith.xori %352, %355 : vector<16x64xi1>
    %357 = arith.andi %356, %350 : vector<16x64xi1>
    %358 = vector.broadcast %346 : i32 to vector<16x64xi32>
    %359 = arith.addi %348, %358 : vector<16x64xi32>
    %360 = arith.select %357, %359, %348 : vector<16x64xi1>, vector<16x64xi32>
    %361 = arith.cmpi eq, %343, %360 : vector<16x64xi32>
    %cst_169 = arith.constant 1.000000e+00 : f32
    %cst_170 = arith.constant 0.000000e+00 : f32
    %362 = vector.broadcast %cst_169 : f32 to vector<16x64xf32>
    %363 = vector.broadcast %cst_170 : f32 to vector<16x64xf32>
    %364 = arith.select %361, %362, %363 : vector<16x64xi1>, vector<16x64xf32>
    %cst_171 = arith.constant dense<0.000000e+00> : vector<1x64xf32>
    %365 = tpu.matmul %340, %364, %cst_171 {dimension_numbers = #tpu.dot_dimension_numbers<[1], [0], [0], [1], [0, 0, 1, 1], [], []>} : vector<1x16xf32>, vector<16x64xf32>, vector<1x64xf32> -> vector<1x64xf32>
    %cst_172 = arith.constant dense<0.000000e+00> : vector<1x64xf32>
    %366 = tpu.matmul %342, %364, %cst_172 {dimension_numbers = #tpu.dot_dimension_numbers<[1], [0], [0], [1], [0, 0, 1, 1], [], []>} : vector<1x16xf32>, vector<16x64xf32>, vector<1x64xf32> -> vector<1x64xf32>
    %367 = vector.broadcast %365 : vector<1x64xf32> to vector<32x64xf32>
    %368 = arith.mulf %299, %367 : vector<32x64xf32>
    %369 = vector.broadcast %366 : vector<1x64xf32> to vector<32x64xf32>
    %370 = arith.addf %368, %369 : vector<32x64xf32>
    %cst_173 = arith.constant 2.000000e-01 : f32
    %371 = vector.broadcast %cst_173 : f32 to vector<32x64xf32>
    %372 = arith.mulf %371, %370 : vector<32x64xf32>
    %373 = arith.maximumf %370, %372 : vector<32x64xf32>
    %374 = vector.shape_cast %373 : vector<32x64xf32> to vector<4x8x64xf32>
    %c0_174 = arith.constant 0 : index
    %c0_175 = arith.constant 0 : index
    %c0_176 = arith.constant 0 : index
    %375 = vector.load %arg9[%c0_174, %c0_175, %c0_176] : memref<4x1x64xf32, #tpu.memory_space<vmem>>, vector<4x1x64xf32>
    %376 = vector.broadcast %375 : vector<4x1x64xf32> to vector<4x8x64xf32>
    %377 = arith.mulf %374, %376 : vector<4x8x64xf32>
    %cst_177 = arith.constant dense<0.000000e+00> : vector<8x64xf32>
    %378 = vector.multi_reduction <add>, %377, %cst_177 [0] : vector<4x8x64xf32> to vector<8x64xf32>
    %cst_178 = arith.constant dense<0.000000e+00> : vector<8xf32>
    %379 = vector.multi_reduction <add>, %378, %cst_178 [1] : vector<8x64xf32> to vector<8xf32>
    %380 = vector.shape_cast %379 : vector<8xf32> to vector<8x1xf32>
    %cst_179 = arith.constant 0.000000e+00 : f32
    %381 = vector.broadcast %cst_179 : f32 to vector<8x1xf32>
    %382 = arith.subf %381, %380 : vector<8x1xf32>
    %383 = math.exp %382 : vector<8x1xf32>
    %cst_180 = arith.constant 1.000000e+00 : f32
    %384 = vector.broadcast %cst_180 : f32 to vector<8x1xf32>
    %385 = arith.addf %384, %383 : vector<8x1xf32>
    %cst_181 = arith.constant 1.000000e+00 : f32
    %386 = vector.broadcast %cst_181 : f32 to vector<8x1xf32>
    %387 = arith.divf %386, %385 : vector<8x1xf32>
    %c0_182 = arith.constant 0 : index
    %c0_183 = arith.constant 0 : index
    %388 = vector.load %arg10[%c0_182, %c0_183] : memref<8x1xf32, #tpu.memory_space<vmem>>, vector<8x1xf32>
    tpu.vector_store %arg10[%c0_182, %c0_183], %387 {strides = array<i32>} : memref<8x1xf32, #tpu.memory_space<vmem>>, vector<8x1xf32>,
    return
  }
  func.func @transform_0(%arg0: i32) -> (i32, i32, i32) {
    %c0_i32 = arith.constant 0 : i32
    %c0_i32_0 = arith.constant 0 : i32
    %c0_i32_1 = arith.constant 0 : i32
    %c0_i32_2 = arith.constant 0 : i32
    return %c0_i32, %c0_i32_0, %c0_i32_1 : i32, i32, i32
  }
  func.func @transform_1(%arg0: i32) -> (i32, i32, i32) {
    %c0_i32 = arith.constant 0 : i32
    %c0_i32_0 = arith.constant 0 : i32
    %c0_i32_1 = arith.constant 0 : i32
    %c0_i32_2 = arith.constant 0 : i32
    return %c0_i32, %c0_i32_0, %c0_i32_1 : i32, i32, i32
  }
  func.func @transform_2(%arg0: i32) -> (i32, i32) {
    %c0_i32 = arith.constant 0 : i32
    %c0_i32_0 = arith.constant 0 : i32
    %c0_i32_1 = arith.constant 0 : i32
    return %c0_i32, %c0_i32_0 : i32, i32
  }
  func.func @transform_3(%arg0: i32) -> (i32, i32) {
    %c0_i32 = arith.constant 0 : i32
    %c0_i32_0 = arith.constant 0 : i32
    %c0_i32_1 = arith.constant 0 : i32
    return %c0_i32, %c0_i32_0 : i32, i32
  }
  func.func @transform_4(%arg0: i32) -> (i32, i32) {
    %c0_i32 = arith.constant 0 : i32
    %c0_i32_0 = arith.constant 0 : i32
    %c0_i32_1 = arith.constant 0 : i32
    return %c0_i32, %c0_i32_0 : i32, i32
  }
  func.func @transform_5(%arg0: i32) -> (i32, i32) {
    %c0_i32 = arith.constant 0 : i32
    %c0_i32_0 = arith.constant 0 : i32
    %c0_i32_1 = arith.constant 0 : i32
    return %c0_i32, %c0_i32_0 : i32, i32
  }
  func.func @transform_6(%arg0: i32) -> (i32, i32) {
    %c0_i32 = arith.constant 0 : i32
    %c0_i32_0 = arith.constant 0 : i32
    %c0_i32_1 = arith.constant 0 : i32
    return %c0_i32, %c0_i32_0 : i32, i32
  }
  func.func @transform_7(%arg0: i32) -> (i32, i32) {
    %c0_i32 = arith.constant 0 : i32
    %c0_i32_0 = arith.constant 0 : i32
    %c0_i32_1 = arith.constant 0 : i32
    return %c0_i32, %c0_i32_0 : i32, i32
  }
  func.func @transform_8(%arg0: i32) -> (i32, i32, i32) {
    %c0_i32 = arith.constant 0 : i32
    %c0_i32_0 = arith.constant 0 : i32
    %c0_i32_1 = arith.constant 0 : i32
    %c0_i32_2 = arith.constant 0 : i32
    return %c0_i32, %c0_i32_0, %c0_i32_1 : i32, i32, i32
  }
  func.func @transform_9(%arg0: i32) -> (i32, i32) {
    %c0_i32 = arith.constant 0 : i32
    %c0_i32_0 = arith.constant 0 : i32
    %c0_i32_1 = arith.constant 0 : i32
    return %c0_i32, %c0_i32_0 : i32, i32
  }
}

</mosaic_0001>

<bundles_post_ra>
// kernel: _lambda_.1
= control target key start
LH: loop header
LB: loop body
LE: loop exit
PB: predicated region body
PF: predicated region fallthrough
CT: control target
= control target key end

     0   :  { %v8418_v0 = vmov 0   ;;  %vm8437_vm0 = vcmask 523264   ;;  %vm2092_vm1 = vcmask 1048068   ;;  %vm2090_vm2 = vcmask 519168   ;;  %s6129_s11 = smov 64   ;;  %s8408_s1 = inlined_call_operand.vmem [shape: bf16[4,192,64], index: 1, kind: input, shape index: {}]   ;;  %s8409_s0 = inlined_call_operand.vmem [shape: bf16[2,264,192], index: 0, kind: input, shape index: {}]   ;;  %s8410_s2 = inlined_call_operand.vmem [shape: bf16[256,64], index: 2, kind: input, shape index: {}]   ;;  %s8411_s5 = inlined_call_operand.vmem [shape: f32[2,4], index: 5, kind: input, shape index: {}]   ;;  %s8412_s3 = inlined_call_operand.vmem [shape: bf16[256,64], index: 3, kind: input, shape index: {}]   ;;  %s8413_s6 = inlined_call_operand.vmem [shape: f32[2,8], index: 6, kind: input, shape index: {}]   ;;  %s8414_s4 = inlined_call_operand.vmem [shape: bf16[256,64], index: 4, kind: input, shape index: {}]   ;;  %s8415_s7 = inlined_call_operand.vmem [shape: f32[2,16], index: 7, kind: input, shape index: {}]   ;;  %s8416_s8 = inlined_call_operand.vmem [shape: f32[4,1,64], index: 8, kind: input, shape index: {}]   ;;  %s8417_s9 = inlined_call_operand.vmem [shape: f32[8,1], index: 9, kind: output, shape index: {}]  }
   0x1   :  { %837 = vmatprep.subr.bf16.mxu0 %v8418_v0  ;;  %v5894_v1 = vld [vmem:[%s8408_s1] sm:$0xff]   ;;  %412 = vmatprep.subr.bf16.mxu1 %v8418_v0  ;;  %v5895_v2 = vld [vmem:[%s8408_s1 + $0x8] sm:$0xff]   ;;  %v5896_v3 = vld [vmem:[%s8408_s1 + $0x10] sm:$0xff]   ;;  %vm8435_vm3 = vcmask 523268   ;;  %vm8434_vm4 = vcmask 1043456   ;;  %vm8421_vm5 = vcmask 1048064  }
   0x2   :  { %838 = vmatpush1.bf16.msra.mxu0 %v5894_v1  ;;  %v5897_v4 = vld [vmem:[%s8408_s1 + $0x18] sm:$0xff]   ;;  %v33_v5 = vld [vmem:[%s8409_s0] sm:$0xff]  ;;  %v6208_v6 = vld [vmem:[%s8409_s0 + $0x8] sm:$0xff]  ;;  %vm8420_vm6 = vcmask 1043968  }
   0x3   :  { %839 = vmatprep.subr.bf16.mxu0 %v8418_v0  ;;  %v4922_v7 = vcombine.high %v33_v5, %v6208_v6  ;;  %v5898_v8 = vld [vmem:[%s8408_s1 + $0x20] sm:$0xff]   ;;  %v5899_v9 = vld [vmem:[%s8408_s1 + $0x28] sm:$0xff]   ;;  %v5900_v10 = vld [vmem:[%s8408_s1 + $0x30] sm:$0xff]   ;;  %v4921_v21 = vcombine.low %v33_v5, %v6208_v6 }
   0x4   :  { %v5901_v11 = vld [vmem:[%s8408_s1 + $0x38] sm:$0xff]   ;;  %v5902_v12 = vld [vmem:[%s8408_s1 + $0x40] sm:$0xff]   ;;  %v5903_v13 = vld [vmem:[%s8408_s1 + $0x48] sm:$0xff]  }
   0x5   :  { %4965 = vmatprep.mubr.msk.bf16.mxu0 %vm8437_vm0, %v4922_v7  ;;  %v5904_v14 = vld [vmem:[%s8408_s1 + $0x50] sm:$0xff]   ;;  %v5905_v16 = vld [vmem:[%s8408_s1 + $0x58] sm:$0xff]   ;;  %v5908_v20 = vld [vmem:[%s8408_s1 + $0xc0] sm:$0xff]  }
   0x6   :  { %840 = vmatpush1.bf16.msra.mxu0 %v5895_v2  ;;  %v6242_v15 = vld [vmem:[%s8409_s0 + $0x10] sm:$0xff]  ;;  %v6251_v17 = vld [vmem:[%s8409_s0 + $0x18] sm:$0xff]  ;;  %v5911_v23 = vld [vmem:[%s8408_s1 + $0xc8] sm:$0xff]  }
   0x7   :  { %841 = vmatprep.subr.bf16.mxu0 %v8418_v0  ;;  %v5005_v18 = vcombine.low %v6208_v6, %v6242_v15  ;;  %v5006_v19 = vcombine.high %v6208_v6, %v6242_v15  ;;  %v4924_v22 = vcombine.high %v6242_v15, %v6251_v17  ;;  %v6271_v24 = vld [vmem:[%s8409_s0 + $0x20] sm:$0xff]  ;;  %v6282_v27 = vld [vmem:[%s8409_s0 + $0x28] sm:$0xff]  ;;  %v4923_v28 = vcombine.low %v6242_v15, %v6251_v17  ;;  %v5915_v30 = vld [vmem:[%s8408_s1 + $0xd0] sm:$0xff]  }
   0x8   :  { %v5008_v25 = vcombine.high %v6251_v17, %v6271_v24  ;;  %v5007_v26 = vcombine.low %v6251_v17, %v6271_v24  ;;  %v4926_v29 = vcombine.high %v6271_v24, %v6282_v27  ;;  %v6295_v31 = vld [vmem:[%s8409_s0 + $0x30] sm:$0xff]  ;;  %v5919_v33 = vld [vmem:[%s8408_s1 + $0xd8] sm:$0xff]   ;;  %v4925_v36 = vcombine.low %v6271_v24, %v6282_v27  ;;  %v5922_v38 = vld [vmem:[%s8408_s1 + $0xe0] sm:$0xff]  }
   0x9   :  { %v5010_v32 = vcombine.high %v6282_v27, %v6295_v31  ;;  %v5009_v34 = vcombine.low %v6282_v27, %v6295_v31  ;;  %v6308_v35 = vld [vmem:[%s8409_s0 + $0x38] sm:$0xff]  ;;  %v6322_v39 = vld [vmem:[%s8409_s0 + $0x40] sm:$0xff]  ;;  %v5926_v41 = vld [vmem:[%s8408_s1 + $0xe8] sm:$0xff]  }
   0xa   :  { %842 = vmatpush1.bf16.msra.mxu0 %v5896_v3  ;;  %v4928_v37 = vcombine.high %v6295_v31, %v6308_v35  ;;  %v5012_v40 = vcombine.high %v6308_v35, %v6322_v39  ;;  %v5011_v42 = vcombine.low %v6308_v35, %v6322_v39  ;;  %v6335_v43 = vld [vmem:[%s8409_s0 + $0x48] sm:$0xff]  ;;  %v4927_v44 = vcombine.low %v6295_v31, %v6308_v35  ;;  %v5930_v46 = vld [vmem:[%s8408_s1 + $0xf0] sm:$0xff]   ;;  %v5933_v49 = vld [vmem:[%s8408_s1 + $0xf8] sm:$0xff]  }
   0xb   :  { %843 = vmatprep.subr.bf16.mxu0 %v8418_v0  ;;  %v4930_v45 = vcombine.high %v6322_v39, %v6335_v43  ;;  %v6349_v47 = vld [vmem:[%s8409_s0 + $0x50] sm:$0xff]  ;;  %v6362_v51 = vld [vmem:[%s8409_s0 + $0x58] sm:$0xff]  ;;  %v4929_v52 = vcombine.low %v6322_v39, %v6335_v43  ;;  %v5937_v54 = vld [vmem:[%s8408_s1 + $0x100] sm:$0xff]  }
   0xc   :  { %v5014_v48 = vcombine.high %v6335_v43, %v6349_v47  ;;  %v5013_v50 = vcombine.low %v6335_v43, %v6349_v47  ;;  %v4932_v53 = vcombine.high %v6349_v47, %v6362_v51  ;;  %v6376_v55 = vld [vmem:[%s8409_s0 + $0x60] sm:$0xff]  ;;  %v5941_v57 = vld [vmem:[%s8408_s1 + $0x108] sm:$0xff]   ;;  %v4931_v60 = vcombine.low %v6349_v47, %v6362_v51  ;;  %v5944_v62 = vld [vmem:[%s8408_s1 + $0x110] sm:$0xff]  }
   0xd   :  { %v5016_v56 = vcombine.high %v6362_v51, %v6376_v55  ;;  %v5015_v58 = vcombine.low %v6362_v51, %v6376_v55  ;;  %v6389_v59 = vld [vmem:[%s8409_s0 + $0x68] sm:$0xff]  ;;  %v5948_v63 = vld [vmem:[%s8408_s1 + $0x118] sm:$0xff]   ;;  %v6407_v1 = vld [vmem:[%s8409_s0 + $0x70] sm:$0xff] }
   0xe   :  { %844 = vmatpush1.bf16.msra.mxu0 %v5897_v4  ;;  %v4934_v61 = vcombine.high %v6376_v55, %v6389_v59  ;;  %v6412_v2 = vld [vmem:[%s8409_s0 + $0x78] sm:$0xff]  ;;  %v4933_v3 = vcombine.low %v6376_v55, %v6389_v59  ;;  %v6424_v5 = vld [vmem:[%s8409_s0 + $0x80] sm:$0xff]  ;;  %v6429_v7 = vld [vmem:[%s8409_s0 + $0x88] sm:$0xff] }
   0xf   :  { %845 = vmatprep.subr.bf16.mxu0 %v8418_v0  ;;  %v4936_v4 = vcombine.high %v6407_v1, %v6412_v2  ;;  %v5955_v6 = vld [vmem:[%s8408_s1 + $0x128] sm:$0xff]   ;;  %v5963_v17 = vld [vmem:[%s8408_s1 + $0x138] sm:$0xff]  }
  0x10   :  { %v5970_v27 = vld [vmem:[%s8408_s1 + $0x148] sm:$0xff]   ;;  %v5977_v35 = vld [vmem:[%s8408_s1 + $0x158] sm:$0xff]  }
  0x11   :  { %v5990_v43 = vld [vmem:[%s8408_s1 + $0x168] sm:$0xff]  }
  0x12   :  { %846 = vmatpush1.bf16.msra.mxu0 %v5898_v8  ;;  %v4935_v8 = vcombine.low %v6407_v1, %v6412_v2 }
  0x13   :  { %847 = vmatprep.subr.bf16.mxu0 %v8418_v0 }
  0x16   :  { %848 = vmatpush1.bf16.msra.mxu0 %v5899_v9  ;;  %v4938_v9 = vcombine.high %v6424_v5, %v6429_v7 }
  0x17   :  { %849 = vmatprep.subr.bf16.mxu0 %v8418_v0 }
  0x1a   :  { %850 = vmatpush1.bf16.msra.mxu0 %v5900_v10  ;;  %v6439_v10 = vld [vmem:[%s8409_s0 + $0x90] sm:$0xff] }
  0x1b   :  { %851 = vmatprep.subr.bf16.mxu0 %v8418_v0 }
  0x1e   :  { %852 = vmatpush1.bf16.msra.mxu0 %v5901_v11  ;;  %v6444_v11 = vld [vmem:[%s8409_s0 + $0x98] sm:$0xff] }
  0x1f   :  { %853 = vmatprep.subr.bf16.mxu0 %v8418_v0 }
  0x22   :  { %854 = vmatpush1.bf16.msra.mxu0 %v5902_v12  ;;  %v4937_v12 = vcombine.low %v6424_v5, %v6429_v7 }
  0x23   :  { %855 = vmatprep.subr.bf16.mxu0 %v8418_v0 }
  0x26   :  { %856 = vmatpush1.bf16.msra.mxu0 %v5903_v13  ;;  %v4940_v13 = vcombine.high %v6439_v10, %v6444_v11 }
  0x27   :  { %857 = vmatprep.subr.bf16.mxu0 %v8418_v0 }
  0x2a   :  { %858 = vmatpush1.bf16.msra.mxu0 %v5904_v14  ;;  %v6454_v14 = vld [vmem:[%s8409_s0 + $0xa0] sm:$0xff] }
  0x2b   :  { %859 = vmatprep.subr.bf16.mxu0 %v8418_v0 }
  0x2e   :  { %860 = vmatpush1.bf16.msra.mxu0 %v5905_v16  ;;  %v6459_v16 = vld [vmem:[%s8409_s0 + $0xa8] sm:$0xff] }
  0x2f   :  { %1319 = vmatprep.subr.bf16.mxu0 %v8418_v0 }
  0x31   :  { %870 = vmatmul.mubr.bf16.vlgmr.msra.gmra.mrb[0].mxu0 %v4921_v21  ;;  %v4942_v21 = vcombine.high %v6454_v14, %v6459_v16 }
  0x32   :  { %1320 = vmatpush1.bf16.msra.mxu0 %v5908_v20  ;;  %4966 = vmatprep.mubr.msk.bf16.mxu0 %vm8437_vm0, %v4924_v22  ;;  %v4939_v20 = vcombine.low %v6439_v10, %v6444_v11  ;;  %v5978_v22 = vld [vmem:[%s8408_s1 + $0x60] sm:$0xff]  }
  0x33   :  { %1321 = vmatprep.subr.bf16.mxu0 %v8418_v0  ;;  %413 = vmatpush1.bf16.msra.mxu1 %v5978_v22  ;;  %v6001_v22 = vld [vmem:[%s8408_s1 + $0xb0] sm:$0xff]  }
  0x34   :  { %414 = vmatprep.subr.bf16.mxu1 %v8418_v0 }
  0x36   :  { %1322 = vmatpush1.bf16.msra.mxu0 %v5911_v23  ;;  %v6472_v23 = vld [vmem:[%s8409_s0 + $0xb0] sm:$0xff] }
  0x37   :  { %1323 = vmatprep.subr.bf16.mxu0 %v8418_v0 }
  0x39   :  { %878 = vmatmul.mubr.bf16.gmra.mrb[4].mxu0 %v4923_v28  ;;  %v6477_v28 = vld [vmem:[%s8409_s0 + $0xb8] sm:$0xff] }
  0x3a   :  { %4967 = vmatprep.mubr.msk.bf16.mxu0 %vm8437_vm0, %v4926_v29  ;;  %1324 = vmatpush1.bf16.msra.mxu0 %v5915_v30  ;;  %v4941_v29 = vcombine.low %v6454_v14, %v6459_v16  ;;  %v4944_v30 = vcombine.high %v6472_v23, %v6477_v28 }
  0x3b   :  { %1325 = vmatprep.subr.bf16.mxu0 %v8418_v0 }
  0x3e   :  { %1326 = vmatpush1.bf16.msra.mxu0 %v5919_v33  ;;  %v5981_v33 = vld [vmem:[%s8408_s1 + $0x68] sm:$0xff]  }
  0x3f   :  { %1327 = vmatprep.subr.bf16.mxu0 %v8418_v0  ;;  %415 = vmatpush1.bf16.msra.mxu1 %v5981_v33  ;;  %v4805_v33 = vld [vmem:[%s8409_s0 + $0x108] sm:$0xff] }
  0x40   :  { %416 = vmatprep.subr.bf16.mxu1 %v8418_v0 }
  0x41   :  { %886 = vmatmul.mubr.bf16.gmra.mrb[8].mxu0 %v4925_v36  ;;  %v6491_v36 = vld [vmem:[%s8409_s0 + $0xc0] sm:$0xff] }
  0x42   :  { %4968 = vmatprep.mubr.msk.bf16.mxu0 %vm8437_vm0, %v4928_v37  ;;  %1328 = vmatpush1.bf16.msra.mxu0 %v5922_v38  ;;  %v6496_v37 = vld [vmem:[%s8409_s0 + $0xc8] sm:$0xff]  ;;  %v5982_v38 = vld [vmem:[%s8408_s1 + $0x70] sm:$0xff]  }
  0x43   :  { %1329 = vmatprep.subr.bf16.mxu0 %v8418_v0  ;;  %417 = vmatpush1.bf16.msra.mxu1 %v5982_v38  ;;  %v6596_v38 = vld [vmem:[%s8409_s0 + $0x110] sm:$0xff] }
  0x44   :  { %418 = vmatprep.subr.bf16.mxu1 %v8418_v0 }
  0x46   :  { %1330 = vmatpush1.bf16.msra.mxu0 %v5926_v41  ;;  %v4943_v41 = vcombine.low %v6472_v23, %v6477_v28 }
  0x47   :  { %1331 = vmatprep.subr.bf16.mxu0 %v8418_v0 }
  0x49   :  { %894 = vmatmul.mubr.bf16.gmra.mrb[12].mxu0 %v4927_v44  ;;  %v4946_v44 = vcombine.high %v6491_v36, %v6496_v37 }
  0x4a   :  { %4969 = vmatprep.mubr.msk.bf16.mxu0 %vm8437_vm0, %v4930_v45  ;;  %1332 = vmatpush1.bf16.msra.mxu0 %v5930_v46  ;;  %v5986_v45 = vld [vmem:[%s8408_s1 + $0x78] sm:$0xff]   ;;  %v6514_v46 = vld [vmem:[%s8409_s0 + $0xd0] sm:$0xff] }
  0x4b   :  { %1333 = vmatprep.subr.bf16.mxu0 %v8418_v0  ;;  %419 = vmatpush1.bf16.msra.mxu1 %v5986_v45  ;;  %v6607_v45 = vld [vmem:[%s8409_s0 + $0x118] sm:$0xff] }
  0x4c   :  { %420 = vmatprep.subr.bf16.mxu1 %v8418_v0 }
  0x4e   :  { %1334 = vmatpush1.bf16.msra.mxu0 %v5933_v49  ;;  %v6519_v49 = vld [vmem:[%s8409_s0 + $0xd8] sm:$0xff] }
  0x4f   :  { %1335 = vmatprep.subr.bf16.mxu0 %v8418_v0 }
  0x51   :  { %902 = vmatmul.mubr.bf16.gmra.mrb[16].mxu0 %v4929_v52  ;;  %v5987_v52 = vld [vmem:[%s8408_s1 + $0x80] sm:$0xff]  }
  0x52   :  { %4970 = vmatprep.mubr.msk.bf16.mxu0 %vm8437_vm0, %v4932_v53  ;;  %1336 = vmatpush1.bf16.msra.mxu0 %v5937_v54  ;;  %v4945_v53 = vcombine.low %v6491_v36, %v6496_v37  ;;  %v4948_v54 = vcombine.high %v6514_v46, %v6519_v49 }
  0x53   :  { %1337 = vmatprep.subr.bf16.mxu0 %v8418_v0  ;;  %421 = vmatpush1.bf16.msra.mxu1 %v5987_v52  ;;  %v5121_v52 = vcombine.low %v6596_v38, %v6607_v45 }
  0x54   :  { %422 = vmatprep.subr.bf16.mxu1 %v8418_v0 }
  0x56   :  { %1338 = vmatpush1.bf16.msra.mxu0 %v5941_v57  ;;  %v5991_v57 = vld [vmem:[%s8408_s1 + $0x88] sm:$0xff]  }
  0x57   :  { %1339 = vmatprep.subr.bf16.mxu0 %v8418_v0  ;;  %423 = vmatpush1.bf16.msra.mxu1 %v5991_v57  ;;  %v6628_v57 = vld [vmem:[%s8409_s0 + $0x128] sm:$0xff] }
  0x58   :  { %424 = vmatprep.subr.bf16.mxu1 %v8418_v0 }
  0x59   :  { %910 = vmatmul.mubr.bf16.gmra.mrb[20].mxu0 %v4931_v60  ;;  %v6537_v60 = vld [vmem:[%s8409_s0 + $0xe0] sm:$0xff] }
  0x5a   :  { %4971 = vmatprep.mubr.msk.bf16.mxu0 %vm8437_vm0, %v4934_v61  ;;  %1340 = vmatpush1.bf16.msra.mxu0 %v5944_v62  ;;  %v6542_v61 = vld [vmem:[%s8409_s0 + $0xe8] sm:$0xff]  ;;  %v5992_v62 = vld [vmem:[%s8408_s1 + $0x90] sm:$0xff]  }
  0x5b   :  { %1341 = vmatprep.subr.bf16.mxu0 %v8418_v0  ;;  %425 = vmatpush1.bf16.msra.mxu1 %v5992_v62 }
  0x5c   :  { %426 = vmatprep.subr.bf16.mxu1 %v8418_v0 }
  0x5e   :  { %1342 = vmatpush1.bf16.msra.mxu0 %v5948_v63  ;;  %v4947_v63 = vcombine.low %v6514_v46, %v6519_v49 }
  0x5f   :  { %1833 = vmatprep.subr.bf16.mxu0 %v8418_v0 }
  0x61   :  { %918 = vmatmul.mubr.bf16.gmra.mrb[24].mxu0 %v4933_v3  ;;  %v4950_v3 = vcombine.high %v6537_v60, %v6542_v61 }
  0x62   :  { %4972 = vmatprep.mubr.msk.bf16.mxu0 %vm8437_vm0, %v4936_v4  ;;  %v5995_v4 = vld [vmem:[%s8408_s1 + $0x98] sm:$0xff]  }
  0x63   :  { %427 = vmatpush1.bf16.msra.mxu1 %v5995_v4  ;;  %v6662_v4 = vld [vmem:[%s8409_s0 + $0x138] sm:$0xff] }
  0x64   :  { %428 = vmatprep.subr.bf16.mxu1 %v8418_v0 }
  0x69   :  { %926 = vmatmul.mubr.bf16.gmra.mrb[28].mxu0 %v4935_v8  ;;  %v6560_v8 = vld [vmem:[%s8409_s0 + $0xf0] sm:$0xff] }
  0x6a   :  { %4973 = vmatprep.mubr.msk.bf16.mxu0 %vm8437_vm0, %v4938_v9  ;;  %v6565_v9 = vld [vmem:[%s8409_s0 + $0xf8] sm:$0xff] }
  0x71   :  { %934 = vmatmul.mubr.bf16.gmra.mrb[32].mxu0 %v4937_v12  ;;  %v5997_v12 = vld [vmem:[%s8408_s1 + $0xa0] sm:$0xff]  }
  0x72   :  { %4974 = vmatprep.mubr.msk.bf16.mxu0 %vm8437_vm0, %v4940_v13  ;;  %v4949_v13 = vcombine.low %v6537_v60, %v6542_v61  ;;  %429 = vmatpush1.bf16.msra.mxu1 %v5997_v12 }
  0x73   :  { %430 = vmatprep.subr.bf16.mxu1 %v8418_v0 }
  0x79   :  { %942 = vmatmul.mubr.bf16.gmra.mrb[36].mxu0 %v4939_v20  ;;  %v4952_v20 = vcombine.high %v6560_v8, %v6565_v9 }
  0x7a   :  { %4975 = vmatprep.mubr.msk.bf16.mxu0 %vm8437_vm0, %v4942_v21  ;;  %v6000_v21 = vld [vmem:[%s8408_s1 + $0xa8] sm:$0xff]  }
  0x7b   :  { %431 = vmatpush1.bf16.msra.mxu1 %v6000_v21  ;;  %v6696_v21 = vld [vmem:[%s8409_s0 + $0x148] sm:$0xff] }
  0x7c   :  { %432 = vmatprep.subr.bf16.mxu1 %v8418_v0 }
  0x7f   :  { %433 = vmatpush1.bf16.msra.mxu1 %v6001_v22 }
  0x80   :  { %434 = vmatprep.subr.bf16.mxu1 %v8418_v0 }
  0x81   :  { %950 = vmatmul.mubr.bf16.gmra.mrb[40].mxu0 %v4941_v29  ;;  %v4951_v29 = vcombine.low %v6560_v8, %v6565_v9 }
  0x82   :  { %4976 = vmatprep.mubr.msk.bf16.mxu0 %vm8437_vm0, %v4944_v30  ;;  %v6005_v30 = vld [vmem:[%s8408_s1 + $0xb8] sm:$0xff]  }
  0x83   :  { %435 = vmatpush1.bf16.msra.mxu1 %v6005_v30  ;;  %v6725_v30 = vld [vmem:[%s8409_s0 + $0x150] sm:$0xff] }
  0x84   :  { %v4870_v39 = vcombine.high %v6696_v21, %v6725_v30 }
  0x89   :  { %958 = vmatmul.mubr.bf16.gmra.mrb[44].mxu0 %v4943_v41  ;;  %v4861_v41 = vcombine.low %v4805_v33, %v6596_v38 }
  0x8a   :  { %4977 = vmatprep.mubr.msk.bf16.mxu0 %vm8437_vm0, %v4946_v44  ;;  %v4862_v44 = vcombine.high %v4805_v33, %v6596_v38  ;;  %v6730_v33 = vld [vmem:[%s8409_s0 + $0x158] sm:$0xff] }
  0x8c   :  { %4905 = vmatprep.mubr.msk.bf16.mxu1 %vm8437_vm0, %v4862_v44  ;;  %v5129_v44 = vcombine.low %v6725_v30, %v6730_v33 }
  0x8d   :  { %445 = vmatmul.mubr.bf16.vlgmr.msra.gmra.mrb[0].mxu1 %v4861_v41  ;;  %v5130_v41 = vcombine.high %v6725_v30, %v6730_v33 }
  0x91   :  { %966 = vmatmul.mubr.bf16.gmra.mrb[48].mxu0 %v4945_v53  ;;  %v5122_v53 = vcombine.high %v6596_v38, %v6607_v45 }
  0x92   :  { %4978 = vmatprep.mubr.msk.bf16.mxu0 %vm8437_vm0, %v4948_v54  ;;  %v6623_v54 = vld [vmem:[%s8409_s0 + $0x120] sm:$0xff] }
  0x93   :  { %v4864_v15 = vcombine.high %v6607_v45, %v6623_v54  ;;  %v5124_v62 = vcombine.high %v6623_v54, %v6628_v57 }
  0x95   :  { %4906 = vmatprep.mubr.msk.bf16.mxu1 %vm8437_vm0, %v4864_v15 }
  0x99   :  { %974 = vmatmul.mubr.bf16.gmra.mrb[52].mxu0 %v4947_v63  ;;  %v5123_v63 = vcombine.low %v6623_v54, %v6628_v57 }
  0x9a   :  { %4979 = vmatprep.mubr.msk.bf16.mxu0 %vm8437_vm0, %v4950_v3  ;;  %v6657_v3 = vld [vmem:[%s8409_s0 + $0x130] sm:$0xff] }
  0x9b   :  { %v4866_v24 = vcombine.high %v6628_v57, %v6657_v3  ;;  %v5126_v12 = vcombine.high %v6657_v3, %v6662_v4 }
  0xa1   :  { %982 = vmatmul.mubr.bf16.gmra.mrb[56].mxu0 %v4949_v13  ;;  %v5125_v13 = vcombine.low %v6657_v3, %v6662_v4 }
  0xa2   :  { %4980 = vmatprep.mubr.msk.bf16.mxu0 %vm8437_vm0, %v4952_v20  ;;  %v6691_v20 = vld [vmem:[%s8409_s0 + $0x140] sm:$0xff] }
  0xa3   :  { %v4868_v31 = vcombine.high %v6662_v4, %v6691_v20  ;;  %v5128_v22 = vcombine.high %v6691_v20, %v6696_v21 }
  0xa9   :  { %990 = vmatmul.mubr.bf16.gmra.mrb[60].mxu0 %v4951_v29  ;;  %v5127_v29 = vcombine.low %v6691_v20, %v6696_v21 }
  0xaa   :  { %5049 = vmatprep.mubr.msk.bf16.mxu0 %vm8437_vm0, %v5006_v19  ;;  %v5952_v19 = vld [vmem:[%s8408_s1 + $0x120] sm:$0xff]  }
  0xb1   :  { %1352 = vmatmul.mubr.bf16.vlgmr.msra.gmra.mrb[0].mxu0 %v5005_v18  ;;  %v4863_v18 = vcombine.low %v6607_v45, %v6623_v54 }
  0xb2   :  { %1834 = vmatpush1.bf16.msra.mxu0 %v5952_v19  ;;  %5050 = vmatprep.mubr.msk.bf16.mxu0 %vm8437_vm0, %v5008_v25  ;;  %v5959_v25 = vld [vmem:[%s8408_s1 + $0x130] sm:$0xff]   ;;  %v6759_v19 = vld [vmem:[%s8409_s0 + $0x160] sm:$0xff] }
  0xb3   :  { %1835 = vmatprep.subr.bf16.mxu0 %v8418_v0  ;;  %453 = vmatmul.mubr.bf16.gmra.mrb[4].mxu1 %v4863_v18  ;;  %v4872_v47 = vcombine.high %v6730_v33, %v6759_v19 }
  0xb4   :  { %4907 = vmatprep.mubr.msk.bf16.mxu1 %vm8437_vm0, %v4866_v24  ;;  %v6800_v24 = vld [vmem:[%s8409_s0 + $0x178] sm:$0xff] }
  0xb6   :  { %1836 = vmatpush1.bf16.msra.mxu0 %v5955_v6  ;;  %v6764_v6 = vld [vmem:[%s8409_s0 + $0x168] sm:$0xff] }
  0xb7   :  { %1837 = vmatprep.subr.bf16.mxu0 %v8418_v0  ;;  %v5132_v15 = vcombine.high %v6759_v19, %v6764_v6  ;;  %v5131_v18 = vcombine.low %v6759_v19, %v6764_v6 }
  0xb9   :  { %1360 = vmatmul.mubr.bf16.gmra.mrb[4].mxu0 %v5007_v26  ;;  %v4865_v26 = vcombine.low %v6628_v57, %v6657_v3 }
  0xba   :  { %5051 = vmatprep.mubr.msk.bf16.mxu0 %vm8437_vm0, %v5010_v32  ;;  %1838 = vmatpush1.bf16.msra.mxu0 %v5959_v25  ;;  %v5966_v32 = vld [vmem:[%s8408_s1 + $0x140] sm:$0xff]   ;;  %v5996_v25 = vld [vmem:[%s8408_s1 + $0x170] sm:$0xff]  }
  0xbb   :  { %1839 = vmatprep.subr.bf16.mxu0 %v8418_v0  ;;  %461 = vmatmul.mubr.bf16.gmra.mrb[8].mxu1 %v4865_v26  ;;  %v6003_v26 = vld [vmem:[%s8408_s1 + $0x178] sm:$0xff]  }
  0xbc   :  { %4908 = vmatprep.mubr.msk.bf16.mxu1 %vm8437_vm0, %v4868_v31  ;;  %v5020_v31 = vcombine.high %v6412_v2, %v6424_v5 }
  0xbe   :  { %1840 = vmatpush1.bf16.msra.mxu0 %v5963_v17  ;;  %v6795_v17 = vld [vmem:[%s8409_s0 + $0x170] sm:$0xff] }
  0xbf   :  { %1841 = vmatprep.subr.bf16.mxu0 %v8418_v0  ;;  %v4874_v51 = vcombine.high %v6764_v6, %v6795_v17  ;;  %v4873_v55 = vcombine.low %v6764_v6, %v6795_v17 }
  0xc1   :  { %1368 = vmatmul.mubr.bf16.gmra.mrb[8].mxu0 %v5009_v34  ;;  %v4867_v34 = vcombine.low %v6662_v4, %v6691_v20 }
  0xc2   :  { %5052 = vmatprep.mubr.msk.bf16.mxu0 %vm8437_vm0, %v5012_v40  ;;  %1842 = vmatpush1.bf16.msra.mxu0 %v5966_v32  ;;  %v5974_v40 = vld [vmem:[%s8408_s1 + $0x150] sm:$0xff]   ;;  %v5133_v32 = vcombine.low %v6795_v17, %v6800_v24 }
  0xc3   :  { %1843 = vmatprep.subr.bf16.mxu0 %v8418_v0  ;;  %469 = vmatmul.mubr.bf16.gmra.mrb[12].mxu1 %v4867_v34  ;;  %v6823_v34 = vld [vmem:[%s8409_s0 + $0x180] sm:$0xff] }
  0xc4   :  { %4909 = vmatprep.mubr.msk.bf16.mxu1 %vm8437_vm0, %v4870_v39 }
  0xc6   :  { %1844 = vmatpush1.bf16.msra.mxu0 %v5970_v27  ;;  %v5017_v27 = vcombine.low %v6389_v59, %v6407_v1 }
  0xc7   :  { %1845 = vmatprep.subr.bf16.mxu0 %v8418_v0 }
  0xc9   :  { %1376 = vmatmul.mubr.bf16.gmra.mrb[12].mxu0 %v5011_v42  ;;  %v4869_v42 = vcombine.low %v6696_v21, %v6725_v30 }
  0xca   :  { %5053 = vmatprep.mubr.msk.bf16.mxu0 %vm8437_vm0, %v5014_v48  ;;  %1846 = vmatpush1.bf16.msra.mxu0 %v5974_v40  ;;  %v5984_v48 = vld [vmem:[%s8408_s1 + $0x160] sm:$0xff]   ;;  %v6828_v40 = vld [vmem:[%s8409_s0 + $0x188] sm:$0xff] }
  0xcb   :  { %1847 = vmatprep.subr.bf16.mxu0 %v8418_v0  ;;  %477 = vmatmul.mubr.bf16.gmra.mrb[16].mxu1 %v4869_v42  ;;  %v5135_v39 = vcombine.low %v6823_v34, %v6828_v40  ;;  %v5019_v42 = vcombine.low %v6412_v2, %v6424_v5 }
  0xcc   :  { %4910 = vmatprep.mubr.msk.bf16.mxu1 %vm8437_vm0, %v4872_v47  ;;  %v6852_v47 = vld [vmem:[%s8409_s0 + $0x198] sm:$0xff] }
  0xce   :  { %1848 = vmatpush1.bf16.msra.mxu0 %v5977_v35  ;;  %v5136_v35 = vcombine.high %v6823_v34, %v6828_v40 }
  0xcf   :  { %1849 = vmatprep.subr.bf16.mxu0 %v8418_v0 }
  0xd1   :  { %1384 = vmatmul.mubr.bf16.gmra.mrb[16].mxu0 %v5013_v50  ;;  %v4871_v50 = vcombine.low %v6730_v33, %v6759_v19  ;;  %v5096_v33 = vld [vmem:[%s8409_s0 + $0x208] sm:$0xff] }
  0xd2   :  { %5054 = vmatprep.mubr.msk.bf16.mxu0 %vm8437_vm0, %v5016_v56  ;;  %1850 = vmatpush1.bf16.msra.mxu0 %v5984_v48  ;;  %v5018_v56 = vcombine.high %v6389_v59, %v6407_v1  ;;  %v4876_v59 = vcombine.high %v6800_v24, %v6823_v34  ;;  %v4875_v1 = vcombine.low %v6800_v24, %v6823_v34 }
  0xd3   :  { %1851 = vmatprep.subr.bf16.mxu0 %v8418_v0  ;;  %485 = vmatmul.mubr.bf16.gmra.mrb[20].mxu1 %v4871_v50  ;;  %v5022_v48 = vcombine.high %v6429_v7, %v6439_v10 }
  0xd4   :  { %4911 = vmatprep.mubr.msk.bf16.mxu1 %vm8437_vm0, %v4874_v51  ;;  %v6871_v51 = vld [vmem:[%s8409_s0 + $0x1a0] sm:$0xff] }
  0xd6   :  { %1852 = vmatpush1.bf16.msra.mxu0 %v5990_v43  ;;  %v6847_v43 = vld [vmem:[%s8409_s0 + $0x190] sm:$0xff] }
  0xd7   :  { %1853 = vmatprep.subr.bf16.mxu0 %v8418_v0  ;;  %v4878_v2 = vcombine.high %v6828_v40, %v6847_v43  ;;  %v4877_v5 = vcombine.low %v6828_v40, %v6847_v43  ;;  %v5138_v50 = vcombine.high %v6847_v43, %v6852_v47 }
  0xd9   :  { %1392 = vmatmul.mubr.bf16.gmra.mrb[20].mxu0 %v5015_v58  ;;  %v5134_v58 = vcombine.high %v6795_v17, %v6800_v24 }
  0xda   :  { %5055 = vmatprep.mubr.msk.bf16.mxu0 %vm8437_vm0, %v5018_v56  ;;  %1854 = vmatpush1.bf16.msra.mxu0 %v5996_v25  ;;  %v5137_v56 = vcombine.low %v6847_v43, %v6852_v47  ;;  %v5021_v25 = vcombine.low %v6429_v7, %v6439_v10  ;;  %v4880_v7 = vcombine.high %v6852_v47, %v6871_v51 }
  0xdb   :  { %1855 = vmatprep.subr.bf16.mxu0 %v8418_v0  ;;  %493 = vmatmul.mubr.bf16.gmra.mrb[24].mxu1 %v4873_v55  ;;  %v6876_v55 = vld [vmem:[%s8409_s0 + $0x1a8] sm:$0xff]  ;;  %v4879_v10 = vcombine.low %v6852_v47, %v6871_v51  ;;  %v6967_v0 = vld [vmem:[%s8409_s0 + $0x1e0] sm:$0xff] }
  0xdc   :  { %4912 = vmatprep.mubr.msk.bf16.mxu1 %vm8437_vm0, %v4876_v59  ;;  %v5023_v59 = vcombine.low %v6444_v11, %v6454_v14 }
  0xde   :  { %1856 = vmatpush1.bf16.msra.mxu0 %v6003_v26  ;;  %v5024_v26 = vcombine.high %v6444_v11, %v6454_v14 }
  0xe1   :  { %1400 = vmatmul.mubr.bf16.gmra.mrb[24].mxu0 %v5017_v27  ;;  %v5140_v27 = vcombine.high %v6871_v51, %v6876_v55 }
  0xe2   :  { %5056 = vmatprep.mubr.msk.bf16.mxu0 %vm8437_vm0, %v5020_v31  ;;  %v5139_v31 = vcombine.low %v6871_v51, %v6876_v55 }
  0xe3   :  { %501 = vmatmul.mubr.bf16.gmra.mrb[28].mxu1 %v4875_v1  ;;  %v5026_v1 = vcombine.high %v6459_v16, %v6472_v23 }
  0xe4   :  { %4913 = vmatprep.mubr.msk.bf16.mxu1 %vm8437_vm0, %v4878_v2 }
  0xe9   :  { %1408 = vmatmul.mubr.bf16.gmra.mrb[28].mxu0 %v5019_v42  ;;  %v6895_v42 = vld [vmem:[%s8409_s0 + $0x1b0] sm:$0xff] }
  0xea   :  { %5057 = vmatprep.mubr.msk.bf16.mxu0 %vm8437_vm0, %v5022_v48  ;;  %v6900_v48 = vld [vmem:[%s8409_s0 + $0x1b8] sm:$0xff]  ;;  %v4882_v11 = vcombine.high %v6876_v55, %v6895_v42  ;;  %v4881_v14 = vcombine.low %v6876_v55, %v6895_v42 }
  0xeb   :  { %509 = vmatmul.mubr.bf16.gmra.mrb[32].mxu1 %v4877_v5  ;;  %v5142_v2 = vcombine.high %v6895_v42, %v6900_v48  ;;  %v5141_v5 = vcombine.low %v6895_v42, %v6900_v48 }
  0xec   :  { %4914 = vmatprep.mubr.msk.bf16.mxu1 %vm8437_vm0, %v4880_v7  ;;  %v6919_v7 = vld [vmem:[%s8409_s0 + $0x1c0] sm:$0xff] }
  0xf1   :  { %1416 = vmatmul.mubr.bf16.gmra.mrb[32].mxu0 %v5021_v25  ;;  %v5025_v25 = vcombine.low %v6459_v16, %v6472_v23  ;;  %v4884_v16 = vcombine.high %v6900_v48, %v6919_v7  ;;  %v4883_v23 = vcombine.low %v6900_v48, %v6919_v7 }
  0xf2   :  { %5058 = vmatprep.mubr.msk.bf16.mxu0 %vm8437_vm0, %v5024_v26  ;;  %v5028_v26 = vcombine.high %v6477_v28, %v6491_v36 }
  0xf3   :  { %517 = vmatmul.mubr.bf16.gmra.mrb[36].mxu1 %v4879_v10  ;;  %v6924_v10 = vld [vmem:[%s8409_s0 + $0x1c8] sm:$0xff] }
  0xf4   :  { %4915 = vmatprep.mubr.msk.bf16.mxu1 %vm8437_vm0, %v4882_v11  ;;  %v5027_v11 = vcombine.low %v6477_v28, %v6491_v36 }
  0xf9   :  { %1424 = vmatmul.mubr.bf16.gmra.mrb[36].mxu0 %v5023_v59 }
  0xfa   :  { %5059 = vmatprep.mubr.msk.bf16.mxu0 %vm8437_vm0, %v5026_v1  ;;  %v4836_v1 = vld [vmem:[%s8409_s0 + $0x200] sm:$0xff] }
  0xfb   :  { %525 = vmatmul.mubr.bf16.gmra.mrb[40].mxu1 %v4881_v14  ;;  %v5030_v14 = vcombine.high %v6496_v37, %v6514_v46  ;;  %v5152_v19 = vcombine.high %v4836_v1, %v5096_v33  ;;  %v5151_v17 = vcombine.low %v4836_v1, %v5096_v33 }
  0xfc   :  { %4916 = vmatprep.mubr.msk.bf16.mxu1 %vm8437_vm0, %v4884_v16  ;;  %v6972_v16 = vld [vmem:[%s8409_s0 + $0x1e8] sm:$0xff] }
 0x101   :  { %1432 = vmatmul.mubr.bf16.gmra.mrb[40].mxu0 %v5025_v25  ;;  %v6943_v25 = vld [vmem:[%s8409_s0 + $0x1d0] sm:$0xff] }
 0x102   :  { %5060 = vmatprep.mubr.msk.bf16.mxu0 %vm8437_vm0, %v5028_v26  ;;  %v6948_v26 = vld [vmem:[%s8409_s0 + $0x1d8] sm:$0xff]  ;;  %v4886_v28 = vcombine.high %v6924_v10, %v6943_v25  ;;  %v4885_v36 = vcombine.low %v6924_v10, %v6943_v25 }
 0x103   :  { %533 = vmatmul.mubr.bf16.gmra.mrb[44].mxu1 %v4883_v23  ;;  %v6991_v23 = vld [vmem:[%s8409_s0 + $0x1f0] sm:$0xff]  ;;  %v8452_v54 = vcombine.high %v6943_v25, %v6948_v26  ;;  %v8453_v3 = vcombine.low %v6943_v25, %v6948_v26 }
 0x104   :  { %4917 = vmatprep.mubr.msk.bf16.mxu1 %vm8437_vm0, %v4886_v28  ;;  %v6996_v28 = vld [vmem:[%s8409_s0 + $0x1f8] sm:$0xff] }
 0x105   :  { %v4891_v59 = vcombine.low %v6996_v28, %v4836_v1 }
 0x109   :  { %1440 = vmatmul.mubr.bf16.gmra.mrb[44].mxu0 %v5027_v11  ;;  %v5029_v11 = vcombine.low %v6496_v37, %v6514_v46  ;;  %v4888_v37 = vcombine.high %v6948_v26, %v6967_v0  ;;  %v4887_v46 = vcombine.low %v6948_v26, %v6967_v0 }
 0x10a   :  { %5061 = vmatprep.mubr.msk.bf16.mxu0 %vm8437_vm0, %v5030_v14  ;;  %v5032_v14 = vcombine.high %v6519_v49, %v6537_v60 }
 0x10b   :  { %541 = vmatmul.mubr.bf16.gmra.mrb[48].mxu1 %v4885_v36 }
 0x10c   :  { %4918 = vmatprep.mubr.msk.bf16.mxu1 %vm8437_vm0, %v4888_v37  ;;  %v5150_v37 = vcombine.high %v6991_v23, %v6996_v28 }
 0x111   :  { %1448 = vmatmul.mubr.bf16.gmra.mrb[48].mxu0 %v5029_v11  ;;  %v5031_v11 = vcombine.low %v6519_v49, %v6537_v60  ;;  %v4890_v49 = vcombine.high %v6972_v16, %v6991_v23  ;;  %v4889_v60 = vcombine.low %v6972_v16, %v6991_v23 }
 0x112   :  { %5062 = vmatprep.mubr.msk.bf16.mxu0 %vm8437_vm0, %v5032_v14  ;;  %v5034_v14 = vcombine.high %v6542_v61, %v6560_v8 }
 0x113   :  { %549 = vmatmul.mubr.bf16.gmra.mrb[52].mxu1 %v4887_v46  ;;  %v5149_v46 = vcombine.low %v6991_v23, %v6996_v28  ;;  %v4892_v23 = vcombine.high %v6996_v28, %v4836_v1 }
 0x114   :  { %4919 = vmatprep.mubr.msk.bf16.mxu1 %vm8437_vm0, %v4890_v49 }
 0x119   :  { %1456 = vmatmul.mubr.bf16.gmra.mrb[52].mxu0 %v5031_v11  ;;  %v1029_v11 = vld [vmem:[%s8409_s0 + $0x100] sm:$0xff] }
 0x11a   :  { %5063 = vmatprep.mubr.msk.bf16.mxu0 %vm8437_vm0, %v5034_v14  ;;  %v5033_v14 = vcombine.low %v6542_v61, %v6560_v8  ;;  %v5036_v36 = vcombine.high %v6565_v9, %v1029_v11  ;;  %v5035_v49 = vcombine.low %v6565_v9, %v1029_v11  ;;  %v8450_v8 = vcombine.high %v6919_v7, %v6924_v10 }
 0x11b   :  { %557 = vmatmul.mubr.bf16.gmra.mrb[56].mxu1 %v4889_v60  ;;  %v6072_v60 = vld [vmem:[%s8410_s2 + $0x48] sm:$0xff]  }
 0x11c   :  { %4920 = vmatprep.mubr.msk.bf16.mxu1 %vm8437_vm0, %v4892_v23 }
 0x121   :  { %1464 = vmatmul.mubr.bf16.gmra.mrb[56].mxu0 %v5033_v14 }
 0x122   :  { %5064 = vmatprep.mubr.msk.bf16.mxu0 %vm8437_vm0, %v5036_v36 }
 0x123   :  { %565 = vmatmul.mubr.bf16.gmra.mrb[60].mxu1 %v4891_v59  ;;  %v6071_v59 = vld [vmem:[%s8410_s2] sm:$0xff]  }
 0x129   :  { %1472 = vmatmul.mubr.bf16.gmra.mrb[60].mxu0 %v5035_v49 }
 0x12a   :  { %5165 = vmatprep.mubr.msk.bf16.mxu0 %vm8437_vm0, %v5122_v53 }
 0x131   :  { %1866 = vmatmul.mubr.bf16.vlgmr.msra.gmra.mrb[0].mxu0 %v5121_v52  ;;  %v8451_v52 = vcombine.low %v6919_v7, %v6924_v10  ;;  %v6070_v7 = vld [vmem:[%s8410_s2 + $0x40] sm:$0xff]  }
 0x132   :  { %5166 = vmatprep.mubr.msk.bf16.mxu0 %vm8437_vm0, %v5124_v62  ;;  %5301 = vmatprep.subr.bf16.mxu1 %v6070_v7 }
 0x133   :  { %5302 = vmatpush3.bf16.msra.mxu1 %v6071_v59  ;;  %v6080_v59 = vld [vmem:[%s8410_s2 + $0x68] sm:$0xff]  }
 0x134   :  { %5303 = vmatprep.subr.bf16.mxu1 %v6072_v60 }
 0x139   :  { %1874 = vmatmul.mubr.bf16.gmra.mrb[4].mxu0 %v5123_v63 }
 0x13a   :  { %5167 = vmatprep.mubr.msk.bf16.mxu0 %vm8437_vm0, %v5126_v12  ;;  %v8454_v12 = vcombine.high %v6967_v0, %v6972_v16 }
 0x141   :  { %1882 = vmatmul.mubr.bf16.gmra.mrb[8].mxu0 %v5125_v13 }
 0x142   :  { %5168 = vmatprep.mubr.msk.bf16.mxu0 %vm8437_vm0, %v5128_v22  ;;  %v8455_v22 = vcombine.low %v6967_v0, %v6972_v16 }
 0x149   :  { %1890 = vmatmul.mubr.bf16.gmra.mrb[12].mxu0 %v5127_v29 }
 0x14a   :  { %5169 = vmatprep.mubr.msk.bf16.mxu0 %vm8437_vm0, %v5130_v41 }
 0x151   :  { %1898 = vmatmul.mubr.bf16.gmra.mrb[16].mxu0 %v5129_v44 }
 0x152   :  { %5170 = vmatprep.mubr.msk.bf16.mxu0 %vm8437_vm0, %v5132_v15 }
 0x159   :  { %1906 = vmatmul.mubr.bf16.gmra.mrb[20].mxu0 %v5131_v18 }
 0x15a   :  { %5171 = vmatprep.mubr.msk.bf16.mxu0 %vm8437_vm0, %v5134_v58 }
 0x160   :  { %v7099_v61 = vpop.f32.mrb[0].mxu1 }
 0x161   :  { %1914 = vmatmul.mubr.bf16.gmra.mrb[24].mxu0 %v5133_v32  ;;  %v448_v9 = vpop.f32.mrb[1].mxu1 }
 0x162   :  { %5172 = vmatprep.mubr.msk.bf16.mxu0 %vm8437_vm0, %v5136_v35  ;;  %v7105_v38 = vpop.f32.mrb[2].mxu1 }
 0x163   :  { %v451_v45 = vpop.f32.mrb[3].mxu1 }
 0x169   :  { %1922 = vmatmul.mubr.bf16.gmra.mrb[28].mxu0 %v5135_v39 }
 0x16a   :  { %5173 = vmatprep.mubr.msk.bf16.mxu0 %vm8437_vm0, %v5138_v50 }
 0x171   :  { %1930 = vmatmul.mubr.bf16.gmra.mrb[32].mxu0 %v5137_v56 }
 0x172   :  { %5174 = vmatprep.mubr.msk.bf16.mxu0 %vm8437_vm0, %v5140_v27 }
 0x179   :  { %1938 = vmatmul.mubr.bf16.gmra.mrb[36].mxu0 %v5139_v31 }
 0x17a   :  { %5175 = vmatprep.mubr.msk.bf16.mxu0 %vm8437_vm0, %v5142_v2 }
 0x181   :  { %1946 = vmatmul.mubr.bf16.gmra.mrb[40].mxu0 %v5141_v5 }
 0x182   :  { %5176 = vmatprep.mubr.msk.bf16.mxu0 %vm8437_vm0, %v8450_v8 }
 0x186   :  { %v7110_v53 = vpop.f32.mrb[4].mxu1 }
 0x187   :  { %v456_v57 = vpop.f32.mrb[5].mxu1 }
 0x188   :  { %v7116_v62 = vpop.f32.mrb[6].mxu1 }
 0x189   :  { %1954 = vmatmul.mubr.bf16.gmra.mrb[44].mxu0 %v8451_v52  ;;  %v459_v63 = vpop.f32.mrb[7].mxu1  ;;  %v6074_v52 = vld [vmem:[%s8410_s2 + $0x50] sm:$0xff]  }
 0x18a   :  { %5177 = vmatprep.mubr.msk.bf16.mxu0 %vm8437_vm0, %v8452_v54  ;;  %v6075_v54 = vld [vmem:[%s8410_s2 + $0x10] sm:$0xff]  }
 0x18e   :  { %v7121_v4 = vpop.f32.mrb[8].mxu1 }
 0x18f   :  { %v464_v13 = vpop.f32.mrb[9].mxu1 }
 0x190   :  { %v7127_v20 = vpop.f32.mrb[10].mxu1 }
 0x191   :  { %1962 = vmatmul.mubr.bf16.gmra.mrb[48].mxu0 %v8453_v3  ;;  %v467_v21 = vpop.f32.mrb[11].mxu1 }
 0x192   :  { %5178 = vmatprep.mubr.msk.bf16.mxu0 %vm8437_vm0, %v8454_v12 }
 0x196   :  { %v7132_v29 = vpop.f32.mrb[12].mxu1 }
 0x197   :  { %v472_v30 = vpop.f32.mrb[13].mxu1 }
 0x198   :  { %v7138_v41 = vpop.f32.mrb[14].mxu1 }
 0x199   :  { %1970 = vmatmul.mubr.bf16.gmra.mrb[52].mxu0 %v8455_v22  ;;  %v475_v44 = vpop.f32.mrb[15].mxu1 }
 0x19a   :  { %5179 = vmatprep.mubr.msk.bf16.mxu0 %vm8437_vm0, %v5150_v37  ;;  %v6073_v37 = vld [vmem:[%s8410_s2 + $0x8] sm:$0xff]  }
 0x19b   :  { %5304 = vmatpush3.bf16.msra.mxu1 %v6073_v37 }
 0x19c   :  { %5305 = vmatprep.subr.bf16.mxu1 %v6074_v52  ;;  %v6083_v52 = vld [vmem:[%s8410_s2 + $0x30] sm:$0xff]  }
 0x19e   :  { %v7140_v6 = vpop.f32.mrb[16].mxu1 }
 0x19f   :  { %v480_v0 = vpop.f32.mrb[17].mxu1  ;;  %5306 = vmatpush3.bf16.msra.mxu1 %v6075_v54 }
 0x1a0   :  { %v7143_v15 = vpop.f32.mrb[18].mxu1  ;;  %v6077_v0 = vld [vmem:[%s8410_s2 + $0x18] sm:$0xff]  }
 0x1a1   :  { %1978 = vmatmul.mubr.bf16.gmra.mrb[56].mxu0 %v5149_v46  ;;  %v483_v18 = vpop.f32.mrb[19].mxu1 }
 0x1a2   :  { %5180 = vmatprep.mubr.msk.bf16.mxu0 %vm8437_vm0, %v5152_v19  ;;  %v6076_v19 = vld [vmem:[%s8410_s2 + $0x58] sm:$0xff]  }
 0x1a3   :  { %5307 = vmatprep.subr.bf16.mxu1 %v6076_v19 }
 0x1a4   :  { %5308 = vmatpush3.bf16.msra.mxu1 %v6077_v0 }
 0x1a6   :  { %v7145_v24 = vpop.f32.mrb[20].mxu1 }
 0x1a7   :  { %v488_v58 = vpop.f32.mrb[21].mxu1 }
 0x1a8   :  { %v7147_v32 = vpop.f32.mrb[22].mxu1 }
 0x1a9   :  { %1986 = vmatmul.mubr.bf16.gmra.mrb[60].mxu0 %v5151_v17  ;;  %v491_v34 = vpop.f32.mrb[23].mxu1 }
 0x1aa   :  { %v6078_v34 = vld [vmem:[%s8410_s2 + $0x60] sm:$0xff]  }
 0x1ab   :  { %5309 = vmatprep.subr.bf16.mxu1 %v6078_v34 }
 0x1ae   :  { %v7149_v40 = vpop.f32.mrb[24].mxu1 }
 0x1af   :  { %v496_v35 = vpop.f32.mrb[25].mxu1 }
 0x1b0   :  { %v7151_v39 = vpop.f32.mrb[26].mxu1  ;;  %v6079_v35 = vld [vmem:[%s8410_s2 + $0x20] sm:$0xff]  }
 0x1b1   :  { %v499_v43 = vpop.f32.mrb[27].mxu1  ;;  %5310 = vmatpush3.bf16.msra.mxu1 %v6079_v35 }
 0x1b2   :  { %5311 = vmatprep.subr.bf16.mxu1 %v6080_v59 }
 0x1b6   :  { %v7153_v47 = vpop.f32.mrb[28].mxu1 }
 0x1b7   :  { %v504_v50 = vpop.f32.mrb[29].mxu1 }
 0x1b8   :  { %v7155_v56 = vpop.f32.mrb[30].mxu1  ;;  %v8456_v50 = vmov 0  }
 0x1b9   :  { %v507_v51 = vpop.f32.mrb[31].mxu1  ;;  %2093 = vst.msk [vmem:[#allocation2 + $0x78] sm:$0xf0] %vm2092_vm1, %v8456_v50  ;;  %3332 = vst.msk [vmem:[#allocation3 + $0x38] sm:$0xf0] %vm2092_vm1, %v8456_v50 }
 0x1ba   :  { %4044 = vst.msk [vmem:[#allocation4 + $0x18] sm:$0xf0] %vm2092_vm1, %v8456_v50 }
 0x1bb   :  { %2091 = vst.msk [vmem:[#allocation2] sm:$0xf] %vm2090_vm2, %v8456_v50  ;;  %3331 = vst.msk [vmem:[#allocation3] sm:$0xf] %vm2090_vm2, %v8456_v50 }
 0x1bc   :  { %4043 = vst.msk [vmem:[#allocation4] sm:$0xf] %vm2090_vm2, %v8456_v50 }
 0x1be   :  { %v7157_v55 = vpop.f32.mrb[32].mxu1 }
 0x1bf   :  { %v512_v27 = vpop.f32.mrb[33].mxu1 }
 0x1c0   :  { %v7159_v31 = vpop.f32.mrb[34].mxu1 }
 0x1c1   :  { %v515_v42 = vpop.f32.mrb[35].mxu1 }
 0x1c6   :  { %v7161_v48 = vpop.f32.mrb[36].mxu1 }
 0x1c7   :  { %v520_v2 = vpop.f32.mrb[37].mxu1 }
 0x1c8   :  { %v7163_v5 = vpop.f32.mrb[38].mxu1 }
 0x1c9   :  { %v523_v10 = vpop.f32.mrb[39].mxu1 }
 0x1ce   :  { %v7171_v1 = vpop.f32.mrb[40].mxu1 }
 0x1cf   :  { %v528_v25 = vpop.f32.mrb[41].mxu1 }
 0x1d0   :  { %v7173_v26 = vpop.f32.mrb[42].mxu1 }
 0x1d1   :  { %v531_v16 = vpop.f32.mrb[43].mxu1 }
 0x1d6   :  { %v7175_v28 = vpop.f32.mrb[44].mxu1 }
 0x1d7   :  { %v536_v36 = vpop.f32.mrb[45].mxu1 }
 0x1d8   :  { %v7183_v46 = vpop.f32.mrb[46].mxu1 }
 0x1d9   :  { %v539_v11 = vpop.f32.mrb[47].mxu1 }
 0x1de   :  { %v7185_v14 = vpop.f32.mrb[48].mxu1 }
 0x1df   :  { %v544_v23 = vpop.f32.mrb[49].mxu1 }
 0x1e0   :  { %v7187_v49 = vpop.f32.mrb[50].mxu1 }
 0x1e1   :  { %v547_v8 = vpop.f32.mrb[51].mxu1 }
 0x1e6   :  { %v7189_v9 = vpop.f32.mrb[52].mxu1 }
 0x1e7   :  { %v552_v45 = vpop.f32.mrb[53].mxu1 }
 0x1e8   :  { %v7197_v57 = vpop.f32.mrb[54].mxu1 }
 0x1e9   :  { %v555_v63 = vpop.f32.mrb[55].mxu1 }
 0x1ea   :  { %v6084_v63 = vld [vmem:[%s8410_s2 + $0x78] sm:$0xff]  }
 0x1ee   :  { %v7199_v3 = vpop.f32.mrb[56].mxu1 }
 0x1ef   :  { %v560_v12 = vpop.f32.mrb[57].mxu1 }
 0x1f0   :  { %v7201_v13 = vpop.f32.mrb[58].mxu1 }
 0x1f1   :  { %v563_v21 = vpop.f32.mrb[59].mxu1 }
 0x1f6   :  { %v7203_v22 = vpop.f32.mrb[60].mxu1 }
 0x1f7   :  { %v568_v30 = vpop.f32.mrb[61].mxu1 }
 0x1f8   :  { %v7205_v33 = vpop.f32.mrb[62].mxu1 }
 0x1f9   :  { %v571_v44 = vpop.f32.mrb[63].mxu1 }
 0x204   :  { %v1867_v18 = vpop.f32.mrb[0].mxu0 }
 0x205   :  { %v5727_v17 = vadd.f32 %v1867_v18, %v7099_v61  ;;  %v1869_v58 = vpop.f32.mrb[1].mxu0 }
 0x206   :  { %v1870_v43 = vpop.f32.mrb[2].mxu0  ;;  %v6085_v58 = vld [vmem:[%s8410_s2 + $0x38] sm:$0xff]  }
 0x207   :  { %v5728_v51 = vadd.f32 %v1870_v43, %v7105_v38  ;;  %v1872_v61 = vpop.f32.mrb[3].mxu0  ;;  %v2026_v42 = vmul.f32 0.2, %v5727_v17  ;;  %v6081_v38 = vld [vmem:[%s8410_s2 + $0x28] sm:$0xff]  }
 0x208   :  { %5312 = vmatpush3.bf16.msra.mxu1 %v6081_v38 }
 0x209   :  { %v2027_v25 = vmul.f32 0.2, %v5728_v51  ;;  %v2058_v37 = vmax.f32 %v5727_v17, %v2026_v42 }
 0x20b   :  { %v2059_v23 = vmax.f32 %v5728_v51, %v2027_v25 }
 0x20c   :  { %v1875_v27 = vpop.f32.mrb[4].mxu0 }
 0x20d   :  { %v5729_v2 = vadd.f32 %v1875_v27, %v7110_v53  ;;  %v1877_v7 = vpop.f32.mrb[5].mxu0 }
 0x20e   :  { %v1878_v10 = vpop.f32.mrb[6].mxu0 }
 0x20f   :  { %v2028_v16 = vmul.f32 0.2, %v5729_v2  ;;  %v5730_v36 = vadd.f32 %v1878_v10, %v7116_v62  ;;  %v1880_v60 = vpop.f32.mrb[7].mxu0  ;;  %v6082_v62 = vld [vmem:[%s8410_s2 + $0x70] sm:$0xff]  }
 0x210   :  { %5313 = vmatprep.subr.bf16.mxu1 %v6082_v62 }
 0x211   :  { %v2060_v11 = vmax.f32 %v5729_v2, %v2028_v16  ;;  %v2029_v53 = vmul.f32 0.2, %v5730_v36  ;;  %5314 = vmatpush3.bf16.msra.mxu1 %v6083_v52 }
 0x212   :  { %5315 = vmatprep.subr.bf16.mxu1 %v6084_v63 }
 0x213   :  { %v2061_v8 = vmax.f32 %v5730_v36, %v2029_v53  ;;  %v2143_v45 = vpack.c.bf16 %v2060_v11, %v2058_v37 }
 0x214   :  { %v1883_v54 = vpop.f32.mrb[8].mxu0 }
 0x215   :  { %v2094_v12 = vpack.c.bf16 %v2061_v8, %v2059_v23  ;;  %v5731_v21 = vadd.f32 %v1883_v54, %v7121_v4  ;;  %v1885_v30 = vpop.f32.mrb[9].mxu0  ;;  %5316 = vmatpush3.bf16.msra.mxu1 %v6085_v58 }
 0x216   :  { %v1886_v44 = vpop.f32.mrb[10].mxu0 }
 0x217   :  { %v2111_v19 = vrot.slane %v2094_v12, 4  ;;  %2193 = vst.msk [vmem:[#allocation2 + $0x8] sm:$0xff] %vm8437_vm0, %v2094_v12  ;;  %v2030_v0 = vmul.f32 0.2, %v5731_v21  ;;  %v5732_v18 = vadd.f32 %v1886_v44, %v7127_v20  ;;  %v1888_v17 = vpop.f32.mrb[11].mxu0 }
 0x219   :  { %v2062_v34 = vmax.f32 %v5731_v21, %v2030_v0  ;;  %2135 = vst.msk [vmem:[#allocation2] sm:$0xf0] %vm8435_vm3, %v2111_v19  ;;  %v2031_v61 = vmul.f32 0.2, %v5732_v18 }
 0x21b   :  { %v2201_v4 = vpack.c.bf16 %v2062_v34, %v2060_v11  ;;  %v2063_v10 = vmax.f32 %v5732_v18, %v2031_v61 }
 0x21c   :  { %v1891_v35 = vpop.f32.mrb[12].mxu0 }
 0x21d   :  { %v5733_v43 = vadd.f32 %v1891_v35, %v7132_v29  ;;  %2217 = vrot.lane.b32.xlu0 %v2201_v4, %s6129_s11  ;;  %v1893_v50 = vpop.f32.mrb[13].mxu0 }
 0x21e   :  { %v1894_v51 = vpop.f32.mrb[14].mxu0 }
 0x21f   :  { %v2032_v20 = vmul.f32 0.2, %v5733_v43  ;;  %v5734_v27 = vadd.f32 %v1894_v51, %v7138_v41  ;;  %v1896_v42 = vpop.f32.mrb[15].mxu0 }
 0x221   :  { %v2064_v2 = vmax.f32 %v5733_v43, %v2032_v20  ;;  %v2033_v7 = vmul.f32 0.2, %v5734_v27  ;;  %2159 = vrot.lane.b32.xlu0 %v2143_v45, %s6129_s11 }
 0x223   :  { %v2065_v59 = vmax.f32 %v5734_v27, %v2033_v7  ;;  %v2144_v25 = vpack.c.bf16 %v2064_v2, %v2062_v34 }
 0x224   :  { %v1899_v16 = vpop.f32.mrb[16].mxu0 }
 0x225   :  { %v2095_v36 = vpack.c.bf16 %v2065_v59, %v2063_v10  ;;  %v5735_v29 = vadd.f32 %v1899_v16, %v7140_v6  ;;  %v1901_v60 = vpop.f32.mrb[17].mxu0 }
 0x226   :  { %v1902_v38 = vpop.f32.mrb[18].mxu0 }
 0x227   :  { %v2112_v37 = vrot.slane %v2095_v36, 4  ;;  %2194 = vst.msk [vmem:[#allocation2 + $0x18] sm:$0xff] %vm8437_vm0, %v2095_v36  ;;  %v2034_v11 = vmul.f32 0.2, %v5735_v29  ;;  %v5736_v41 = vadd.f32 %v1902_v38, %v7143_v15  ;;  %v1904_v53 = vpop.f32.mrb[19].mxu0 }
 0x229   :  { %v2066_v62 = vmax.f32 %v5735_v29, %v2034_v11  ;;  %v2113_v23 = vsel %vm8434_vm4, %v2111_v19, %v2112_v37  ;;  %v2035_v63 = vmul.f32 0.2, %v5736_v41 }
 0x22a   :  { %2136 = vst.msk [vmem:[#allocation2 + $0x10] sm:$0xff] %vm8437_vm0, %v2113_v23 }
 0x22b   :  { %v2202_v8 = vpack.c.bf16 %v2066_v62, %v2064_v2  ;;  %v2067_v19 = vmax.f32 %v5736_v41, %v2035_v63 }
 0x22c   :  { %v1907_v45 = vpop.f32.mrb[20].mxu0 }
 0x22d   :  { %v5737_v52 = vadd.f32 %v1907_v45, %v7145_v24  ;;  %2219 = vrot.lane.b32.xlu1 %v2202_v8, %s6129_s11  ;;  %v1909_v6 = vpop.f32.mrb[21].mxu0 }
 0x22e   :  { %v1910_v54 = vpop.f32.mrb[22].mxu0 }
 0x22f   :  { %v2036_v12 = vmul.f32 0.2, %v5737_v52  ;;  %v5738_v21 = vadd.f32 %v1910_v54, %v7147_v32  ;;  %v1912_v30 = vpop.f32.mrb[23].mxu0 }
 0x231   :  { %v2068_v15 = vmax.f32 %v5737_v52, %v2036_v12  ;;  %v2037_v44 = vmul.f32 0.2, %v5738_v21  ;;  %2161 = vrot.lane.b32.xlu1 %v2144_v25, %s6129_s11 }
 0x233   :  { %v2069_v0 = vmax.f32 %v5738_v21, %v2037_v44  ;;  %v2145_v18 = vpack.c.bf16 %v2068_v15, %v2066_v62 }
 0x234   :  { %v1915_v17 = vpop.f32.mrb[24].mxu0 }
 0x235   :  { %v2096_v58 = vpack.c.bf16 %v2069_v0, %v2067_v19  ;;  %v5739_v24 = vadd.f32 %v1915_v17, %v7149_v40  ;;  %2163 = vrot.lane.b32.xlu1 %v2145_v18, %s6129_s11  ;;  %v1917_v34 = vpop.f32.mrb[25].mxu0 }
 0x236   :  { %v1918_v4 = vpop.f32.mrb[26].mxu0 }
 0x237   :  { %v2114_v35 = vrot.slane %v2096_v58, 4  ;;  %2195 = vst.msk [vmem:[#allocation2 + $0x28] sm:$0xff] %vm8437_vm0, %v2096_v58  ;;  %v2038_v32 = vmul.f32 0.2, %v5739_v24  ;;  %v5740_v43 = vadd.f32 %v1918_v4, %v7151_v39  ;;  %v1920_v50 = vpop.f32.mrb[27].mxu0 }
 0x239   :  { %v2070_v51 = vmax.f32 %v5739_v24, %v2038_v32  ;;  %v2115_v61 = vsel %vm8434_vm4, %v2112_v37, %v2114_v35  ;;  %v2039_v7 = vmul.f32 0.2, %v5740_v43 }
 0x23a   :  { %2137 = vst.msk [vmem:[#allocation2 + $0x20] sm:$0xff] %vm8437_vm0, %v2115_v61 }
 0x23b   :  { %v2203_v20 = vpack.c.bf16 %v2070_v51, %v2068_v15  ;;  %v2071_v36 = vmax.f32 %v5740_v43, %v2039_v7 }
 0x23c   :  { %v1923_v27 = vpop.f32.mrb[28].mxu0 }
 0x23d   :  { %v5741_v40 = vadd.f32 %v1923_v27, %v7153_v47  ;;  %2221 = vrot.lane.b32.xlu0 %v2203_v20, %s6129_s11  ;;  %v1925_v42 = vpop.f32.mrb[29].mxu0 }
 0x23e   :  { %v1926_v2 = vpop.f32.mrb[30].mxu0 }
 0x23f   :  { %v2040_v10 = vmul.f32 0.2, %v5741_v40  ;;  %v5742_v59 = vadd.f32 %v1926_v2, %v7155_v56  ;;  %v1928_v25 = vpop.f32.mrb[31].mxu0 }
 0x241   :  { %v2072_v39 = vmax.f32 %v5741_v40, %v2040_v10  ;;  %v2041_v16 = vmul.f32 0.2, %v5742_v59 }
 0x243   :  { %v2073_v29 = vmax.f32 %v5742_v59, %v2041_v16  ;;  %v2146_v60 = vpack.c.bf16 %v2072_v39, %v2070_v51 }
 0x244   :  { %v1931_v38 = vpop.f32.mrb[32].mxu0 }
 0x245   :  { %v2097_v37 = vpack.c.bf16 %v2073_v29, %v2071_v36  ;;  %v5743_v11 = vadd.f32 %v1931_v38, %v7157_v55  ;;  %2165 = vrot.lane.b32.xlu1 %v2146_v60, %s6129_s11  ;;  %v1933_v47 = vpop.f32.mrb[33].mxu0 }
 0x246   :  { %v1934_v41 = vpop.f32.mrb[34].mxu0 }
 0x247   :  { %v2116_v53 = vrot.slane %v2097_v37, 4  ;;  %2196 = vst.msk [vmem:[#allocation2 + $0x38] sm:$0xff] %vm8437_vm0, %v2097_v37  ;;  %v2042_v62 = vmul.f32 0.2, %v5743_v11  ;;  %v5744_v56 = vadd.f32 %v1934_v41, %v7159_v31  ;;  %v1936_v23 = vpop.f32.mrb[35].mxu0 }
 0x249   :  { %v2074_v8 = vmax.f32 %v5743_v11, %v2042_v62  ;;  %v2117_v45 = vsel %vm8434_vm4, %v2114_v35, %v2116_v53  ;;  %v2043_v12 = vmul.f32 0.2, %v5744_v56 }
 0x24a   :  { %2138 = vst.msk [vmem:[#allocation2 + $0x30] sm:$0xff] %vm8437_vm0, %v2117_v45 }
 0x24b   :  { %v2204_v52 = vpack.c.bf16 %v2074_v8, %v2072_v39  ;;  %v2075_v19 = vmax.f32 %v5744_v56, %v2043_v12 }
 0x24c   :  { %v1939_v6 = vpop.f32.mrb[36].mxu0 }
 0x24d   :  { %v5745_v55 = vadd.f32 %v1939_v6, %v7161_v48  ;;  %2223 = vrot.lane.b32.xlu0 %v2204_v52, %s6129_s11  ;;  %v1941_v54 = vpop.f32.mrb[37].mxu0 }
 0x24e   :  { %v1942_v63 = vpop.f32.mrb[38].mxu0 }
 0x24f   :  { %v2044_v21 = vmul.f32 0.2, %v5745_v55  ;;  %v5746_v30 = vadd.f32 %v1942_v63, %v7163_v5  ;;  %v1944_v15 = vpop.f32.mrb[39].mxu0 }
 0x251   :  { %v2076_v31 = vmax.f32 %v5745_v55, %v2044_v21  ;;  %v2045_v44 = vmul.f32 0.2, %v5746_v30 }
 0x253   :  { %v2077_v0 = vmax.f32 %v5746_v30, %v2045_v44  ;;  %v2147_v18 = vpack.c.bf16 %v2076_v31, %v2074_v8 }
 0x254   :  { %v1947_v17 = vpop.f32.mrb[40].mxu0 }
 0x255   :  { %v2098_v58 = vpack.c.bf16 %v2077_v0, %v2075_v19  ;;  %v5747_v24 = vadd.f32 %v1947_v17, %v7171_v1  ;;  %2167 = vrot.lane.b32.xlu1 %v2147_v18, %s6129_s11  ;;  %v1949_v48 = vpop.f32.mrb[41].mxu0 }
 0x256   :  { %v1950_v34 = vpop.f32.mrb[42].mxu0 }
 0x257   :  { %v2118_v4 = vrot.slane %v2098_v58, 4  ;;  %2197 = vst.msk [vmem:[#allocation2 + $0x48] sm:$0xff] %vm8437_vm0, %v2098_v58  ;;  %v2046_v35 = vmul.f32 0.2, %v5747_v24  ;;  %v5748_v5 = vadd.f32 %v1950_v34, %v7173_v26  ;;  %v1952_v32 = vpop.f32.mrb[43].mxu0 }
 0x259   :  { %v2078_v43 = vmax.f32 %v5747_v24, %v2046_v35  ;;  %v2119_v50 = vsel %vm8434_vm4, %v2116_v53, %v2118_v4  ;;  %v2047_v40 = vmul.f32 0.2, %v5748_v5 }
 0x25a   :  { %2139 = vst.msk [vmem:[#allocation2 + $0x40] sm:$0xff] %vm8437_vm0, %v2119_v50 }
 0x25b   :  { %v2205_v51 = vpack.c.bf16 %v2078_v43, %v2076_v31  ;;  %v2079_v59 = vmax.f32 %v5748_v5, %v2047_v40 }
 0x25c   :  { %v1955_v61 = vpop.f32.mrb[44].mxu0 }
 0x25d   :  { %v5749_v1 = vadd.f32 %v1955_v61, %v7175_v28  ;;  %2225 = vrot.lane.b32.xlu0 %v2205_v51, %s6129_s11  ;;  %v1957_v20 = vpop.f32.mrb[45].mxu0 }
 0x25e   :  { %v1958_v27 = vpop.f32.mrb[46].mxu0 }
 0x25f   :  { %v2048_v42 = vmul.f32 0.2, %v5749_v1  ;;  %v5750_v2 = vadd.f32 %v1958_v27, %v7183_v46  ;;  %v1960_v7 = vpop.f32.mrb[47].mxu0 }
 0x261   :  { %v2080_v26 = vmax.f32 %v5749_v1, %v2048_v42  ;;  %v2049_v10 = vmul.f32 0.2, %v5750_v2 }
 0x263   :  { %v2081_v25 = vmax.f32 %v5750_v2, %v2049_v10  ;;  %v2148_v39 = vpack.c.bf16 %v2080_v26, %v2078_v43 }
 0x264   :  { %v1963_v16 = vpop.f32.mrb[48].mxu0 }
 0x265   :  { %v2099_v36 = vpack.c.bf16 %v2081_v25, %v2079_v59  ;;  %v5751_v29 = vadd.f32 %v1963_v16, %v7185_v14  ;;  %2169 = vrot.lane.b32.xlu1 %v2148_v39, %s6129_s11  ;;  %v1965_v28 = vpop.f32.mrb[49].mxu0 }
 0x266   :  { %v1966_v60 = vpop.f32.mrb[50].mxu0 }
 0x267   :  { %v2120_v38 = vrot.slane %v2099_v36, 4  ;;  %2198 = vst.msk [vmem:[#allocation2 + $0x58] sm:$0xff] %vm8437_vm0, %v2099_v36  ;;  %v2050_v37 = vmul.f32 0.2, %v5751_v29  ;;  %v5752_v46 = vadd.f32 %v1966_v60, %v7187_v49  ;;  %v1968_v11 = vpop.f32.mrb[51].mxu0 }
 0x269   :  { %v2082_v47 = vmax.f32 %v5751_v29, %v2050_v37  ;;  %v2121_v41 = vsel %vm8434_vm4, %v2118_v4, %v2120_v38  ;;  %v2051_v8 = vmul.f32 0.2, %v5752_v46 }
 0x26a   :  { %2140 = vst.msk [vmem:[#allocation2 + $0x50] sm:$0xff] %vm8437_vm0, %v2121_v41 }
 0x26b   :  { %v2206_v53 = vpack.c.bf16 %v2082_v47, %v2080_v26  ;;  %v2083_v54 = vmax.f32 %v5752_v46, %v2051_v8 }
 0x26c   :  { %v1971_v62 = vpop.f32.mrb[52].mxu0 }
 0x26d   :  { %v5753_v14 = vadd.f32 %v1971_v62, %v7189_v9  ;;  %2227 = vrot.lane.b32.xlu0 %v2206_v53, %s6129_s11  ;;  %v1973_v56 = vpop.f32.mrb[53].mxu0 }
 0x26e   :  { %v1974_v23 = vpop.f32.mrb[54].mxu0 }
 0x26f   :  { %v2052_v45 = vmul.f32 0.2, %v5753_v14  ;;  %v5754_v52 = vadd.f32 %v1974_v23, %v7197_v57  ;;  %v1976_v6 = vpop.f32.mrb[55].mxu0 }
 0x271   :  { %v2084_v49 = vmax.f32 %v5753_v14, %v2052_v45  ;;  %v2053_v55 = vmul.f32 0.2, %v5754_v52 }
 0x273   :  { %v2085_v63 = vmax.f32 %v5754_v52, %v2053_v55  ;;  %v2149_v12 = vpack.c.bf16 %v2084_v49, %v2082_v47 }
 0x274   :  { %v1979_v21 = vpop.f32.mrb[56].mxu0 }
 0x275   :  { %v2100_v30 = vpack.c.bf16 %v2085_v63, %v2083_v54  ;;  %v5755_v15 = vadd.f32 %v1979_v21, %v7199_v3  ;;  %2171 = vrot.lane.b32.xlu1 %v2149_v12, %s6129_s11  ;;  %v1981_v9 = vpop.f32.mrb[57].mxu0  ;;  %v2581_v63 = vlaneseq  ;;  %v6130_v12 = vmov 0.0|0.0  }
 0x276   :  { %v1982_v31 = vpop.f32.mrb[58].mxu0  ;;  %5649 = vmatprep.subr.bf16.mxu1 %v6130_v12 }
 0x277   :  { %v2122_v44 = vrot.slane %v2100_v30, 4  ;;  %2199 = vst.msk [vmem:[#allocation2 + $0x68] sm:$0xff] %vm8437_vm0, %v2100_v30  ;;  %v2054_v19 = vmul.f32 0.2, %v5755_v15  ;;  %v5756_v57 = vadd.f32 %v1982_v31, %v7201_v13  ;;  %v1984_v0 = vpop.f32.mrb[59].mxu0  ;;  %v7331_v21 = vshrl.u32 %v2581_v63, 7 }
 0x278   :  { %v7333_v30 = vand.u32 127, %v2581_v63 }
 0x279   :  { %v2086_v18 = vmax.f32 %v5755_v15, %v2054_v19  ;;  %v2055_v17 = vmul.f32 0.2, %v5756_v57  ;;  %v2123_v58 = vsel %vm8434_vm4, %v2120_v38, %v2122_v44  ;;  %v7336_v15 = vadd.s32 8, %v7331_v21 }
 0x27a   :  { %2141 = vst.msk [vmem:[#allocation2 + $0x60] sm:$0xff] %vm8437_vm0, %v2123_v58  ;;  %v2596_v9 = vand.u32 3, %v7331_v21  ;;  %v7362_v0 = vadd.s32 16, %v7331_v21 }
 0x27b   :  { %v2087_v24 = vmax.f32 %v5756_v57, %v2055_v17  ;;  %v2207_v48 = vpack.c.bf16 %v2086_v18, %v2084_v49  ;;  %v2603_v31 = vand.u32 3, %v7336_v15  ;;  %v8425_v57 = vmov 1.0|1.0  }
 0x27c   :  { %v1987_v3 = vpop.f32.mrb[60].mxu0  ;;  %vm7341_vm7 = vcmp.eq.s32.totalorder %v2596_v9, %v7333_v30  ;;  %v2610_v17 = vand.u32 3, %v7362_v0 }
 0x27d   :  { %v2101_v34 = vpack.c.bf16 %v2087_v24, %v2087_v24  ;;  %v5757_v4 = vadd.f32 %v1987_v3, %v7203_v22  ;;  %2229 = vrot.lane.b32.xlu0 %v2207_v48, %s6129_s11  ;;  %v1989_v35 = vpop.f32.mrb[61].mxu0  ;;  %vm7346_vm8 = vcmp.eq.s32.totalorder %v2603_v31, %v7333_v30  ;;  %v7391_v3 = vadd.s32 32, %v7331_v21 }
 0x27e   :  { %v1990_v5 = vpop.f32.mrb[62].mxu0  ;;  %vm5650_vm9 = vmpackc.low %vm7346_vm8, %vm7341_vm7  ;;  %vm7370_vm10 = vcmp.eq.s32.totalorder %v2610_v17, %v7333_v30 }
 0x27f   :  { %v2124_v32 = vrot.slane %v2101_v34, 4  ;;  %v2056_v43 = vmul.f32 0.2, %v5757_v4  ;;  %v5758_v13 = vadd.f32 %v1990_v5, %v7205_v33  ;;  %v1992_v50 = vpop.f32.mrb[63].mxu0  ;;  %v7394_v34 = vadd.s32 40, %v7331_v21 }
 0x281   :  { %v2088_v51 = vmax.f32 %v5757_v4, %v2056_v43  ;;  %v2057_v61 = vmul.f32 0.2, %v5758_v13  ;;  %v2125_v1 = vsel %vm8434_vm4, %v2122_v44, %v2124_v32  ;;  %v2624_v4 = vand.u32 3, %v7391_v3 }
 0x282   :  { %2142 = vst.msk [vmem:[#allocation2 + $0x70] sm:$0xff] %vm8437_vm0, %v2125_v1  ;;  %v2631_v35 = vand.u32 3, %v7394_v34  ;;  %v7420_v43 = vadd.s32 48, %v7331_v21 }
 0x283   :  { %v2089_v20 = vmax.f32 %v5758_v13, %v2057_v61  ;;  %v2208_v27 = vpack.c.bf16 %v2088_v51, %v2088_v51  ;;  %v2150_v40 = vpack.c.bf16 %v2088_v51, %v2086_v18  ;;  %v7365_v18 = vadd.s32 24, %v7331_v21 }
 0x284   :  { %vm7399_vm13 = vcmp.eq.s32.totalorder %v2624_v4, %v7333_v30  ;;  %vm7404_vm14 = vcmp.eq.s32.totalorder %v2631_v35, %v7333_v30  ;;  %v7423_v13 = vadd.s32 56, %v7331_v21  ;;  %v2638_v50 = vand.u32 3, %v7420_v43 }
 0x285   :  { %v2192_v42 = vpack.c.bf16 %v2089_v20, %v2087_v24  ;;  %2231 = vrot.lane.b32.xlu0 %v2208_v27, %s6129_s11  ;;  %2173 = vrot.lane.b32.xlu1 %v2150_v40, %s6129_s11  ;;  %v2617_v58 = vand.u32 3, %v7365_v18  ;;  %vm5656_vm15 = vmpackc.low %vm7404_vm14, %vm7399_vm13  ;;  %v8429_v20 = vmov 0.0   ;;  %v2866_v24 = vand.u32 3, %v7333_v30 }
 0x286   :  { %v2645_v51 = vand.u32 3, %v7423_v13  ;;  %vm7428_vm1 = vcmp.eq.s32.totalorder %v2638_v50, %v7333_v30 }
 0x287   :  { %2200 = vst.msk [vmem:[#allocation2 + $0x78] sm:$0xff] %vm8437_vm0, %v2192_v42  ;;  %vm7375_vm11 = vcmp.eq.s32.totalorder %v2617_v58, %v7333_v30  ;;  %vm2874_vm7 = vcmp.eq.s32.totalorder %v7331_v21, %v2866_v24  ;;  %v8427_v24 = vand.u32 7, %v7331_v21 }
 0x288   :  { %vm5653_vm12 = vmpackc.low %vm7375_vm11, %vm7370_vm10  ;;  %vm7433_vm2 = vcmp.eq.s32.totalorder %v2645_v51, %v7333_v30  ;;  %v2875_v48 = vsel %vm2874_vm7, 1.0, %v8429_v20 }
 0x289   :  { %vm7689_vm10 = vcmp.lt.s32.totalorder %v8427_v24, 2 }
 0x28f   :  { %v2218_v22 = vpop.permute.xlu0 %2217 }
 0x290   :  { %2241 = vst.msk [vmem:[#allocation2 + $0x8] sm:$0xff] %vm8421_vm5, %v2218_v22 }
 0x293   :  { %v2160_v33 = vpop.permute.xlu0 %2159 }
 0x294   :  { %2184 = vst.msk [vmem:[#allocation2] sm:$0xff] %vm8421_vm5, %v2160_v33 }
 0x297   :  { %v2251_v2 = vld [vmem:[#allocation2 + $0x8] sm:$0xff] }
 0x298   :  { %2426 = vmatprep.mubr.bf16.mxu1 %v2251_v2 }
 0x29b   :  { %v2250_v7 = vld [vmem:[#allocation2] sm:$0xff] }
 0x29c   :  { %2427 = vmatmul.mubr.bf16.vlgmr.msra.gmra.mrb[64].mxu1 %v2250_v7 }
 0x29d   :  { %5651 = vmatpush3.bf16.msk.msra.mxu1 %vm5650_vm9, %v8425_v57 }
 0x29e   :  { %5652 = vmatprep.subr.bf16.mxu1 %v6130_v12 }
 0x29f   :  { %v2220_v26 = vpop.permute.xlu1 %2219 }
 0x2a0   :  { %2242 = vst.msk [vmem:[#allocation2 + $0x18] sm:$0xff] %vm8421_vm5, %v2220_v26 }
 0x2a1   :  { %5654 = vmatpush3.bf16.msk.msra.mxu1 %vm5653_vm12, %v8425_v57 }
 0x2a2   :  { %5655 = vmatprep.subr.bf16.mxu1 %v6130_v12 }
 0x2a3   :  { %v2162_v10 = vpop.permute.xlu1 %2161 }
 0x2a4   :  { %2185 = vst.msk [vmem:[#allocation2 + $0x10] sm:$0xff] %vm8421_vm5, %v2162_v10 }
 0x2a5   :  { %5657 = vmatpush3.bf16.msk.msra.mxu1 %vm5656_vm15, %v8425_v57 }
 0x2a6   :  { %5658 = vmatprep.subr.bf16.mxu1 %v6130_v12 }
 0x2a7   :  { %v2164_v59 = vpop.permute.xlu1 %2163  ;;  %v2253_v25 = vld [vmem:[#allocation2 + $0x18] sm:$0xff] }
 0x2a8   :  { %2186 = vst.msk [vmem:[#allocation2 + $0x20] sm:$0xff] %vm8421_vm5, %v2164_v59  ;;  %2434 = vmatprep.mubr.bf16.mxu1 %v2253_v25 }
 0x2ab   :  { %v2252_v39 = vld [vmem:[#allocation2 + $0x10] sm:$0xff] }
 0x2ac   :  { %2435 = vmatmul.mubr.bf16.gmra.mrb[68].mxu1 %v2252_v39 }
 0x2af   :  { %v2222_v16 = vpop.permute.xlu0 %2221  ;;  %v2254_v28 = vld [vmem:[#allocation2 + $0x20] sm:$0xff] }
 0x2b0   :  { %2243 = vst.msk [vmem:[#allocation2 + $0x28] sm:$0xff] %vm8421_vm5, %v2222_v16 }
 0x2b7   :  { %v2166_v36 = vpop.permute.xlu1 %2165  ;;  %v2255_v29 = vld [vmem:[#allocation2 + $0x28] sm:$0xff] }
 0x2b8   :  { %2187 = vst.msk [vmem:[#allocation2 + $0x30] sm:$0xff] %vm8421_vm5, %v2166_v36  ;;  %2442 = vmatprep.mubr.bf16.mxu1 %v2255_v29 }
 0x2b9   :  { %2443 = vmatmul.mubr.bf16.gmra.mrb[72].mxu1 %v2254_v28 }
 0x2bf   :  { %v2224_v60 = vpop.permute.xlu0 %2223  ;;  %v2256_v46 = vld [vmem:[#allocation2 + $0x30] sm:$0xff] }
 0x2c0   :  { %2244 = vst.msk [vmem:[#allocation2 + $0x38] sm:$0xff] %vm8421_vm5, %v2224_v60 }
 0x2c7   :  { %v2168_v38 = vpop.permute.xlu1 %2167  ;;  %v2257_v37 = vld [vmem:[#allocation2 + $0x38] sm:$0xff] }
 0x2c8   :  { %2188 = vst.msk [vmem:[#allocation2 + $0x40] sm:$0xff] %vm8421_vm5, %v2168_v38  ;;  %2450 = vmatprep.mubr.bf16.mxu1 %v2257_v37 }
 0x2c9   :  { %2451 = vmatmul.mubr.bf16.gmra.mrb[76].mxu1 %v2256_v46 }
 0x2cf   :  { %v2226_v11 = vpop.permute.xlu0 %2225  ;;  %v2258_v53 = vld [vmem:[#allocation2 + $0x40] sm:$0xff] }
 0x2d0   :  { %2245 = vst.msk [vmem:[#allocation2 + $0x48] sm:$0xff] %vm8421_vm5, %v2226_v11 }
 0x2d7   :  { %v2170_v47 = vpop.permute.xlu1 %2169  ;;  %v2259_v41 = vld [vmem:[#allocation2 + $0x48] sm:$0xff] }
 0x2d8   :  { %2189 = vst.msk [vmem:[#allocation2 + $0x50] sm:$0xff] %vm8421_vm5, %v2170_v47  ;;  %2458 = vmatprep.mubr.bf16.mxu1 %v2259_v41 }
 0x2d9   :  { %2459 = vmatmul.mubr.bf16.gmra.mrb[80].mxu1 %v2258_v53 }
 0x2df   :  { %v2228_v62 = vpop.permute.xlu0 %2227  ;;  %v2260_v23 = vld [vmem:[#allocation2 + $0x50] sm:$0xff] }
 0x2e0   :  { %2246 = vst.msk [vmem:[#allocation2 + $0x58] sm:$0xff] %vm8421_vm5, %v2228_v62 }
 0x2e7   :  { %v2172_v14 = vpop.permute.xlu1 %2171  ;;  %v2261_v56 = vld [vmem:[#allocation2 + $0x58] sm:$0xff] }
 0x2e8   :  { %2190 = vst.msk [vmem:[#allocation2 + $0x60] sm:$0xff] %vm8421_vm5, %v2172_v14  ;;  %2466 = vmatprep.mubr.bf16.mxu1 %v2261_v56 }
 0x2e9   :  { %2467 = vmatmul.mubr.bf16.gmra.mrb[84].mxu1 %v2260_v23 }
 0x2ef   :  { %v2230_v8 = vpop.permute.xlu0 %2229  ;;  %v2262_v49 = vld [vmem:[#allocation2 + $0x60] sm:$0xff] }
 0x2f0   :  { %2247 = vst.msk [vmem:[#allocation2 + $0x68] sm:$0xff] %vm8421_vm5, %v2230_v8 }
 0x2f7   :  { %v2232_v45 = vpop.permute.xlu0 %2231  ;;  %v2174_v52 = vpop.permute.xlu1 %2173  ;;  %v2263_v6 = vld [vmem:[#allocation2 + $0x68] sm:$0xff] }
 0x2f8   :  { %2249 = vst.msk [vmem:[#allocation2 + $0x78] sm:$0xf] %vm8420_vm6, %v2232_v45  ;;  %2474 = vmatprep.mubr.bf16.mxu1 %v2263_v6  ;;  %vm5659_vm6 = vmpackc.low %vm7433_vm2, %vm7428_vm1 }
 0x2f9   :  { %2191 = vst.msk [vmem:[#allocation2 + $0x70] sm:$0xff] %vm8421_vm5, %v2174_v52  ;;  %2475 = vmatmul.mubr.bf16.gmra.mrb[88].mxu1 %v2262_v49  ;;  %vm8432_vm5 = vmmov 0  }
 0x2fa   :  { %5660 = vmatpush3.bf16.msk.msra.mxu1 %vm5659_vm6, %v8425_v57 }
 0x2fb   :  { %5661 = vmatprep.subr.bf16.mxu1 %v6130_v12 }
 0x2ff   :  { %v2265_v55 = vld [vmem:[#allocation2 + $0x78] sm:$0xff] }
 0x300   :  { %v2264_v54 = vld [vmem:[#allocation2 + $0x70] sm:$0xff]  ;;  %2482 = vmatprep.mubr.bf16.mxu1 %v2265_v55 }
 0x301   :  { %2483 = vmatmul.mubr.bf16.gmra.mrb[92].mxu1 %v2264_v54 }
 0x302   :  { %5517 = vmatprep.mubr.msk.f32.mxu1 %vm8432_vm5, %v8429_v20 }
 0x36f   :  { %v5317_v27 = vpop.f32.mrb[64].mxu1 }
 0x370   :  { %v5318_v40 = vpop.f32.mrb[65].mxu1 }
 0x371   :  { %v7450_v42 = vadd.f32 %v5318_v40, %v5317_v27  ;;  %v5320_v22 = vpop.f32.mrb[66].mxu1 }
 0x372   :  { %v5321_v33 = vpop.f32.mrb[67].mxu1 }
 0x373   :  { %v7452_v2 = vadd.f32 %v5321_v33, %v5320_v22  ;;  %v2528_v52 = vmul.f32 %v7450_v42, %v7450_v42  ;;  %v2491_v54 = vsel %vm8437_vm0, %v7450_v42, 0.0 }
 0x375   :  { %v2529_v56 = vmul.f32 %v7452_v2, %v7452_v2  ;;  %v2492_v6 = vsel %vm8437_vm0, %v7452_v2, 0.0  ;;  %v2544_v17 = vsel %vm8437_vm0, %v2528_v52, 0.0 }
 0x376   :  { %v2493_v31 = vadd.f32 %v2492_v6, %v2491_v54 }
 0x377   :  { %v2545_v63 = vsel %vm8437_vm0, %v2529_v56, 0.0 }
 0x378   :  { %v2546_v35 = vadd.f32 %v2545_v63, %v2544_v17 }
 0x37f   :  { %v5323_v7 = vpop.f32.mrb[68].mxu1 }
 0x380   :  { %v5324_v26 = vpop.f32.mrb[69].mxu1 }
 0x381   :  { %v7454_v10 = vadd.f32 %v5324_v26, %v5323_v7  ;;  %v5326_v59 = vpop.f32.mrb[70].mxu1 }
 0x382   :  { %v5327_v25 = vpop.f32.mrb[71].mxu1 }
 0x383   :  { %v7456_v39 = vadd.f32 %v5327_v25, %v5326_v59  ;;  %v2530_v49 = vmul.f32 %v7454_v10, %v7454_v10  ;;  %v2494_v9 = vsel %vm8437_vm0, %v7454_v10, 0.0 }
 0x384   :  { %v2495_v50 = vadd.f32 %v2494_v9, %v2493_v31 }
 0x385   :  { %v2547_v58 = vsel %vm8437_vm0, %v2530_v49, 0.0  ;;  %v2531_v4 = vmul.f32 %v7456_v39, %v7456_v39  ;;  %v2496_v51 = vsel %vm8437_vm0, %v7456_v39, 0.0 }
 0x386   :  { %v2548_v40 = vadd.f32 %v2547_v58, %v2546_v35  ;;  %v2497_v7 = vadd.f32 %v2496_v51, %v2495_v50 }
 0x387   :  { %v2549_v22 = vsel %vm8437_vm0, %v2531_v4, 0.0 }
 0x388   :  { %v2550_v25 = vadd.f32 %v2549_v22, %v2548_v40 }
 0x38c   :  { %v5329_v16 = vpop.f32.mrb[72].mxu1 }
 0x38d   :  { %v5330_v36 = vpop.f32.mrb[73].mxu1 }
 0x38e   :  { %v7458_v29 = vadd.f32 %v5330_v36, %v5329_v16  ;;  %v5332_v28 = vpop.f32.mrb[74].mxu1 }
 0x38f   :  { %v5333_v60 = vpop.f32.mrb[75].mxu1 }
 0x390   :  { %v7460_v38 = vadd.f32 %v5333_v60, %v5332_v28  ;;  %v2532_v27 = vmul.f32 %v7458_v29, %v7458_v29  ;;  %v2498_v33 = vsel %vm8437_vm0, %v7458_v29, 0.0 }
 0x391   :  { %v2499_v16 = vadd.f32 %v2498_v33, %v2497_v7 }
 0x392   :  { %v2551_v26 = vsel %vm8437_vm0, %v2532_v27, 0.0  ;;  %v2533_v59 = vmul.f32 %v7460_v38, %v7460_v38  ;;  %v2500_v36 = vsel %vm8437_vm0, %v7460_v38, 0.0 }
 0x393   :  { %v2501_v56 = vadd.f32 %v2500_v36, %v2499_v16 }
 0x39c   :  { %v5335_v37 = vpop.f32.mrb[76].mxu1 }
 0x39d   :  { %v5336_v46 = vpop.f32.mrb[77].mxu1 }
 0x39e   :  { %v7462_v11 = vadd.f32 %v5336_v46, %v5335_v37  ;;  %v5338_v47 = vpop.f32.mrb[78].mxu1  ;;  %v2552_v37 = vadd.f32 %v2551_v26, %v2550_v25 }
 0x39f   :  { %v5339_v41 = vpop.f32.mrb[79].mxu1 }
 0x3a0   :  { %v7464_v53 = vadd.f32 %v5339_v41, %v5338_v47  ;;  %v2534_v28 = vmul.f32 %v7462_v11, %v7462_v11  ;;  %v2553_v47 = vsel %vm8437_vm0, %v2533_v59, 0.0  ;;  %v2502_v41 = vsel %vm8437_vm0, %v7462_v11, 0.0 }
 0x3a1   :  { %v2554_v49 = vadd.f32 %v2553_v47, %v2552_v37  ;;  %v2503_v54 = vadd.f32 %v2502_v41, %v2501_v56 }
 0x3a2   :  { %v2535_v52 = vmul.f32 %v7464_v53, %v7464_v53  ;;  %v2504_v63 = vsel %vm8437_vm0, %v7464_v53, 0.0 }
 0x3a3   :  { %v2505_v4 = vadd.f32 %v2504_v63, %v2503_v54 }
 0x3a4   :  { %v2557_v17 = vsel %vm8437_vm0, %v2535_v52, 0.0 }
 0x3ac   :  { %v5341_v62 = vpop.f32.mrb[80].mxu1 }
 0x3ad   :  { %v5342_v14 = vpop.f32.mrb[81].mxu1 }
 0x3ae   :  { %v7468_v23 = vadd.f32 %v5342_v14, %v5341_v62  ;;  %v5344_v8 = vpop.f32.mrb[82].mxu1 }
 0x3af   :  { %v5345_v45 = vpop.f32.mrb[83].mxu1 }
 0x3b0   :  { %v7476_v55 = vadd.f32 %v5345_v45, %v5344_v8  ;;  %v2555_v45 = vsel %vm8437_vm0, %v2534_v28, 0.0  ;;  %v2536_v9 = vmul.f32 %v7468_v23, %v7468_v23  ;;  %v2506_v58 = vsel %vm8437_vm0, %v7468_v23, 0.0 }
 0x3b1   :  { %v2556_v31 = vadd.f32 %v2555_v45, %v2554_v49  ;;  %v2507_v27 = vadd.f32 %v2506_v58, %v2505_v4 }
 0x3b2   :  { %v2559_v35 = vsel %vm8437_vm0, %v2536_v9, 0.0  ;;  %v2537_v50 = vmul.f32 %v7476_v55, %v7476_v55  ;;  %v2508_v40 = vsel %vm8437_vm0, %v7476_v55, 0.0 }
 0x3b3   :  { %v2558_v51 = vadd.f32 %v2557_v17, %v2556_v31  ;;  %v2509_v59 = vadd.f32 %v2508_v40, %v2507_v27 }
 0x3b4   :  { %v2561_v7 = vsel %vm8437_vm0, %v2537_v50, 0.0 }
 0x3b5   :  { %v2560_v33 = vadd.f32 %v2559_v35, %v2558_v51 }
 0x3b7   :  { %v2562_v28 = vadd.f32 %v2561_v7, %v2560_v33 }
 0x3bc   :  { %v5347_v60 = vpop.f32.mrb[84].mxu1 }
 0x3bd   :  { %v5348_v46 = vpop.f32.mrb[85].mxu1 }
 0x3be   :  { %v7504_v62 = vadd.f32 %v5348_v46, %v5347_v60  ;;  %v5350_v14 = vpop.f32.mrb[86].mxu1 }
 0x3bf   :  { %v5351_v8 = vpop.f32.mrb[87].mxu1 }
 0x3c0   :  { %v7509_v6 = vadd.f32 %v5351_v8, %v5350_v14  ;;  %v2538_v22 = vmul.f32 %v7504_v62, %v7504_v62  ;;  %v2510_v26 = vsel %vm8437_vm0, %v7504_v62, 0.0 }
 0x3c1   :  { %v2511_v60 = vadd.f32 %v2510_v26, %v2509_v59 }
 0x3c2   :  { %v2563_v25 = vsel %vm8437_vm0, %v2538_v22, 0.0  ;;  %v2539_v16 = vmul.f32 %v7509_v6, %v7509_v6  ;;  %v2512_v46 = vsel %vm8437_vm0, %v7509_v6, 0.0 }
 0x3c3   :  { %v2564_v14 = vadd.f32 %v2563_v25, %v2562_v28  ;;  %v2513_v54 = vadd.f32 %v2512_v46, %v2511_v60 }
 0x3c4   :  { %v2565_v8 = vsel %vm8437_vm0, %v2539_v16, 0.0 }
 0x3c5   :  { %v2566_v31 = vadd.f32 %v2565_v8, %v2564_v14 }
 0x3cc   :  { %v5353_v36 = vpop.f32.mrb[88].mxu1 }
 0x3cd   :  { %v5354_v37 = vpop.f32.mrb[89].mxu1 }
 0x3ce   :  { %v7533_v47 = vadd.f32 %v5354_v37, %v5353_v36  ;;  %v5356_v41 = vpop.f32.mrb[90].mxu1 }
 0x3cf   :  { %v5357_v56 = vpop.f32.mrb[91].mxu1 }
 0x3d0   :  { %v2514_v45 = vsel %vm8437_vm0, %v7533_v47, 0.0  ;;  %v2540_v52 = vmul.f32 %v7533_v47, %v7533_v47  ;;  %v7540_v49 = vadd.f32 %v5357_v56, %v5356_v41 }
 0x3d1   :  { %v2515_v17 = vadd.f32 %v2514_v45, %v2513_v54 }
 0x3d2   :  { %v2567_v63 = vsel %vm8437_vm0, %v2540_v52, 0.0  ;;  %v2541_v9 = vmul.f32 %v7540_v49, %v7540_v49  ;;  %v2516_v58 = vsel %vm8437_vm0, %v7540_v49, 0.0 }
 0x3d3   :  { %v2568_v35 = vadd.f32 %v2567_v63, %v2566_v31  ;;  %v2517_v22 = vadd.f32 %v2516_v58, %v2515_v17 }
 0x3d4   :  { %v5359_v4 = vpop.f32.mrb[92].mxu1  ;;  %v2569_v51 = vsel %vm8437_vm0, %v2541_v9, 0.0 }
 0x3d5   :  { %v5360_v50 = vpop.f32.mrb[93].mxu1  ;;  %v2570_v25 = vadd.f32 %v2569_v51, %v2568_v35 }
 0x3d6   :  { %v7548_v27 = vadd.f32 %v5360_v50, %v5359_v4  ;;  %v5362_v40 = vpop.f32.mrb[94].mxu1 }
 0x3d7   :  { %v5363_v33 = vpop.f32.mrb[95].mxu1 }
 0x3d8   :  { %v2518_v7 = vsel %vm8437_vm0, %v7548_v27, 0.0  ;;  %v2542_v26 = vmul.f32 %v7548_v27, %v7548_v27  ;;  %v7554_v59 = vadd.f32 %v5363_v33, %v5362_v40 }
 0x3d9   :  { %v2519_v16 = vadd.f32 %v2518_v7, %v2517_v22  ;;  %v2855_v22 = vld [vmem:[%s8411_s5] sm:$0x1] }
 0x3da   :  { %v2571_v36 = vsel %vm8437_vm0, %v2542_v26, 0.0  ;;  %v2520_v28 = vsel %vm8437_vm0, %v7554_v59, 0.0  ;;  %v2543_v60 = vmul.f32 %v7554_v59, %v7554_v59  ;;  %v2856_v26 = vld [vmem:[%s8411_s5 + $0x1] sm:$0x1] }
 0x3db   :  { %v2572_v37 = vadd.f32 %v2571_v36, %v2570_v25  ;;  %v2521_v46 = vadd.f32 %v2520_v28, %v2519_v16  ;;  %v6086_v36 = vld [vmem:[%s8412_s3 + $0x40] sm:$0xff]  }
 0x3dc   :  { %v2573_v41 = vsel %vm8437_vm0, %v2543_v60, 0.0  ;;  %v6087_v28 = vld [vmem:[%s8412_s3] sm:$0xff]   ;;  %v6088_v60 = vld [vmem:[%s8412_s3 + $0x48] sm:$0xff]  }
 0x3dd   :  { %v2522_v14 = vrot.slane %v2521_v46, 4  ;;  %v2574_v8 = vadd.f32 %v2573_v41, %v2572_v37  ;;  %v6089_v37 = vld [vmem:[%s8412_s3 + $0x8] sm:$0xff]   ;;  %v6091_v41 = vld [vmem:[%s8412_s3 + $0x10] sm:$0xff]  }
 0x3df   :  { %v2523_v56 = vadd.f32 %v2522_v14, %v2521_v46  ;;  %v2575_v54 = vrot.slane %v2574_v8, 4  ;;  %v6090_v46 = vld [vmem:[%s8412_s3 + $0x50] sm:$0xff]   ;;  %v6092_v14 = vld [vmem:[%s8412_s3 + $0x58] sm:$0xff]  }
 0x3e1   :  { %v2524_v45 = vrot.slane %v2523_v56, 2  ;;  %v2576_v31 = vadd.f32 %v2575_v54, %v2574_v8  ;;  %v6094_v8 = vld [vmem:[%s8412_s3 + $0x60] sm:$0xff]   ;;  %v6097_v54 = vld [vmem:[%s8412_s3 + $0x28] sm:$0xff]  }
 0x3e3   :  { %v2525_v52 = vadd.f32 %v2524_v45, %v2523_v56  ;;  %v2577_v17 = vrot.slane %v2576_v31, 2  ;;  %v6093_v56 = vld [vmem:[%s8412_s3 + $0x18] sm:$0xff]   ;;  %v6095_v45 = vld [vmem:[%s8412_s3 + $0x20] sm:$0xff]  }
 0x3e5   :  { %v2526_v63 = vrot.slane %v2525_v52, 1  ;;  %v2578_v58 = vadd.f32 %v2577_v17, %v2576_v31  ;;  %v3103_v31 = vadd.s32 96, %v7331_v21  ;;  %v3105_v17 = vadd.s32 112, %v7331_v21 }
 0x3e7   :  { %v2527_v9 = vadd.f32 %v2526_v63, %v2525_v52  ;;  %v2579_v44 = vrot.slane %v2578_v58, 1  ;;  %v6096_v52 = vld [vmem:[%s8412_s3 + $0x68] sm:$0xff]   ;;  %v3099_v63 = vadd.s32 64, %v7331_v21 }
 0x3e9   :  { %5518 = vmatmul.mubr.msk.f32.vlgmr.msra.gmra.mrb[96].mxu1 %vm8437_vm0, %v2527_v9  ;;  %v2580_v19 = vadd.f32 %v2579_v44, %v2578_v58  ;;  %v3101_v9 = vadd.s32 80, %v7331_v21  ;;  %v7651_v58 = vsub.s32 0, %v7331_v21  ;;  %v8424_v44 = vand.u32 7, %v7362_v0 }
 0x3ea   :  { %5663 = vmatpush3.bf16.msk.msra.mxu1 %vm5650_vm9, %v8425_v57  ;;  %5536 = vmatprep.mubr.msk.f32.mxu1 %vm8432_vm5, %v8429_v20 }
 0x3eb   :  { %5664 = vmatprep.subr.bf16.mxu1 %v6130_v12  ;;  %vm7677_vm8 = vcmp.lt.s32.totalorder %v8424_v44, 2 }
 0x3ee   :  { %5666 = vmatpush3.bf16.msk.msra.mxu1 %vm5653_vm12, %v8425_v57 }
 0x3ef   :  { %5667 = vmatprep.subr.bf16.mxu1 %v6130_v12 }
 0x3f2   :  { %5669 = vmatpush3.bf16.msk.msra.mxu1 %vm5656_vm15, %v8425_v57 }
 0x3f3   :  { %5670 = vmatprep.subr.bf16.mxu1 %v6130_v12 }
 0x3f6   :  { %5672 = vmatpush3.bf16.msk.msra.mxu1 %vm5659_vm6, %v8425_v57  ;;  %vm2876_vm6 = vcmask 31744  }
 0x3f7   :  { %5539 = vmatprep.subr.mxu1 %v8429_v20 }
 0x3f9   :  { %5537 = vmatmul.mubr.msk.f32.vlgmr.msra.gmra.mrb[98].mxu1 %vm8437_vm0, %v2580_v19  ;;  %v8423_v19 = vand.u32 7, %v7391_v3 }
 0x3fa   :  { %5541 = vmatprep.mubr.msk.f32.mxu1 %vm8432_vm5, %v8429_v20  ;;  %5540 = vmatpush3.msk.msra.mxu1 %vm8434_vm4, %v2875_v48 }
 0x3fb   :  { %5544 = vmatprep.subr.mxu1 %v8429_v20  ;;  %vm7683_vm9 = vcmp.lt.s32.totalorder %v8423_v19, 2  ;;  %v8489_v19 = vmov 0 }
 0x4bc   :  { %v2773_v5 = vpop.f32.mrb[96].mxu1 }
 0x4bd   :  { %v5519_v32 = vpop.f32.mrb[97].mxu1  ;;  %v2851_v61 = vmul.f32 0.001953125, %v2773_v5  ;;  %v7660_v5 = vadd.s32 88, %v7331_v21 }
 0x4be   :  { %v7663_v32 = vadd.s32 104, %v7331_v21 }
 0x4bf   :  { %v2853_v4 = vmul.f32 %v2851_v61, %v2851_v61 }
 0x4cc   :  { %v2846_v1 = vpop.f32.mrb[98].mxu1 }
 0x4cd   :  { %v2852_v35 = vmul.f32 0.001953125, %v2846_v1  ;;  %v5538_v50 = vpop.f32.mrb[99].mxu1  ;;  %v3167_v1 = vand.u32 7, %v3099_v63 }
 0x4ce   :  { %v3181_v50 = vand.u32 7, %v3101_v9 }
 0x4cf   :  { %v2854_v51 = vsub.f32 %v2852_v35, %v2853_v4  ;;  %v7667_v4 = vadd.s32 120, %v7331_v21  ;;  %vm7709_vm12 = vcmp.lt.s32.totalorder %v3167_v1, 2 }
 0x4d0   :  { %vm7728_vm13 = vcmp.lt.s32.totalorder %v3181_v50, 2 }
 0x4d1   :  { %v2857_v40 = vadd.f32 1e-05, %v2854_v51  ;;  %v3195_v51 = vand.u32 7, %v3103_v31 }
 0x4d3   :  { %6118 = vrsqrt.f32 %v2857_v40  ;;  %v3209_v40 = vand.u32 7, %v3105_v17  ;;  %vm7732_vm14 = vcmp.lt.s32.totalorder %v3195_v51, 2 }
 0x4d5   :  { %vm7757_vm15 = vcmp.lt.s32.totalorder %v3209_v40, 2 }
 0x4dd   :  { %v6119_v33 = vpop.eup %6118 }
 0x4de   :  { %v2859_v7 = vmul.f32 %v6119_v33, %v2855_v22 }
 0x4e0   :  { %5542 = vmatmul.mubr.msk.f32.vlgmr.msra.gmra.mrb[100].mxu1 %vm2876_vm6, %v2859_v7  ;;  %v2860_v25 = vmul.f32 %v2859_v7, %v2851_v61  ;;  %v8422_v61 = vand.u32 7, %v7420_v43  ;;  %v8431_v7 = vand.u32 7, %v7336_v15 }
 0x4e1   :  { %5545 = vmatpush3.msk.msra.mxu1 %vm8434_vm4, %v2875_v48  ;;  %5546 = vmatprep.mubr.msk.f32.mxu1 %vm8432_vm5, %v8429_v20  ;;  %v7657_v48 = vadd.s32 72, %v7331_v21 }
 0x4e2   :  { %v2861_v16 = vsub.f32 %v2856_v26, %v2860_v25  ;;  %5387 = vmatprep.subr.bf16.mxu1 %v6086_v36  ;;  %v8428_v26 = vand.u32 7, %v7365_v18  ;;  %v3146_v25 = vand.u32 7, %v7394_v34  ;;  %v8475_v36 = vmov 0 }
 0x4e3   :  { %v8476_v36 = vsel %vm7683_vm9, 4294967295, %v8475_v36  ;;  %vm7705_vm11 = vcmp.lt.s32.totalorder %v8422_v61, 2  ;;  %vm7780_vm2 = vcmp.lt.s32.totalorder %v8431_v7, 2  ;;  %v8493_v7 = vmov 0 }
 0x4e4   :  { %5547 = vmatmul.mubr.msk.f32.vlgmr.msra.gmra.mrb[102].mxu1 %vm2876_vm6, %v2861_v16  ;;  %vm7774_vm1 = vcmp.lt.s32.totalorder %v8428_v26, 2  ;;  %vm7788_vm7 = vcmp.lt.s32.totalorder %v3146_v25, 2 }
 0x4e5   :  { %5388 = vmatpush3.bf16.msra.mxu1 %v6087_v28  ;;  %v8477_v28 = vmov 0  ;;  %v8490_v19 = vsel %vm7774_vm1, 4294967295, %v8489_v19  ;;  %v8494_v7 = vsel %vm7788_vm7, 4294967295, %v8493_v7 }
 0x4e6   :  { %5389 = vmatprep.subr.bf16.mxu1 %v6088_v60  ;;  %v8478_v28 = vsel %vm7689_vm10, 4294967295, %v8477_v28  ;;  %v3160_v60 = vand.u32 7, %v7423_v13 }
 0x4e8   :  { %vm7800_vm6 = vcmp.lt.s32.totalorder %v3160_v60, 2 }
 0x4e9   :  { %5390 = vmatpush3.bf16.msra.mxu1 %v6089_v37  ;;  %v3174_v37 = vand.u32 7, %v7657_v48 }
 0x4ea   :  { %5391 = vmatprep.subr.bf16.mxu1 %v6090_v46  ;;  %v3188_v46 = vand.u32 7, %v7660_v5 }
 0x4eb   :  { %vm7806_vm5 = vcmp.lt.s32.totalorder %v3174_v37, 2 }
 0x4ec   :  { %vm7816_vm4 = vcmp.lt.s32.totalorder %v3188_v46, 2 }
 0x4ed   :  { %5392 = vmatpush3.bf16.msra.mxu1 %v6091_v41 }
 0x4ee   :  { %5393 = vmatprep.subr.bf16.mxu1 %v6092_v14 }
 0x4f1   :  { %5394 = vmatpush3.bf16.msra.mxu1 %v6093_v56 }
 0x4f2   :  { %5395 = vmatprep.subr.bf16.mxu1 %v6094_v8 }
 0x4f5   :  { %5396 = vmatpush3.bf16.msra.mxu1 %v6095_v45  ;;  %v8479_v45 = vmov 0 }
 0x4f6   :  { %5397 = vmatprep.subr.bf16.mxu1 %v6096_v52  ;;  %v8480_v45 = vsel %vm7705_vm11, 4294967295, %v8479_v45 }
 0x4f9   :  { %5398 = vmatpush3.bf16.msra.mxu1 %v6097_v54 }
 0x5b3   :  { %v2950_v35 = vpop.f32.mrb[100].mxu1 }
 0x5b4   :  { %v7670_v22 = vrot.slane %v2950_v35, %v7651_v58  ;;  %v5543_v33 = vpop.f32.mrb[101].mxu1 }
 0x5b6   :  { %v3033_v14 = vmul.f32 %v7454_v10, %v7670_v22  ;;  %v3035_v56 = vmul.f32 %v7458_v29, %v7670_v22  ;;  %v3031_v8 = vmul.f32 %v7450_v42, %v7670_v22  ;;  %v6098_v10 = vld [vmem:[%s8412_s3 + $0x70] sm:$0xff]   ;;  %v3037_v63 = vmul.f32 %v7462_v11, %v7670_v22 }
 0x5b7   :  { %v6099_v29 = vld [vmem:[%s8412_s3 + $0x30] sm:$0xff]   ;;  %v3023_v54 = vpop.f32.mrb[102].mxu1  ;;  %v3039_v9 = vmul.f32 %v7468_v23, %v7670_v22  ;;  %v3041_v31 = vmul.f32 %v7504_v62, %v7670_v22  ;;  %v3043_v17 = vmul.f32 %v7533_v47, %v7670_v22  ;;  %v3045_v23 = vmul.f32 %v7548_v27, %v7670_v22  ;;  %5399 = vmatprep.subr.bf16.mxu1 %v6098_v10 }
 0x5b8   :  { %v7737_v33 = vrot.slane %v3023_v54, %v7651_v58  ;;  %v5548_v11 = vpop.f32.mrb[103].mxu1  ;;  %v3032_v62 = vmul.f32 %v7452_v2, %v7670_v22  ;;  %v3034_v47 = vmul.f32 %v7456_v39, %v7670_v22  ;;  %5400 = vmatpush3.bf16.msra.mxu1 %v6099_v29  ;;  %v3036_v50 = vmul.f32 %v7460_v38, %v7670_v22  ;;  %v6100_v38 = vld [vmem:[%s8412_s3 + $0x78] sm:$0xff]  }
 0x5b9   :  { %v3038_v51 = vmul.f32 %v7464_v53, %v7670_v22  ;;  %v3040_v54 = vmul.f32 %v7476_v55, %v7670_v22  ;;  %v3042_v27 = vmul.f32 %v7509_v6, %v7670_v22  ;;  %v6101_v53 = vld [vmem:[%s8412_s3 + $0x38] sm:$0xff]   ;;  %5401 = vmatprep.subr.bf16.mxu1 %v6100_v38 }
 0x5ba   :  { %v3053_v11 = vadd.f32 %v7737_v33, %v3033_v14  ;;  %v3055_v2 = vadd.f32 %v7737_v33, %v3035_v56  ;;  %v3051_v39 = vadd.f32 %v7737_v33, %v3031_v8  ;;  %v3057_v10 = vadd.f32 %v7737_v33, %v3037_v63 }
 0x5bb   :  { %v3059_v55 = vadd.f32 %v7737_v33, %v3039_v9  ;;  %v3061_v6 = vadd.f32 %v7737_v33, %v3041_v31  ;;  %v3063_v14 = vadd.f32 %v7737_v33, %v3043_v17  ;;  %v3065_v56 = vadd.f32 %v7737_v33, %v3045_v23 }
 0x5bc   :  { %v3069_v40 = vmul.f32 0.2, %v3053_v11  ;;  %v3071_v8 = vmul.f32 0.2, %v3055_v2  ;;  %v3067_v63 = vmul.f32 0.2, %v3051_v39  ;;  %v3054_v61 = vadd.f32 %v7737_v33, %v3034_v47  ;;  %5402 = vmatpush3.bf16.msra.mxu1 %v6101_v53 }
 0x5bd   :  { %v3073_v44 = vmul.f32 0.2, %v3057_v10  ;;  %v3075_v9 = vmul.f32 0.2, %v3059_v55  ;;  %v3077_v57 = vmul.f32 0.2, %v3061_v6  ;;  %v3052_v17 = vadd.f32 %v7737_v33, %v3032_v62  ;;  %5673 = vmatprep.subr.bf16.mxu1 %v6130_v12 }
 0x5be   :  { %v8491_v31 = vmov 0  ;;  %v3085_v23 = vmax.f32 %v3053_v11, %v3069_v40  ;;  %v3087_v47 = vmax.f32 %v3055_v2, %v3071_v8  ;;  %v3083_v24 = vmax.f32 %v3051_v39, %v3067_v63 }
 0x5bf   :  { %v8492_v31 = vsel %vm7780_vm2, 4294967295, %v8491_v31  ;;  %v3079_v26 = vmul.f32 0.2, %v3063_v14  ;;  %v3089_v20 = vmax.f32 %v3057_v10, %v3073_v44  ;;  %v3091_v38 = vmax.f32 %v3059_v55, %v3075_v9 }
 0x5c0   :  { %v3093_v42 = vmax.f32 %v3061_v6, %v3077_v57  ;;  %v3081_v41 = vmul.f32 0.2, %v3065_v56  ;;  %v3317_v62 = vsel %vm7677_vm8, %v3085_v23, 0.0  ;;  %v3319_v11 = vsel %vm7683_vm9, %v3087_v47, 0.0 }
 0x5c1   :  { %v3315_v2 = vsel %vm7689_vm10, %v3083_v24, 0.0  ;;  %v3095_v39 = vmax.f32 %v3063_v14, %v3079_v26  ;;  %v8495_v57 = vmov 0  ;;  %v3385_v10 = vpack.c.bf16 %v3319_v11, %v3317_v62 }
 0x5c2   :  { %v8496_v57 = vsel %vm7800_vm6, 4294967295, %v8495_v57  ;;  %v3356_v53 = vpack.c.bf16 %v3317_v62, %v3315_v2  ;;  %v3321_v55 = vsel %vm7705_vm11, %v3089_v20, 0.0  ;;  %v3323_v24 = vsel %vm7709_vm12, %v3091_v38, 0.0 }
 0x5c3   :  { %v3386_v6 = vpack.c.bf16 %v3323_v24, %v3321_v55  ;;  %v3357_v48 = vpack.c.bf16 %v3321_v55, %v3319_v11  ;;  %v3325_v37 = vsel %vm7728_vm13, %v3093_v42, 0.0  ;;  %v3327_v14 = vsel %vm7732_vm14, %v3095_v39, 0.0  ;;  %3393 = vrot.lane.b32.xlu0 %v3385_v10, %s6129_s11 }
 0x5c4   :  { %v8501_v40 = vand.u32 7, %v7663_v32  ;;  %3364 = vrot.lane.b32.xlu1 %v3356_v53, %s6129_s11  ;;  %v3387_v5 = vpack.c.bf16 %v3327_v14, %v3325_v37  ;;  %v3358_v46 = vpack.c.bf16 %v3325_v37, %v3323_v24  ;;  %v3097_v52 = vmax.f32 %v3065_v56, %v3081_v41 }
 0x5c5   :  { %v3070_v8 = vmul.f32 0.2, %v3054_v61  ;;  %v3068_v63 = vmul.f32 0.2, %v3052_v17  ;;  %v3056_v42 = vadd.f32 %v7737_v33, %v3036_v50  ;;  %v3058_v1 = vadd.f32 %v7737_v33, %v3038_v51 }
 0x5c6   :  { %vm7826_vm3 = vcmp.lt.s32.totalorder %v8501_v40, 2  ;;  %v3060_v35 = vadd.f32 %v7737_v33, %v3040_v54  ;;  %v3329_v32 = vsel %vm7757_vm15, %v3097_v52, 0.0  ;;  %v3062_v23 = vadd.f32 %v7737_v33, %v3042_v27 }
 0x5c7   :  { %v3086_v9 = vmax.f32 %v3054_v61, %v3070_v8  ;;  %v3044_v47 = vmul.f32 %v7540_v49, %v7670_v22  ;;  %v3359_v38 = vpack.c.bf16 %v3329_v32, %v3327_v14  ;;  %v3084_v62 = vmax.f32 %v3052_v17, %v3068_v63  ;;  %3395 = vrot.lane.b32.xlu0 %v3386_v6, %s6129_s11 }
 0x5c8   :  { %v3072_v41 = vmul.f32 0.2, %v3056_v42  ;;  %v3046_v56 = vmul.f32 %v7554_v59, %v7670_v22  ;;  %3366 = vrot.lane.b32.xlu1 %v3357_v48, %s6129_s11  ;;  %v3074_v51 = vmul.f32 0.2, %v3058_v1  ;;  %v3076_v61 = vmul.f32 0.2, %v3060_v35 }
 0x5c9   :  { %v3318_v50 = vsel %vm7774_vm1, %v3086_v9, 0.0  ;;  %v3064_v54 = vadd.f32 %v7737_v33, %v3044_v47  ;;  %v3316_v49 = vsel %vm7780_vm2, %v3084_v62, 0.0  ;;  %v3078_v29 = vmul.f32 0.2, %v3062_v23 }
 0x5ca   :  { %v3088_v27 = vmax.f32 %v3056_v42, %v3072_v41  ;;  %v3066_v17 = vadd.f32 %v7737_v33, %v3046_v56  ;;  %v3333_v11 = vpack.c.bf16 %v3318_v50, %v3316_v49  ;;  %v3090_v59 = vmax.f32 %v3058_v1, %v3074_v51 }
 0x5cb   :  { %v3092_v22 = vmax.f32 %v3060_v35, %v3076_v61  ;;  %v3080_v2 = vmul.f32 0.2, %v3064_v54  ;;  %v3094_v10 = vmax.f32 %v3062_v23, %v3078_v29  ;;  %v8504_v55 = vand.u32 7, %v7667_v4  ;;  %3397 = vrot.lane.b32.xlu0 %v3387_v5, %s6129_s11 }
 0x5cc   :  { %v3320_v39 = vsel %vm7788_vm7, %v3088_v27, 0.0  ;;  %v3082_v53 = vmul.f32 0.2, %v3066_v17  ;;  %3368 = vrot.lane.b32.xlu1 %v3358_v46, %s6129_s11  ;;  %v3341_v33 = vrot.slane %v3333_v11, 4  ;;  %3381 = vst.msk [vmem:[#allocation3 + $0x8] sm:$0xff] %vm8437_vm0, %v3333_v11  ;;  %v3322_v6 = vsel %vm7800_vm6, %v3090_v59, 0.0 }
 0x5cd   :  { %vm7854_vm12 = vcmp.lt.s32.totalorder %v8504_v55, 2  ;;  %v3324_v48 = vsel %vm7806_vm5, %v3092_v22, 0.0  ;;  %v3096_v37 = vmax.f32 %v3064_v54, %v3080_v2  ;;  %v3334_v14 = vpack.c.bf16 %v3322_v6, %v3320_v39 }
 0x5ce   :  { %v3326_v4 = vsel %vm7816_vm4, %v3094_v10, 0.0  ;;  %v3098_v40 = vmax.f32 %v3066_v17, %v3082_v53  ;;  %v3388_v52 = vpack.c.bf16 %v3329_v32, %v3329_v32  ;;  %vm8507_vm13 = vcmask 523268  }
 0x5cf   :  { %3352 = vst.msk [vmem:[#allocation3] sm:$0xf0] %vm8507_vm13, %v3341_v33  ;;  %v3335_v5 = vpack.c.bf16 %v3326_v4, %v3324_v48  ;;  %v3328_v46 = vsel %vm7826_vm3, %v3096_v37, 0.0  ;;  %v3342_v8 = vrot.slane %v3334_v14, 4  ;;  %vm8508_vm4 = vcmask 1043456  }
 0x5d0   :  { %3382 = vst.msk [vmem:[#allocation3 + $0x18] sm:$0xff] %vm8437_vm0, %v3334_v14  ;;  %v3330_v44 = vsel %vm7854_vm12, %v3098_v40, 0.0  ;;  %v3336_v63 = vpack.c.bf16 %v3328_v46, %v3328_v46  ;;  %3399 = vrot.lane.b32.xlu0 %v3388_v52, %s6129_s11  ;;  %3370 = vrot.lane.b32.xlu1 %v3359_v38, %s6129_s11  ;;  %vm8509_vm3 = vmmov %vm8508_vm4  ;;  %vm8511_vm14 = vcmask 1048064   ;;  %v8519_v59 = vmov 0.0  }
 0x5d1   :  { %v3344_v26 = vrot.slane %v3335_v5, 4  ;;  %3383 = vst.msk [vmem:[#allocation3 + $0x28] sm:$0xff] %vm8437_vm0, %v3335_v5  ;;  %v3380_v42 = vpack.c.bf16 %v3330_v44, %v3328_v46  ;;  %v3343_v1 = vsel %vm8508_vm4, %v3341_v33, %v3342_v8  ;;  %vm8510_vm5 = vmmov %vm8509_vm3  ;;  %v8521_v22 = vand.u32 7, %v7331_v21 }
 0x5d2   :  { %v3346_v35 = vrot.slane %v3336_v63, 4  ;;  %3353 = vst.msk [vmem:[#allocation3 + $0x10] sm:$0xff] %vm8437_vm0, %v3343_v1  ;;  %vm8512_vm15 = vmmov %vm8511_vm14  ;;  %v8524_v39 = vand.u32 7, %v7336_v15  ;;  %v8527_v53 = vmov 1.0|1.0   ;;  %v8528_v55 = vand.u32 7, %v7362_v0 }
 0x5d3   :  { %v3345_v20 = vsel %vm8509_vm3, %v3342_v8, %v3344_v26  ;;  %3384 = vst.msk [vmem:[#allocation3 + $0x38] sm:$0xff] %vm8437_vm0, %v3380_v42  ;;  %vm8513_vm12 = vmmov %vm8511_vm14  ;;  %v8531_v33 = vand.u32 7, %v7365_v18  ;;  %v8534_v48 = vand.u32 7, %v7391_v3  ;;  %v8539_v4 = vand.u32 7, %v7420_v43 }
 0x5d4   :  { %3354 = vst.msk [vmem:[#allocation3 + $0x20] sm:$0xff] %vm8437_vm0, %v3345_v20  ;;  %v3347_v32 = vsel %vm8510_vm5, %v3344_v26, %v3346_v35  ;;  %vm8514_vm13 = vmmov %vm8513_vm12  ;;  %vm8517_vm5 = vcmask 1043968   ;;  %vm7967_vm6 = vcmp.eq.s32.totalorder %v3160_v60, %v7333_v30  ;;  %v3838_v24 = vand.u32 7, %v7333_v30 }
 0x5d5   :  { %3355 = vst.msk [vmem:[#allocation3 + $0x30] sm:$0xff] %vm8437_vm0, %v3347_v32  ;;  %vm8515_vm4 = vmmov %vm8513_vm12  ;;  %vm7953_vm0 = vcmp.eq.s32.totalorder %v3146_v25, %v7333_v30  ;;  %v6134_v37 = vmov 1.0  }
 0x5d6   :  { %vm8516_vm3 = vmmov %vm8515_vm4 }
 0x635   :  { %v3394_v9 = vpop.permute.xlu0 %3393 }
 0x636   :  { %v3365_v23 = vpop.permute.xlu1 %3364  ;;  %3405 = vst.msk [vmem:[#allocation3 + $0x8] sm:$0xff] %vm8511_vm14, %v3394_v9  ;;  %vm8518_vm14 = vmmov %vm8516_vm3 }
 0x637   :  { %3376 = vst.msk [vmem:[#allocation3] sm:$0xff] %vm8512_vm15, %v3365_v23  ;;  %vm8520_vm15 = vmmov 0  }
 0x639   :  { %v3396_v47 = vpop.permute.xlu0 %3395 }
 0x63a   :  { %v3367_v38 = vpop.permute.xlu1 %3366  ;;  %3406 = vst.msk [vmem:[#allocation3 + $0x18] sm:$0xff] %vm8513_vm12, %v3396_v47  ;;  %vm7896_vm12 = vcmp.eq.s32.totalorder %v8521_v22, %v7333_v30 }
 0x63b   :  { %3377 = vst.msk [vmem:[#allocation3 + $0x10] sm:$0xff] %vm8514_vm13, %v3367_v38  ;;  %vm7903_vm13 = vcmp.eq.s32.totalorder %v8524_v39, %v7333_v30 }
 0x63d   :  { %v3398_v62 = vpop.permute.xlu0 %3397  ;;  %v3410_v56 = vld [vmem:[#allocation3 + $0x8] sm:$0xff] }
 0x63e   :  { %v3369_v41 = vpop.permute.xlu1 %3368  ;;  %v3409_v50 = vld [vmem:[#allocation3] sm:$0xff]  ;;  %3407 = vst.msk [vmem:[#allocation3 + $0x28] sm:$0xff] %vm8515_vm4, %v3398_v62  ;;  %3577 = vmatprep.mubr.bf16.mxu1 %v3410_v56  ;;  %vm8436_vm4 = vmpackc.low %vm7903_vm13, %vm7896_vm12 }
 0x63f   :  { %3378 = vst.msk [vmem:[#allocation3 + $0x20] sm:$0xff] %vm8516_vm3, %v3369_v41  ;;  %3578 = vmatmul.mubr.bf16.vlgmr.msra.gmra.mrb[104].mxu1 %v3409_v50  ;;  %vm7921_vm3 = vcmp.eq.s32.totalorder %v8528_v55, %v7333_v30 }
 0x640   :  { %5675 = vmatpush3.bf16.msk.msra.mxu1 %vm8436_vm4, %v8527_v53  ;;  %vm7946_vm4 = vcmp.eq.s32.totalorder %v8534_v48, %v7333_v30 }
 0x641   :  { %v3412_v54 = vld [vmem:[#allocation3 + $0x18] sm:$0xff]  ;;  %5676 = vmatprep.subr.bf16.mxu1 %v6130_v12  ;;  %vm8443_vm7 = vmpackc.low %vm7953_vm0, %vm7946_vm4 }
 0x642   :  { %v3400_v51 = vpop.permute.xlu0 %3399  ;;  %v3371_v61 = vpop.permute.xlu1 %3370  ;;  %3585 = vmatprep.mubr.bf16.mxu1 %v3412_v54  ;;  %v3411_v49 = vld [vmem:[#allocation3 + $0x10] sm:$0xff] }
 0x643   :  { %3408 = vst.msk [vmem:[#allocation3 + $0x38] sm:$0xf] %vm8517_vm5, %v3400_v51  ;;  %vm7928_vm5 = vcmp.eq.s32.totalorder %v8531_v33, %v7333_v30 }
 0x644   :  { %3379 = vst.msk [vmem:[#allocation3 + $0x30] sm:$0xff] %vm8518_vm14, %v3371_v61  ;;  %vm8438_vm14 = vmpackc.low %vm7928_vm5, %vm7921_vm3 }
 0x645   :  { %v3414_v27 = vld [vmem:[#allocation3 + $0x28] sm:$0xff]  ;;  %5678 = vmatpush3.bf16.msk.msra.mxu1 %vm8438_vm14, %v8527_v53  ;;  %vm7960_vm14 = vcmp.eq.s32.totalorder %v8539_v4, %v7333_v30 }
 0x646   :  { %v3413_v29 = vld [vmem:[#allocation3 + $0x20] sm:$0xff]  ;;  %5679 = vmatprep.subr.bf16.mxu1 %v6130_v12  ;;  %vm8442_vm2 = vmpackc.low %vm7967_vm6, %vm7960_vm14 }
 0x647   :  { %3586 = vmatmul.mubr.bf16.gmra.mrb[108].mxu1 %v3411_v49 }
 0x648   :  { %3593 = vmatprep.mubr.bf16.mxu1 %v3414_v27 }
 0x649   :  { %5681 = vmatpush3.bf16.msk.msra.mxu1 %vm8443_vm7, %v8527_v53 }
 0x64a   :  { %v3416_v17 = vld [vmem:[#allocation3 + $0x38] sm:$0xff]  ;;  %5682 = vmatprep.subr.bf16.mxu1 %v6130_v12 }
 0x64b   :  { %v3415_v11 = vld [vmem:[#allocation3 + $0x30] sm:$0xff] }
 0x64d   :  { %5684 = vmatpush3.bf16.msk.msra.mxu1 %vm8442_vm2, %v8527_v53  ;;  %vm8544_vm2 = vcmask 523264  }
 0x64e   :  { %5685 = vmatprep.subr.bf16.mxu1 %v6130_v12  ;;  %vm8545_vm7 = vmmov %vm8544_vm2 }
 0x64f   :  { %3594 = vmatmul.mubr.bf16.gmra.mrb[112].mxu1 %v3413_v29  ;;  %vm8546_vm1 = vmmov %vm8544_vm2 }
 0x650   :  { %3601 = vmatprep.mubr.bf16.mxu1 %v3416_v17  ;;  %vm8547_vm11 = vmmov %vm8546_vm1 }
 0x651   :  { %vm8548_vm10 = vmmov %vm8546_vm1 }
 0x652   :  { %vm8549_vm9 = vmmov %vm8546_vm1 }
 0x657   :  { %3602 = vmatmul.mubr.bf16.gmra.mrb[116].mxu1 %v3415_v11 }
 0x658   :  { %5565 = vmatprep.mubr.msk.f32.mxu1 %vm8520_vm15, %v8519_v59 }
 0x712   :  { %v5403_v25 = vpop.f32.mrb[104].mxu1 }
 0x713   :  { %v5404_v60 = vpop.f32.mrb[105].mxu1 }
 0x714   :  { %v7993_v5 = vadd.f32 %v5404_v60, %v5403_v25  ;;  %v5406_v46 = vpop.f32.mrb[106].mxu1 }
 0x715   :  { %v5407_v8 = vpop.f32.mrb[107].mxu1 }
 0x716   :  { %v7995_v44 = vadd.f32 %v5407_v8, %v5406_v46  ;;  %v3631_v32 = vmul.f32 %v7993_v5, %v7993_v5  ;;  %v3610_v38 = vsel %vm8545_vm7, %v7993_v5, 0.0  ;;  %vm8554_vm7 = vmmov %vm8546_vm1 }
 0x718   :  { %v3632_v42 = vmul.f32 %v7995_v44, %v7995_v44  ;;  %v3611_v9 = vsel %vm8544_vm2, %v7995_v44, 0.0  ;;  %v3639_v50 = vsel %vm8548_vm10, %v3631_v32, 0.0  ;;  %vm8550_vm2 = vmmov %vm8546_vm1 }
 0x719   :  { %v3612_v56 = vadd.f32 %v3611_v9, %v3610_v38  ;;  %vm8552_vm10 = vmmov %vm8546_vm1 }
 0x71a   :  { %v5409_v63 = vpop.f32.mrb[108].mxu1  ;;  %v3640_v62 = vsel %vm8546_vm1, %v3632_v42, 0.0 }
 0x71b   :  { %v5410_v26 = vpop.f32.mrb[109].mxu1  ;;  %v3641_v49 = vadd.f32 %v3640_v62, %v3639_v50 }
 0x71c   :  { %v7999_v1 = vadd.f32 %v5410_v26, %v5409_v63  ;;  %v5412_v35 = vpop.f32.mrb[110].mxu1 }
 0x71d   :  { %v5413_v20 = vpop.f32.mrb[111].mxu1 }
 0x71e   :  { %v3633_v23 = vmul.f32 %v7999_v1, %v7999_v1  ;;  %v8007_v47 = vadd.f32 %v5413_v20, %v5412_v35  ;;  %v3613_v41 = vsel %vm8547_vm11, %v7999_v1, 0.0  ;;  %vm8551_vm11 = vmmov %vm8546_vm1 }
 0x71f   :  { %v3614_v27 = vadd.f32 %v3613_v41, %v3612_v56 }
 0x720   :  { %v3642_v51 = vsel %vm8549_vm9, %v3633_v23, 0.0  ;;  %v3634_v61 = vmul.f32 %v8007_v47, %v8007_v47  ;;  %v3615_v17 = vsel %vm8550_vm2, %v8007_v47, 0.0  ;;  %vm8553_vm9 = vmmov %vm8546_vm1 }
 0x721   :  { %v3643_v39 = vadd.f32 %v3642_v51, %v3641_v49  ;;  %v3616_v60 = vadd.f32 %v3615_v17, %v3614_v27  ;;  %vm8555_vm2 = vmmov %vm8546_vm1 }
 0x722   :  { %v5415_v54 = vpop.f32.mrb[112].mxu1  ;;  %v3644_v33 = vsel %vm8551_vm11, %v3634_v61, 0.0  ;;  %vm8556_vm11 = vmmov %vm8546_vm1 }
 0x723   :  { %v5416_v29 = vpop.f32.mrb[113].mxu1  ;;  %v3645_v63 = vadd.f32 %v3644_v33, %v3643_v39 }
 0x724   :  { %v8020_v11 = vadd.f32 %v5416_v29, %v5415_v54  ;;  %v5418_v22 = vpop.f32.mrb[114].mxu1 }
 0x725   :  { %v5419_v55 = vpop.f32.mrb[115].mxu1 }
 0x726   :  { %v3617_v48 = vsel %vm8552_vm10, %v8020_v11, 0.0  ;;  %v3635_v4 = vmul.f32 %v8020_v11, %v8020_v11  ;;  %v8027_v25 = vadd.f32 %v5419_v55, %v5418_v22  ;;  %vm8557_vm10 = vmmov %vm8546_vm1 }
 0x727   :  { %v3618_v26 = vadd.f32 %v3617_v48, %v3616_v60 }
 0x728   :  { %v3646_v46 = vsel %vm8553_vm9, %v3635_v4, 0.0  ;;  %v3636_v8 = vmul.f32 %v8027_v25, %v8027_v25  ;;  %v3619_v42 = vsel %vm8546_vm1, %v8027_v25, 0.0  ;;  %vm8558_vm9 = vmmov %vm8546_vm1 }
 0x729   :  { %v3647_v20 = vadd.f32 %v3646_v46, %v3645_v63  ;;  %v3620_v62 = vadd.f32 %v3619_v42, %v3618_v26 }
 0x72a   :  { %v5421_v35 = vpop.f32.mrb[116].mxu1  ;;  %v3648_v9 = vsel %vm8554_vm7, %v3636_v8, 0.0  ;;  %vm8559_vm7 = vmpackc.low %vm7903_vm13, %vm7896_vm12 }
 0x72b   :  { %v5422_v32 = vpop.f32.mrb[117].mxu1  ;;  %v3649_v61 = vadd.f32 %v3648_v9, %v3647_v20  ;;  %vm8561_vm12 = vmpackc.low %vm7953_vm0, %vm7946_vm4  ;;  %vm8085_vm0 = vcmp.eq.s32.totalorder %v7331_v21, %v3838_v24  ;;  %vm8566_vm4 = vnez %v8476_v36 }
 0x72c   :  { %v8035_v23 = vadd.f32 %v5422_v32, %v5421_v35  ;;  %v5424_v38 = vpop.f32.mrb[118].mxu1  ;;  %vm8562_vm13 = vmpackc.low %vm7967_vm6, %vm7960_vm14  ;;  %vm3848_vm6 = vcmask 64512   ;;  %vm8568_vm14 = vnez %v8480_v45 }
 0x72d   :  { %v5425_v41 = vpop.f32.mrb[119].mxu1 }
 0x72e   :  { %v3621_v56 = vsel %vm8555_vm2, %v8035_v23, 0.0  ;;  %v3637_v50 = vmul.f32 %v8035_v23, %v8035_v23  ;;  %v8041_v51 = vadd.f32 %v5425_v41, %v5424_v38  ;;  %vm8560_vm2 = vmpackc.low %vm7928_vm5, %vm7921_vm3  ;;  %vm8567_vm5 = vnez %v8478_v28 }
 0x72f   :  { %v3622_v54 = vadd.f32 %v3621_v56, %v3620_v62  ;;  %vm8563_vm3 = vmmov %vm8546_vm1  ;;  %v3827_v56 = vld [vmem:[%s8413_s6] sm:$0x1] }
 0x730   :  { %v3650_v49 = vsel %vm8556_vm11, %v3637_v50, 0.0  ;;  %v3623_v27 = vsel %vm8557_vm10, %v8041_v51, 0.0  ;;  %v3638_v29 = vmul.f32 %v8041_v51, %v8041_v51  ;;  %vm8569_vm11 = vnez %v8490_v19 }
 0x731   :  { %v3651_v17 = vadd.f32 %v3650_v49, %v3649_v61  ;;  %v3624_v22 = vadd.f32 %v3623_v27, %v3622_v54  ;;  %v3828_v54 = vld [vmem:[%s8413_s6 + $0x1] sm:$0x1]  ;;  %vm8570_vm10 = vnez %v8492_v31 }
 0x732   :  { %v3652_v39 = vsel %vm8558_vm9, %v3638_v29, 0.0  ;;  %v6102_v29 = vld [vmem:[%s8414_s4 + $0x40] sm:$0xff]   ;;  %vm8572_vm9 = vnez %v8496_v57 }
 0x733   :  { %v3625_v55 = vrot.slane %v3624_v22, 4  ;;  %v3653_v48 = vadd.f32 %v3652_v39, %v3651_v17  ;;  %v6103_v17 = vld [vmem:[%s8414_s4] sm:$0xff]   ;;  %v6105_v39 = vld [vmem:[%s8414_s4 + $0x8] sm:$0xff]  }
 0x735   :  { %v3626_v33 = vadd.f32 %v3625_v55, %v3624_v22  ;;  %v3654_v46 = vrot.slane %v3653_v48, 4  ;;  %v6104_v22 = vld [vmem:[%s8414_s4 + $0x48] sm:$0xff]   ;;  %v6106_v55 = vld [vmem:[%s8414_s4 + $0x50] sm:$0xff]  }
 0x737   :  { %v3627_v4 = vrot.slane %v3626_v33, 2  ;;  %v3655_v26 = vadd.f32 %v3654_v46, %v3653_v48  ;;  %v6108_v48 = vld [vmem:[%s8414_s4 + $0x58] sm:$0xff]   ;;  %v6111_v46 = vld [vmem:[%s8414_s4 + $0x20] sm:$0xff]  }
 0x739   :  { %v3628_v60 = vadd.f32 %v3627_v4, %v3626_v33  ;;  %v3656_v42 = vrot.slane %v3655_v26, 2  ;;  %v6107_v33 = vld [vmem:[%s8414_s4 + $0x10] sm:$0xff]   ;;  %v6109_v4 = vld [vmem:[%s8414_s4 + $0x18] sm:$0xff]  }
 0x73b   :  { %v3629_v8 = vrot.slane %v3628_v60, 1  ;;  %v3657_v35 = vadd.f32 %v3656_v42, %v3655_v26 }
 0x73d   :  { %v3630_v63 = vadd.f32 %v3629_v8, %v3628_v60  ;;  %v3658_v2 = vrot.slane %v3657_v35, 1  ;;  %v6110_v60 = vld [vmem:[%s8414_s4 + $0x60] sm:$0xff]   ;;  %v6112_v8 = vld [vmem:[%s8414_s4 + $0x68] sm:$0xff]  }
 0x73f   :  { %5566 = vmatmul.mubr.msk.f32.vlgmr.msra.gmra.mrb[120].mxu1 %vm8546_vm1, %v3630_v63  ;;  %v3659_v10 = vadd.f32 %v3658_v2, %v3657_v35  ;;  %v6113_v63 = vld [vmem:[%s8414_s4 + $0x28] sm:$0xff]   ;;  %v6114_v2 = vld [vmem:[%s8414_s4 + $0x70] sm:$0xff]  }
 0x740   :  { %5687 = vmatpush3.bf16.msk.msra.mxu1 %vm8559_vm7, %v8527_v53  ;;  %5584 = vmatprep.mubr.msk.f32.mxu1 %vm8520_vm15, %v8519_v59  ;;  %vm8573_vm7 = vcmask 523268  }
 0x741   :  { %5688 = vmatprep.subr.bf16.mxu1 %v6130_v12 }
 0x744   :  { %5690 = vmatpush3.bf16.msk.msra.mxu1 %vm8560_vm2, %v8527_v53  ;;  %vm8574_vm2 = vmmov %vm8546_vm1 }
 0x745   :  { %5691 = vmatprep.subr.bf16.mxu1 %v6130_v12 }
 0x748   :  { %5693 = vmatpush3.bf16.msk.msra.mxu1 %vm8561_vm12, %v8527_v53  ;;  %vm8575_vm12 = vcmask 1043456  }
 0x749   :  { %5694 = vmatprep.subr.bf16.mxu1 %v6130_v12 }
 0x74c   :  { %5696 = vmatpush3.bf16.msk.msra.mxu1 %vm8562_vm13, %v8527_v53  ;;  %vm8576_vm13 = vmmov %vm8546_vm1 }
 0x74d   :  { %5587 = vmatprep.subr.mxu1 %v8519_v59 }
 0x74f   :  { %5585 = vmatmul.mubr.msk.f32.vlgmr.msra.gmra.mrb[122].mxu1 %vm8563_vm3, %v3659_v10  ;;  %v6115_v10 = vld [vmem:[%s8414_s4 + $0x30] sm:$0xff]   ;;  %vm8577_vm3 = vcmask 1048064  }
 0x750   :  { %5589 = vmatprep.mubr.msk.f32.mxu1 %vm8520_vm15, %v8519_v59  ;;  %5588 = vmatpush3.msk.msra.mxu1 %vm8085_vm0, %v6134_v37 }
 0x751   :  { %5592 = vmatprep.subr.mxu1 %v8519_v59 }
 0x812   :  { %v3745_v14 = vpop.f32.mrb[120].mxu1 }
 0x813   :  { %v5567_v40 = vpop.f32.mrb[121].mxu1  ;;  %v3823_v52 = vmul.f32 0.0078125, %v3745_v14 }
 0x815   :  { %v3825_v32 = vmul.f32 %v3823_v52, %v3823_v52 }
 0x822   :  { %v3818_v20 = vpop.f32.mrb[122].mxu1 }
 0x823   :  { %v3824_v9 = vmul.f32 0.0078125, %v3818_v20  ;;  %v5586_v38 = vpop.f32.mrb[123].mxu1 }
 0x825   :  { %v3826_v62 = vsub.f32 %v3824_v9, %v3825_v32 }
 0x827   :  { %v3829_v41 = vadd.f32 1e-05, %v3826_v62 }
 0x829   :  { %6120 = vrsqrt.f32 %v3829_v41 }
 0x833   :  { %v6121_v50 = vpop.eup %6120 }
 0x834   :  { %v3831_v61 = vmul.f32 %v6121_v50, %v3827_v56 }
 0x836   :  { %5590 = vmatmul.mubr.msk.f32.vlgmr.msra.gmra.mrb[124].mxu1 %vm3848_vm6, %v3831_v61  ;;  %v3832_v49 = vmul.f32 %v3831_v61, %v3823_v52 }
 0x837   :  { %5593 = vmatpush3.msk.msra.mxu1 %vm8085_vm0, %v6134_v37  ;;  %5594 = vmatprep.mubr.msk.f32.mxu1 %vm8520_vm15, %v8519_v59  ;;  %vm8578_vm0 = vmmov %vm8577_vm3 }
 0x838   :  { %v3833_v27 = vsub.f32 %v3828_v54, %v3832_v49  ;;  %5449 = vmatprep.subr.bf16.mxu1 %v6102_v29 }
 0x83a   :  { %5595 = vmatmul.mubr.msk.f32.vlgmr.msra.gmra.mrb[126].mxu1 %vm3848_vm6, %v3833_v27  ;;  %vm8579_vm6 = vcmask 1043968  }
 0x83b   :  { %5450 = vmatpush3.bf16.msra.mxu1 %v6103_v17 }
 0x83c   :  { %5451 = vmatprep.subr.bf16.mxu1 %v6104_v22 }
 0x83f   :  { %5452 = vmatpush3.bf16.msra.mxu1 %v6105_v39 }
 0x840   :  { %5453 = vmatprep.subr.bf16.mxu1 %v6106_v55 }
 0x843   :  { %5454 = vmatpush3.bf16.msra.mxu1 %v6107_v33 }
 0x844   :  { %5455 = vmatprep.subr.bf16.mxu1 %v6108_v48 }
 0x847   :  { %5456 = vmatpush3.bf16.msra.mxu1 %v6109_v4 }
 0x848   :  { %5457 = vmatprep.subr.bf16.mxu1 %v6110_v60 }
 0x84b   :  { %5458 = vmatpush3.bf16.msra.mxu1 %v6111_v46 }
 0x84c   :  { %5459 = vmatprep.subr.bf16.mxu1 %v6112_v8 }
 0x84f   :  { %5460 = vmatpush3.bf16.msra.mxu1 %v6113_v63 }
 0x850   :  { %5461 = vmatprep.subr.bf16.mxu1 %v6114_v2 }
 0x853   :  { %5462 = vmatpush3.bf16.msra.mxu1 %v6115_v10 }
 0x909   :  { %v3918_v26 = vpop.f32.mrb[124].mxu1 }
 0x90a   :  { %v3998_v42 = vrot.slane %v3918_v26, %v7651_v58  ;;  %v5591_v35 = vpop.f32.mrb[125].mxu1 }
 0x90c   :  { %v4001_v6 = vmul.f32 %v7999_v1, %v3998_v42  ;;  %v4003_v40 = vmul.f32 %v8020_v11, %v3998_v42  ;;  %v3999_v52 = vmul.f32 %v7993_v5, %v3998_v42  ;;  %v4005_v20 = vmul.f32 %v8035_v23, %v3998_v42  ;;  %v6116_v5 = vld [vmem:[%s8414_s4 + $0x78] sm:$0xff]  }
 0x90d   :  { %v3991_v24 = vpop.f32.mrb[126].mxu1  ;;  %v4000_v32 = vmul.f32 %v7995_v44, %v3998_v42  ;;  %v4002_v9 = vmul.f32 %v8007_v47, %v3998_v42  ;;  %v4004_v38 = vmul.f32 %v8027_v25, %v3998_v42  ;;  %v4006_v62 = vmul.f32 %v8041_v51, %v3998_v42  ;;  %v6117_v11 = vld [vmem:[%s8414_s4 + $0x38] sm:$0xff]   ;;  %5463 = vmatprep.subr.bf16.mxu1 %v6116_v5 }
 0x90e   :  { %v4010_v37 = vrot.slane %v3991_v24, %v7651_v58  ;;  %v5596_v14 = vpop.f32.mrb[127].mxu1  ;;  %5464 = vmatpush3.bf16.msra.mxu1 %v6117_v11  ;;  %v4312_v11 = vand.u32 15, %v7362_v0 }
 0x90f   :  { %5697 = vmatprep.subr.bf16.mxu1 %v6130_v12 }
 0x910   :  { %v4013_v1 = vadd.f32 %v4010_v37, %v4001_v6  ;;  %v4015_v41 = vadd.f32 %v4010_v37, %v4003_v40  ;;  %v4011_v56 = vadd.f32 %v4010_v37, %v3999_v52  ;;  %v4017_v50 = vadd.f32 %v4010_v37, %v4005_v20 }
 0x911   :  { %v4014_v44 = vadd.f32 %v4010_v37, %v4002_v9  ;;  %v4012_v23 = vadd.f32 %v4010_v37, %v4000_v32  ;;  %v4016_v47 = vadd.f32 %v4010_v37, %v4004_v38  ;;  %v4018_v61 = vadd.f32 %v4010_v37, %v4006_v62 }
 0x912   :  { %v4021_v54 = vmul.f32 0.2, %v4013_v1  ;;  %v4023_v25 = vmul.f32 0.2, %v4015_v41  ;;  %v4019_v49 = vmul.f32 0.2, %v4011_v56 }
 0x913   :  { %v4025_v51 = vmul.f32 0.2, %v4017_v50  ;;  %v4022_v27 = vmul.f32 0.2, %v4014_v44  ;;  %v4020_v29 = vmul.f32 0.2, %v4012_v23 }
 0x914   :  { %v4029_v17 = vmax.f32 %v4013_v1, %v4021_v54  ;;  %v4031_v22 = vmax.f32 %v4015_v41, %v4023_v25  ;;  %v4027_v39 = vmax.f32 %v4011_v56, %v4019_v49  ;;  %v4024_v55 = vmul.f32 0.2, %v4016_v47  ;;  %v4557_v25 = vld [vmem:[%s8415_s7] sm:$0x1] }
 0x915   :  { %v4033_v33 = vmax.f32 %v4017_v50, %v4025_v51  ;;  %v4030_v48 = vmax.f32 %v4014_v44, %v4022_v27  ;;  %v4028_v4 = vmax.f32 %v4012_v23, %v4020_v29  ;;  %v4026_v60 = vmul.f32 0.2, %v4018_v61 }
 0x916   :  { %v4037_v46 = vsel %vm7677_vm8, %v4029_v17, 0.0  ;;  %v4039_v8 = vsel %vm8566_vm4, %v4031_v22, 0.0  ;;  %v4035_v63 = vsel %vm8567_vm5, %v4027_v39, 0.0  ;;  %v4032_v26 = vmax.f32 %v4016_v47, %v4024_v55  ;;  %vm8580_vm4 = vmmov %vm8578_vm0 }
 0x917   :  { %v4071_v42 = vpack.c.bf16 %v4039_v8, %v4037_v46  ;;  %v4056_v35 = vpack.c.bf16 %v4037_v46, %v4035_v63  ;;  %v4041_v2 = vsel %vm8568_vm14, %v4033_v33, 0.0  ;;  %v4038_v10 = vsel %vm8569_vm11, %v4030_v48, 0.0 }
 0x918   :  { %v4057_v24 = vpack.c.bf16 %v4041_v2, %v4039_v8  ;;  %v4036_v16 = vsel %vm8570_vm10, %v4028_v4, 0.0  ;;  %v4034_v6 = vmax.f32 %v4018_v61, %v4026_v60  ;;  %vm8571_vm8 = vnez %v8494_v7 }
 0x919   :  { %4075 = vrot.lane.b32.xlu0 %v4071_v42, %s6129_s11  ;;  %4060 = vrot.lane.b32.xlu1 %v4056_v35, %s6129_s11  ;;  %v4045_v36 = vpack.c.bf16 %v4038_v10, %v4036_v16  ;;  %v4040_v28 = vsel %vm8571_vm8, %v4032_v26, 0.0  ;;  %v4072_v14 = vpack.c.bf16 %v4041_v2, %v4041_v2  ;;  %v4298_v41 = vand.u32 15, %v7331_v21 }
 0x91a   :  { %v4042_v45 = vsel %vm8572_vm9, %v4034_v6, 0.0  ;;  %v4046_v37 = vpack.c.bf16 %v4040_v28, %v4040_v28  ;;  %v4305_v56 = vand.u32 15, %v7336_v15  ;;  %v4319_v44 = vand.u32 15, %v7365_v18 }
 0x91b   :  { %v4049_v19 = vrot.slane %v4045_v36, 4  ;;  %4069 = vst.msk [vmem:[#allocation4 + $0x8] sm:$0xff] %vm8546_vm1, %v4045_v36  ;;  %v4068_v40 = vpack.c.bf16 %v4042_v45, %v4040_v28  ;;  %vm8195_vm5 = vcmp.eq.s32.totalorder %v4298_v41, %v7333_v30  ;;  %v4326_v23 = vand.u32 15, %v7391_v3 }
 0x91c   :  { %v4050_v31 = vrot.slane %v4046_v37, 4  ;;  %vm8200_vm14 = vcmp.eq.s32.totalorder %v4305_v56, %v7333_v30  ;;  %v4333_v47 = vand.u32 15, %v7394_v34  ;;  %v4340_v61 = vand.u32 15, %v7420_v43 }
 0x91d   :  { %4077 = vrot.lane.b32.xlu0 %v4072_v14, %s6129_s11  ;;  %4062 = vrot.lane.b32.xlu1 %v4057_v24, %s6129_s11  ;;  %4054 = vst.msk [vmem:[#allocation4] sm:$0xf0] %vm8573_vm7, %v4049_v19  ;;  %vm5698_vm11 = vmpackc.low %vm8200_vm14, %vm8195_vm5  ;;  %v4347_v54 = vand.u32 15, %v7423_v13  ;;  %vm8222_vm10 = vcmp.eq.s32.totalorder %v4312_v11, %v7333_v30  ;;  %vm8227_vm8 = vcmp.eq.s32.totalorder %v4319_v44, %v7333_v30  ;;  %v4568_v56 = vand.u32 15, %v7333_v30 }
 0x91e   :  { %4070 = vst.msk [vmem:[#allocation4 + $0x18] sm:$0xff] %vm8574_vm2, %v4068_v40  ;;  %v4051_v7 = vsel %vm8575_vm12, %v4049_v19, %v4050_v31  ;;  %vm8232_vm9 = vcmp.eq.s32.totalorder %v4326_v23, %v7333_v30  ;;  %vm8237_vm1 = vcmp.eq.s32.totalorder %v4333_v47, %v7333_v30  ;;  %vm5701_vm7 = vmpackc.low %vm8227_vm8, %vm8222_vm10  ;;  %vm8257_vm12 = vcmp.eq.s32.totalorder %v4340_v61, %v7333_v30 }
 0x91f   :  { %4055 = vst.msk [vmem:[#allocation4 + $0x10] sm:$0xff] %vm8576_vm13, %v4051_v7  ;;  %vm8449_vm2 = vmpackc.low %vm8237_vm1, %vm8232_vm9  ;;  %vm8262_vm13 = vcmp.eq.s32.totalorder %v4347_v54, %v7333_v30  ;;  %vm8348_vm10 = vcmp.eq.s32.totalorder %v7331_v21, %v4568_v56  ;;  %vm8353_vm8 = vcmp.eq.s32.totalorder %v7336_v15, %v4568_v56 }
 0x920   :  { %vm8605_vm5 = vmpackc.low %vm8237_vm1, %vm8232_vm9  ;;  %vm4580_vm1 = vcmask 130048  }
 0x921   :  { %vm8606_vm14 = vmpackc.low %vm8262_vm13, %vm8257_vm12 }
 0x922   :  { %vm5722_vm9 = vmpackc.low %vm8353_vm8, %vm8348_vm10 }
 0x98b   :  { %v4076_v57 = vpop.permute.xlu0 %4075  ;;  %v4061_v52 = vpop.permute.xlu1 %4060 }
 0x98c   :  { %4081 = vst.msk [vmem:[#allocation4 + $0x8] sm:$0xff] %vm8577_vm3, %v4076_v57  ;;  %vm8448_vm3 = vmpackc.low %vm8262_vm13, %vm8257_vm12 }
 0x98d   :  { %4066 = vst.msk [vmem:[#allocation4] sm:$0xff] %vm8578_vm0, %v4061_v52  ;;  %vm8597_vm0 = vcmask 523264  }
 0x98e   :  { %vm8614_vm12 = vmmov %vm8597_vm0 }
 0x98f   :  { %v4078_v20 = vpop.permute.xlu0 %4077  ;;  %v4063_v32 = vpop.permute.xlu1 %4062  ;;  %vm8615_vm13 = vmmov %vm8597_vm0 }
 0x990   :  { %4082 = vst.msk [vmem:[#allocation4 + $0x18] sm:$0xf] %vm8579_vm6, %v4078_v20  ;;  %vm8598_vm6 = vmmov %vm8597_vm0 }
 0x991   :  { %4067 = vst.msk [vmem:[#allocation4 + $0x10] sm:$0xff] %vm8580_vm4, %v4063_v32  ;;  %vm8599_vm4 = vmmov %vm8597_vm0 }
 0x993   :  { %v4084_v9 = vld [vmem:[#allocation4 + $0x8] sm:$0xff] }
 0x994   :  { %v4083_v38 = vld [vmem:[#allocation4] sm:$0xff]  ;;  %4247 = vmatprep.mubr.bf16.mxu1 %v4084_v9 }
 0x995   :  { %4248 = vmatmul.mubr.bf16.vlgmr.msra.gmra.mrb[128].mxu1 %v4083_v38 }
 0x996   :  { %5699 = vmatpush3.bf16.msk.msra.mxu1 %vm5698_vm11, %v8527_v53 }
 0x997   :  { %v4086_v62 = vld [vmem:[#allocation4 + $0x18] sm:$0xff]  ;;  %5700 = vmatprep.subr.bf16.mxu1 %v6130_v12 }
 0x998   :  { %4255 = vmatprep.mubr.bf16.mxu1 %v4086_v62  ;;  %v4085_v1 = vld [vmem:[#allocation4 + $0x10] sm:$0xff] }
 0x99a   :  { %5702 = vmatpush3.bf16.msk.msra.mxu1 %vm5701_vm7, %v8527_v53 }
 0x99b   :  { %5703 = vmatprep.subr.bf16.mxu1 %v6130_v12 }
 0x99d   :  { %4256 = vmatmul.mubr.bf16.gmra.mrb[132].mxu1 %v4085_v1 }
 0x99e   :  { %5613 = vmatprep.mubr.msk.f32.mxu1 %vm8520_vm15, %v8519_v59  ;;  %5705 = vmatpush3.bf16.msk.msra.mxu1 %vm8449_vm2, %v8527_v53  ;;  %vm8601_vm2 = vmmov %vm8597_vm0 }
 0x99f   :  { %5706 = vmatprep.subr.bf16.mxu1 %v6130_v12 }
 0x9a2   :  { %5708 = vmatpush3.bf16.msk.msra.mxu1 %vm8448_vm3, %v8527_v53  ;;  %vm8600_vm3 = vmmov %vm8597_vm0 }
 0x9a3   :  { %5709 = vmatprep.subr.bf16.mxu1 %v6130_v12 }
 0xa68   :  { %v5465_v13 = vpop.f32.mrb[128].mxu1 }
 0xa69   :  { %v5466_v49 = vpop.f32.mrb[129].mxu1 }
 0xa6a   :  { %v8284_v51 = vadd.f32 %v5466_v49, %v5465_v13  ;;  %v5468_v27 = vpop.f32.mrb[130].mxu1 }
 0xa6b   :  { %v5469_v29 = vpop.f32.mrb[131].mxu1 }
 0xa6c   :  { %v8286_v17 = vadd.f32 %v5469_v29, %v5468_v27  ;;  %v4277_v39 = vmul.f32 %v8284_v51, %v8284_v51  ;;  %v4264_v4 = vsel %vm8598_vm6, %v8284_v51, 0.0  ;;  %vm8602_vm6 = vmmov %vm8597_vm0 }
 0xa6e   :  { %v4278_v22 = vmul.f32 %v8286_v17, %v8286_v17  ;;  %v4265_v55 = vsel %vm8597_vm0, %v8286_v17, 0.0  ;;  %v4281_v42 = vsel %vm8600_vm3, %v4277_v39, 0.0  ;;  %vm8603_vm3 = vmmov %vm8597_vm0 }
 0xa6f   :  { %v4266_v63 = vadd.f32 %v4265_v55, %v4264_v4 }
 0xa70   :  { %v5471_v33 = vpop.f32.mrb[132].mxu1  ;;  %v4282_v60 = vsel %vm8599_vm4, %v4278_v22, 0.0  ;;  %vm8616_vm4 = vmmov %vm8597_vm0 }
 0xa71   :  { %v5472_v48 = vpop.f32.mrb[133].mxu1  ;;  %v4283_v24 = vadd.f32 %v4282_v60, %v4281_v42 }
 0xa72   :  { %v8297_v46 = vadd.f32 %v5472_v48, %v5471_v33  ;;  %v5474_v8 = vpop.f32.mrb[134].mxu1 }
 0xa73   :  { %v5475_v26 = vpop.f32.mrb[135].mxu1 }
 0xa74   :  { %v4267_v35 = vsel %vm8601_vm2, %v8297_v46, 0.0  ;;  %v4279_v2 = vmul.f32 %v8297_v46, %v8297_v46  ;;  %v8304_v10 = vadd.f32 %v5475_v26, %v5474_v8  ;;  %vm8604_vm2 = vmmov %vm8597_vm0  ;;  %v5297_v8 = vld [vmem:[%s8416_s8] ss:$0 sm:$0xff] }
 0xa75   :  { %v4268_v16 = vadd.f32 %v4267_v35, %v4266_v63 }
 0xa76   :  { %v4284_v6 = vsel %vm8597_vm0, %v4279_v2, 0.0  ;;  %v4269_v36 = vsel %vm8602_vm6, %v8304_v10, 0.0  ;;  %v4280_v28 = vmul.f32 %v8304_v10, %v8304_v10 }
 0xa77   :  { %v4285_v45 = vadd.f32 %v4284_v6, %v4283_v24  ;;  %v4270_v37 = vadd.f32 %v4269_v36, %v4268_v16  ;;  %v5300_v24 = vld [vmem:[%s8416_s8 + $0x3] ss:$0 sm:$0xff] }
 0xa78   :  { %v4286_v14 = vsel %vm8603_vm3, %v4280_v28, 0.0 }
 0xa79   :  { %v4271_v19 = vrot.slane %v4270_v37, 4  ;;  %v4287_v31 = vadd.f32 %v4286_v14, %v4285_v45 }
 0xa7b   :  { %v4272_v40 = vadd.f32 %v4271_v19, %v4270_v37  ;;  %v4288_v52 = vrot.slane %v4287_v31, 4 }
 0xa7d   :  { %v4273_v7 = vrot.slane %v4272_v40, 2  ;;  %v4289_v9 = vadd.f32 %v4288_v52, %v4287_v31 }
 0xa7f   :  { %v4274_v57 = vadd.f32 %v4273_v7, %v4272_v40  ;;  %v4290_v38 = vrot.slane %v4289_v9, 2 }
 0xa81   :  { %v4275_v20 = vrot.slane %v4274_v57, 1  ;;  %v4291_v62 = vadd.f32 %v4290_v38, %v4289_v9 }
 0xa83   :  { %v4276_v32 = vadd.f32 %v4275_v20, %v4274_v57  ;;  %v4292_v1 = vrot.slane %v4291_v62, 1 }
 0xa85   :  { %5614 = vmatmul.mubr.msk.f32.vlgmr.msra.gmra.mrb[136].mxu1 %vm8604_vm2, %v4276_v32  ;;  %v4293_v41 = vadd.f32 %v4292_v1, %v4291_v62 }
 0xa86   :  { %5711 = vmatpush3.bf16.msk.msra.mxu1 %vm5698_vm11, %v8527_v53  ;;  %5632 = vmatprep.mubr.msk.f32.mxu1 %vm8520_vm15, %v8519_v59  ;;  %vm8607_vm11 = vmmov %vm8597_vm0 }
 0xa87   :  { %5712 = vmatprep.subr.bf16.mxu1 %v6130_v12 }
 0xa8a   :  { %5714 = vmatpush3.bf16.msk.msra.mxu1 %vm5701_vm7, %v8527_v53  ;;  %vm8613_vm7 = vmmov %vm8597_vm0 }
 0xa8b   :  { %5715 = vmatprep.subr.bf16.mxu1 %v6130_v12 }
 0xa8e   :  { %5717 = vmatpush3.bf16.msk.msra.mxu1 %vm8605_vm5, %v8527_v53 }
 0xa8f   :  { %5718 = vmatprep.subr.bf16.mxu1 %v6130_v12 }
 0xa92   :  { %5720 = vmatpush3.bf16.msk.msra.mxu1 %vm8606_vm14, %v8527_v53 }
 0xa93   :  { %5721 = vmatprep.subr.bf16.mxu1 %v6130_v12 }
 0xa95   :  { %5633 = vmatmul.mubr.msk.f32.vlgmr.msra.gmra.mrb[138].mxu1 %vm8607_vm11, %v4293_v41 }
 0xa96   :  { %5639 = vmatprep.mubr.msk.f32.mxu1 %vm8520_vm15, %v8519_v59  ;;  %5723 = vmatpush3.bf16.msk.msra.mxu1 %vm5722_vm9, %v8527_v53 }
 0xa97   :  { %5724 = vmatprep.subr.bf16.mxu1 %v6130_v12  ;;  %v4558_v12 = vld [vmem:[%s8415_s7 + $0x1] sm:$0x1] }
 0xb58   :  { %v4475_v21 = vpop.f32.mrb[136].mxu1 }
 0xb59   :  { %v5615_v30 = vpop.f32.mrb[137].mxu1  ;;  %v4553_v15 = vmul.f32 0.03125, %v4475_v21 }
 0xb5b   :  { %v4555_v44 = vmul.f32 %v4553_v15, %v4553_v15 }
 0xb68   :  { %v4548_v11 = vpop.f32.mrb[138].mxu1 }
 0xb69   :  { %v4554_v23 = vmul.f32 0.03125, %v4548_v11  ;;  %v5634_v47 = vpop.f32.mrb[139].mxu1 }
 0xb6b   :  { %v4556_v61 = vsub.f32 %v4554_v23, %v4555_v44 }
 0xb6d   :  { %v4559_v54 = vadd.f32 1e-05, %v4556_v61 }
 0xb6f   :  { %6122 = vrsqrt.f32 %v4559_v54 }
 0xb79   :  { %v6123_v0 = vpop.eup %6122 }
 0xb7a   :  { %v4561_v18 = vmul.f32 %v6123_v0, %v4557_v25 }
 0xb7c   :  { %5640 = vmatmul.mubr.msk.f32.vlgmr.msra.gmra.mrb[140].mxu1 %vm4580_vm1, %v4561_v18  ;;  %v4562_v3 = vmul.f32 %v4561_v18, %v4553_v15 }
 0xb7d   :  { %5726 = vmatpush3.bf16.msk.msra.mxu1 %vm5722_vm9, %v8527_v53  ;;  %5646 = vmatprep.mubr.msk.f32.mxu1 %vm8520_vm15, %v8519_v59  ;;  %vm8612_vm15 = vmmov %vm8597_vm0  ;;  %vm4799_vm0 = vcmask 7168  }
 0xb7e   :  { %v4563_v34 = vsub.f32 %v4558_v12, %v4562_v3 }
 0xb80   :  { %5647 = vmatmul.mubr.msk.f32.vlgmr.msra.gmra.mrb[142].mxu1 %vm4580_vm1, %v4563_v34 }
 0xc4f   :  { %v4650_v43 = vpop.f32.mrb[140].mxu1 }
 0xc50   :  { %v4730_v13 = vrot.slane %v4650_v43, %v7651_v58  ;;  %v5641_v49 = vpop.f32.mrb[141].mxu1 }
 0xc52   :  { %v4731_v27 = vmul.f32 %v8284_v51, %v4730_v13  ;;  %v4732_v22 = vmul.f32 %v8286_v17, %v4730_v13  ;;  %v4733_v39 = vmul.f32 %v8297_v46, %v4730_v13  ;;  %v4734_v55 = vmul.f32 %v8304_v10, %v4730_v13  ;;  %v5298_v17 = vld [vmem:[%s8416_s8 + $0x1] ss:$0 sm:$0xff] }
 0xc53   :  { %v4723_v29 = vpop.f32.mrb[142].mxu1 }
 0xc54   :  { %v4738_v53 = vrot.slane %v4723_v29, %v7651_v58  ;;  %v5648_v33 = vpop.f32.mrb[143].mxu1  ;;  %v5299_v58 = vld [vmem:[%s8416_s8 + $0x2] ss:$0 sm:$0xff] }
 0xc56   :  { %v4739_v48 = vadd.f32 %v4738_v53, %v4731_v27  ;;  %v4740_v59 = vadd.f32 %v4738_v53, %v4732_v22  ;;  %v4741_v4 = vadd.f32 %v4738_v53, %v4733_v39  ;;  %v4742_v60 = vadd.f32 %v4738_v53, %v4734_v55 }
 0xc58   :  { %v4743_v63 = vmul.f32 0.2, %v4739_v48  ;;  %v4744_v51 = vmul.f32 0.2, %v4740_v59  ;;  %v4745_v26 = vmul.f32 0.2, %v4741_v4 }
 0xc59   :  { %v4746_v42 = vmul.f32 0.2, %v4742_v60 }
 0xc5a   :  { %v4747_v46 = vmax.f32 %v4739_v48, %v4743_v63  ;;  %v4748_v35 = vmax.f32 %v4740_v59, %v4744_v51  ;;  %v4749_v2 = vmax.f32 %v4741_v4, %v4745_v26 }
 0xc5b   :  { %v4750_v10 = vmax.f32 %v4742_v60, %v4746_v42 }
 0xc5c   :  { %v4779_v16 = vmul.f32 %v5297_v8, %v4747_v46  ;;  %v4780_v6 = vmul.f32 %v5298_v17, %v4748_v35  ;;  %v4781_v36 = vmul.f32 %v5299_v58, %v4749_v2 }
 0xc5d   :  { %v4782_v28 = vmul.f32 %v5300_v24, %v4750_v10 }
 0xc5e   :  { %v4783_v45 = vsel %vm8612_vm15, %v4779_v16, 0.0  ;;  %v4784_v37 = vsel %vm8613_vm7, %v4780_v6, 0.0  ;;  %v4786_v19 = vsel %vm8614_vm12, %v4781_v36, 0.0 }
 0xc5f   :  { %v4785_v14 = vadd.f32 %v4784_v37, %v4783_v45  ;;  %v4788_v31 = vsel %vm8615_vm13, %v4782_v28, 0.0 }
 0xc61   :  { %v4787_v40 = vadd.f32 %v4786_v19, %v4785_v14 }
 0xc63   :  { %v4789_v7 = vadd.f32 %v4788_v31, %v4787_v40 }
 0xc65   :  { %v4790_v57 = vsel %vm8616_vm4, %v4789_v7, 0.0 }
 0xc66   :  { %4791 = vadd.xlane.f32.xlu0 %v4790_v57 }
 0xcf3   :  { %v4792_v52 = vpop.xlane.xlu0 %4791 }
 0xcf4   :  { %v4793_v20 = vsub.f32 0.0, %v4792_v52 }
 0xcf6   :  { %v4794_v32 = vmul.f32 1.442695, %v4793_v20 }
 0xcf8   :  { %6124 = vpow2.f32 %v4794_v32 }
 0xd02   :  { %v6125_v9 = vpop.eup %6124 }
 0xd03   :  { %v4796_v38 = vadd.f32 1.0, %v6125_v9 }
 0xd05   :  { %6126 = vrcp.f32 %v4796_v38 }
 0xd0f   :  { %v6127_v62 = vpop.eup %6126 }
 0xd10   :  { %4800 = vst.msk [vmem:[%s8417_s9] sm:$0xff] %vm4799_vm0, %v6127_v62 }

</bundles_post_ra>
